<compile_context>
chip_gen: v6e
topology: v6e:2x2x1
jax: 0.10.0
libtpu: 0.0.40
codegen_flags: <defaults>
</compile_context>

<pallas_src>
import math
from functools import partial

import jax
import jax.numpy as jnp
import numpy as np
from jax.experimental import pallas as pl
from jax.experimental.pallas import tpu as pltpu


# Raise the scoped VMEM limit above the v5e (16 MiB) / v6e, v7x (32 MiB)
# defaults while leaving headroom under v7x's 64 MiB physical VMEM.
_VMEM_LIMIT = 48 * 1024 * 1024


def _pick_tile(m, pref=1024):
    """Largest lane tile (multiple of 128) dividing m, preferring `pref`."""
    for t in (pref, 512, 256, 128):
        if t <= m and m % t == 0:
            return t
    return m


# ------------------------- Pallas kernels -------------------------

def _layer_head_kernel(x_ref, a2_ref, b2_ref, o_ref):
    """Fused gather+BN1+ReLU+1x1-grouped-conv+shuffle+BN2+ReLU (A1 folded into A2).

    x_ref:  (c, TM)     bf16 channel-major activation tile (valid channels only)
    a2_ref: (bout, c)   bf16 folded (gather*BN1) x (block-diag 1x1, shuffle, BN2)
    b2_ref: (bout, 1)   f32  folded bias
    o_ref:  (bout, TM)  bf16 lane-dense output
    """
    h = jnp.maximum(x_ref[...], 0).astype(jnp.bfloat16)
    u = jnp.dot(a2_ref[...], h, preferred_element_type=jnp.float32) + b2_ref[...]
    o_ref[...] = jnp.maximum(u, 0.0).astype(o_ref.dtype)


def layer_head(x_cm, a2, b2):
    c, m = x_cm.shape
    bout = a2.shape[0]
    tm = _pick_tile(m)
    return pl.pallas_call(
        _layer_head_kernel,
        out_shape=jax.ShapeDtypeStruct((bout, m), jnp.bfloat16),
        grid=(m // tm,),
        in_specs=[pl.BlockSpec((c, tm), lambda t: (0, t)),
                  pl.BlockSpec((bout, c), lambda t: (0, 0)),
                  pl.BlockSpec((bout, 1), lambda t: (0, 0))],
        out_specs=pl.BlockSpec((bout, tm), lambda t: (0, t)),
        compiler_params=pltpu.CompilerParams(
            dimension_semantics=("parallel",), vmem_limit_bytes=_VMEM_LIMIT),
    )(x_cm, a2, b2)


def _conv_matmul_kernel(p_ref, w_ref, o_ref):
    """Grouped 3x3 conv tile: single K-merged bf16 matmul (K = 9*Cin).

    p_ref: (9*Cin, TM) bf16 im2col patches (tap-major)
    w_ref: (Cout, 9*Cin) bf16 block-diagonal grouped weights
    o_ref: (Cout, TM) bf16
    """
    o_ref[...] = jnp.dot(w_ref[...], p_ref[...],
                         preferred_element_type=jnp.float32).astype(o_ref.dtype)


def conv3x3(x_cm, wflat, n, h, w):
    """Grouped 3x3 conv (pad=1, stride=1); channel-major bf16 (C, N*H*W) in/out."""
    cin = x_cm.shape[0]
    cout = wflat.shape[0]
    m = n * h * w
    # XLA glue: zero-pad spatially and build the 9 tap-shifted views in bf16.
    # Output is produced directly at valid coordinates (no post-kernel crop).
    x4 = x_cm.reshape(cin, n, h, w)
    xp = jnp.pad(x4, ((0, 0), (0, 0), (1, 1), (1, 1)))
    pats = jnp.concatenate(
        [xp[:, :, i:i + h, j:j + w].reshape(cin, m)
         for i in range(3) for j in range(3)], axis=0)        # (9*cin, m) bf16
    tm = _pick_tile(m)
    return pl.pallas_call(
        _conv_matmul_kernel,
        out_shape=jax.ShapeDtypeStruct((cout, m), jnp.bfloat16),
        grid=(m // tm,),
        in_specs=[pl.BlockSpec((9 * cin, tm), lambda t: (0, t)),
                  pl.BlockSpec((cout, 9 * cin), lambda t: (0, 0))],
        out_specs=pl.BlockSpec((cout, tm), lambda t: (0, t)),
        compiler_params=pltpu.CompilerParams(
            dimension_semantics=("parallel",), vmem_limit_bytes=_VMEM_LIMIT),
    )(pats, wflat)


def _final_head_kernel(x_ref, s_ref, b_ref, w_ref, bc_ref, o_ref):
    """Fused BN_last + ReLU + global avg pool (in-kernel lane reduce) + classifier.

    x_ref: (C, N, HW) bf16   s_ref/b_ref: (C, 1, 1) f32
    w_ref: (cls, C)   bf16   bc_ref: (cls, 1) f32   o_ref: (cls, N) f32
    """
    a = jnp.maximum(x_ref[...].astype(jnp.float32) * s_ref[...] + b_ref[...], 0.0)
    pooled = jnp.mean(a, axis=-1).astype(jnp.bfloat16)                     # (C, N)
    o_ref[...] = (jnp.dot(w_ref[...], pooled, preferred_element_type=jnp.float32)
                  + bc_ref[...])                                           # (cls, N)


def final_head(x3, s, b, wct, bc):
    # TODO(synk): could take a per-batch parallel grid axis so v7x's second
    #             TensorCore participates; trivial at this (cls, N) size.
    ncls = wct.shape[0]
    n = x3.shape[1]
    return pl.pallas_call(
        _final_head_kernel,
        out_shape=jax.ShapeDtypeStruct((ncls, n), jnp.float32),
        compiler_params=pltpu.CompilerParams(vmem_limit_bytes=_VMEM_LIMIT),
    )(x3, s, b, wct, bc)


# ------------------------- XLA glue -------------------------

def avg_pool2x2_cm(x_cm, n, h, w):
    # _Transition AvgPool2d(2, 2): fused strided-slice adds in channel-major bf16.
    # TODO(synk): could be folded into the following stage's first layer_head kernel.
    c = x_cm.shape[0]
    x4 = x_cm.reshape(c, n, h, w)
    p = 0.25 * (x4[:, :, 0::2, 0::2] + x4[:, :, 0::2, 1::2]
                + x4[:, :, 1::2, 0::2] + x4[:, :, 1::2, 1::2])
    return p.reshape(c, n * (h // 2) * (w // 2)).astype(jnp.bfloat16)


# ------------------------- parameter prep (fold everything once) -------------------------

def init_params(key, args):
    stages, growth = args['stages'], args['growth']
    g1, g3, bottleneck = args['group_1x1'], args['group_3x3'], args['bottleneck']
    eps = 1e-5
    bn_scale = 1.0 / math.sqrt(1.0 + eps)   # gamma=1, var=1, mean=0, beta=0 (eval stats)

    keys = iter(jax.random.split(key, 256))

    def conv_w(k, cout, cin_g, ksz):
        nfan = ksz * ksz * cout
        return np.asarray(jax.random.normal(k, (cout, cin_g, ksz, ksz), jnp.float32)) \
            * math.sqrt(2.0 / nfan)

    params = {}
    num_features = 2 * growth[0]
    w_init = conv_w(next(keys), num_features, 3, 3)                    # (C0, 3, 3, 3)
    w9i = w_init.transpose(2, 3, 0, 1).reshape(9, num_features, 3)     # tap-major
    params['init_wflat'] = jnp.asarray(
        np.transpose(w9i, (1, 0, 2)).reshape(num_features, 27), jnp.bfloat16)

    blocks = []
    for i in range(len(stages)):
        layers = []
        for l in range(stages[i]):
            c = num_features + l * growth[i]
            bout = bottleneck * growth[i]
            # deterministic CondenseConv index buffer (length = in_channels)
            index = (np.arange(c) * 3 + 1) % c
            bn1_s = np.full((c,), bn_scale, np.float32)
            bn1_b = np.zeros((c,), np.float32)
            bn2_s = np.full((bout,), bn_scale, np.float32)
            bn2_b = np.zeros((bout,), np.float32)
            w1 = conv_w(next(keys), bout, c // g1, 1)                  # (bout, c/g1, 1, 1)
            w2 = conv_w(next(keys), growth[i], bout // g3, 3)          # (gr, bout/g3, 3, 3)

            # A1: index_select gather + BN1 scale (c rows, c valid columns only).
            a1 = np.zeros((c, c), np.float32)
            a1[np.arange(c), index] = bn1_s
            # A2t: block-diagonal 1x1 grouped conv with channel shuffle + BN2 scale folded.
            og1, cg1 = bout // g1, c // g1
            a2t = np.zeros((bout, c), np.float32)
            for m_ in range(bout):
                o = (m_ % g1) * og1 + (m_ // g1)       # pre-shuffle conv output channel
                g = o // og1
                a2t[m_, g * cg1:(g + 1) * cg1] = w1[o, :, 0, 0]
            a2t *= bn2_s[:, None]
            # Fold A1 into A2 (ReLU commutes through A1 because BN1 bias/mean are
            # zero and BN1 scales are nonnegative in this converted eval model).
            assert np.all(bn1_b == 0.0) and np.all(bn1_s >= 0.0)
            a2f = a2t @ a1                                             # (bout, c)

            # 3x3 grouped conv packed block-diagonal, tap-major, flattened K=9*bout.
            og3, ig3 = growth[i] // g3, bout // g3
            w9 = np.zeros((9, growth[i], bout), np.float32)
            for co in range(growth[i]):
                g = co // og3
                w9[:, co, g * ig3:(g + 1) * ig3] = w2[co].transpose(1, 2, 0).reshape(9, ig3)
            wflat = np.transpose(w9, (1, 0, 2)).reshape(growth[i], 9 * bout)

            layers.append({
                'a2': jnp.asarray(a2f, jnp.bfloat16),
                'b2': jnp.asarray(bn2_b.reshape(bout, 1), jnp.float32),
                'wconv': jnp.asarray(wflat, jnp.bfloat16),
            })
        num_features += stages[i] * growth[i]
        blocks.append(layers)
    params['blocks'] = blocks

    params['bn_last_s'] = jnp.full((num_features, 1, 1), bn_scale, jnp.float32)
    params['bn_last_b'] = jnp.zeros((num_features, 1, 1), jnp.float32)

    # CondenseLinear (drop_rate=0.5): fold the feature index_select into the weight.
    in_sel = int(num_features * 0.5)
    cls_index = (np.arange(in_sel) * 5 + 2) % num_features
    cls_w = np.asarray(jax.random.normal(next(keys), (in_sel, args['num_classes']),
                                         jnp.float32)) / math.sqrt(in_sel)
    wc = np.zeros((args['num_classes'], num_features), np.float32)
    for k_ in range(in_sel):
        wc[:, cls_index[k_]] += cls_w[k_]
    params['cls_wt'] = jnp.asarray(wc, jnp.bfloat16)
    params['cls_b'] = jnp.zeros((args['num_classes'], 1), jnp.float32)
    return params, num_features


# ------------------------- forward pass -------------------------

def condensenet_forward(params, x_nchw, args):
    # NOTE: all channel counts / spatial sizes are derived from the *static*
    # `args` (bound via functools.partial), never from traced params -> no
    # tracer-shaped allocations under jit.
    stages, growth = args['stages'], args['growth']
    assert args['data'] in ('cifar10', 'cifar100')
    # TODO(synk): ImageNet variant (stride-2 init conv, 7x7 final pool) not implemented.
    pool_size = 8

    n, cin, h, w = x_nchw.shape
    x_cm = jnp.transpose(x_nchw, (1, 0, 2, 3)).reshape(cin, n * h * w).astype(jnp.bfloat16)
    feat = conv3x3(x_cm, params['init_wflat'], n, h, w)          # (2*growth0, M) bf16

    num_features = 2 * growth[0]
    num_stages = len(stages)
    for i in range(num_stages):
        c_end = num_features + stages[i] * growth[i]             # static Python int
        m = n * h * w
        # Preallocated per-stage bf16 feature buffer; each layer writes its
        # `growth` rows in place (static indices -> fused in-place under jit).
        # TODO(synk): could alias buf into the conv3x3 pallas_call outputs via
        #             input_output_aliases to drop the .at[].set entirely.
        buf = jnp.zeros((c_end, m), jnp.bfloat16)
        buf = buf.at[:num_features].set(feat)
        c_off = num_features
        for l in range(stages[i]):
            layer = params['blocks'][i][l]
            c = num_features + l * growth[i]                     # valid channels so far
            u = layer_head(buf[:c], layer['a2'], layer['b2'])    # (bout, M) bf16
            y = conv3x3(u, layer['wconv'], n, h, w)              # (growth, M) bf16
            buf = buf.at[c_off:c_off + growth[i]].set(y)
            c_off += growth[i]
        num_features = c_end

        if i < num_stages - 1:
            feat = avg_pool2x2_cm(buf, n, h, w)
            h //= 2
            w //= 2
        else:
            assert h == pool_size and w == pool_size
            x3 = buf.reshape(num_features, n, h * w)             # free channel-major view
            logits_t = final_head(x3, params['bn_last_s'], params['bn_last_b'],
                                  params['cls_wt'], params['cls_b'])
            return logits_t.T                                    # (N, num_classes)


# ------------------------- main -------------------------

if __name__ == "__main__":
    args = dict(stages=[2, 2, 2], growth=[4, 4, 4], bottleneck=4,
                group_1x1=2, group_3x3=4, num_classes=10, data='cifar10')

    key = jax.random.PRNGKey(0)
    pkey, xkey = jax.random.split(key)
    params, final_features = init_params(pkey, args)

    # Small CIFAR-like input (NCHW, as the PyTorch module expects).
    x = jax.random.normal(xkey, (2, 3, 32, 32), jnp.float32)

    fwd = jax.jit(partial(condensenet_forward, args=args))
    out = jax.block_until_ready(fwd(params, x))

    assert out.shape == (2, args['num_classes']), out.shape
    assert bool(jnp.all(jnp.isfinite(out)))
    print("KERNEL_OK")
</pallas_src>

<mosaic_0001>
module attributes {stable_mosaic.version = 11 : i64} {
  func.func @_conv_matmul_kernel(%arg0: i32, %arg1: memref<27x1024xbf16, #tpu.memory_space<vmem>>, %arg2: memref<8x27xbf16, #tpu.memory_space<vmem>>, %arg3: memref<8x1024xbf16, #tpu.memory_space<vmem>>) attributes {dimension_semantics = [#tpu.dimension_semantics<parallel>], iteration_bounds = array<i64: 2>, scalar_prefetch = 0 : i64, scratch_operands = 0 : i64, tpu.core_type = #tpu.core_type<tc>, window_params = [{transform_indices = @transform_0, window_bounds = array<i64: 27, 1024>}, {pipeline_mode = #tpu.pipeline_mode<synchronous>, transform_indices = @transform_1, window_bounds = array<i64: 8, 27>}, {transform_indices = @transform_2, window_bounds = array<i64: 8, 1024>}]} {
    %c0 = arith.constant 0 : index
    %c0_0 = arith.constant 0 : index
    %0 = vector.load %arg2[%c0, %c0_0] : memref<8x27xbf16, #tpu.memory_space<vmem>>, vector<8x27xbf16>
    %c0_1 = arith.constant 0 : index
    %c0_2 = arith.constant 0 : index
    %1 = vector.load %arg1[%c0_1, %c0_2] : memref<27x1024xbf16, #tpu.memory_space<vmem>>, vector<27x1024xbf16>
    %cst = arith.constant dense<0.000000e+00> : vector<8x1024xf32>
    %2 = tpu.matmul %0, %1, %cst {dimension_numbers = #tpu.dot_dimension_numbers<[1], [0], [0], [1], [0, 0, 1, 1], [], []>} : vector<8x27xbf16>, vector<27x1024xbf16>, vector<8x1024xf32> -> vector<8x1024xf32>
    %3 = arith.truncf %2 : vector<8x1024xf32> to vector<8x1024xbf16>
    %c0_3 = arith.constant 0 : index
    %c0_4 = arith.constant 0 : index
    %4 = vector.load %arg3[%c0_3, %c0_4] : memref<8x1024xbf16, #tpu.memory_space<vmem>>, vector<8x1024xbf16>
    tpu.vector_store %arg3[%c0_3, %c0_4], %3 {strides = array<i32>} : memref<8x1024xbf16, #tpu.memory_space<vmem>>, vector<8x1024xbf16>,
    return
  }
  func.func @transform_0(%arg0: i32) -> (i32, i32) {
    %c0_i32 = arith.constant 0 : i32
    %c0_i32_0 = arith.constant 0 : i32
    return %c0_i32, %arg0 : i32, i32
  }
  func.func @transform_1(%arg0: i32) -> (i32, i32) {
    %c0_i32 = arith.constant 0 : i32
    %c0_i32_0 = arith.constant 0 : i32
    %c0_i32_1 = arith.constant 0 : i32
    return %c0_i32, %c0_i32_0 : i32, i32
  }
  func.func @transform_2(%arg0: i32) -> (i32, i32) {
    %c0_i32 = arith.constant 0 : i32
    %c0_i32_0 = arith.constant 0 : i32
    return %c0_i32, %arg0 : i32, i32
  }
}

module attributes {stable_mosaic.version = 11 : i64} {
  func.func @_layer_head_kernel(%arg0: i32, %arg1: memref<8x1024xbf16, #tpu.memory_space<vmem>>, %arg2: memref<16x8xbf16, #tpu.memory_space<vmem>>, %arg3: memref<16x1xf32, #tpu.memory_space<vmem>>, %arg4: memref<16x1024xbf16, #tpu.memory_space<vmem>>) attributes {dimension_semantics = [#tpu.dimension_semantics<parallel>], iteration_bounds = array<i64: 2>, scalar_prefetch = 0 : i64, scratch_operands = 0 : i64, tpu.core_type = #tpu.core_type<tc>, window_params = [{transform_indices = @transform_0, window_bounds = array<i64: 8, 1024>}, {pipeline_mode = #tpu.pipeline_mode<synchronous>, transform_indices = @transform_1, window_bounds = array<i64: 16, 8>}, {pipeline_mode = #tpu.pipeline_mode<synchronous>, transform_indices = @transform_2, window_bounds = array<i64: 16, 1>}, {transform_indices = @transform_3, window_bounds = array<i64: 16, 1024>}]} {
    %c0 = arith.constant 0 : index
    %c0_0 = arith.constant 0 : index
    %0 = vector.load %arg1[%c0, %c0_0] : memref<8x1024xbf16, #tpu.memory_space<vmem>>, vector<8x1024xbf16>
    %cst = arith.constant 0.000000e+00 : bf16
    %1 = vector.broadcast %cst : bf16 to vector<8x1024xbf16>
    %2 = arith.maximumf %0, %1 : vector<8x1024xbf16>
    %c0_1 = arith.constant 0 : index
    %c0_2 = arith.constant 0 : index
    %3 = vector.load %arg2[%c0_1, %c0_2] : memref<16x8xbf16, #tpu.memory_space<vmem>>, vector<16x8xbf16>
    %cst_3 = arith.constant dense<0.000000e+00> : vector<16x1024xf32>
    %4 = tpu.matmul %3, %2, %cst_3 {dimension_numbers = #tpu.dot_dimension_numbers<[1], [0], [0], [1], [0, 0, 1, 1], [], []>} : vector<16x8xbf16>, vector<8x1024xbf16>, vector<16x1024xf32> -> vector<16x1024xf32>
    %c0_4 = arith.constant 0 : index
    %c0_5 = arith.constant 0 : index
    %5 = vector.load %arg3[%c0_4, %c0_5] : memref<16x1xf32, #tpu.memory_space<vmem>>, vector<16x1xf32>
    %6 = vector.broadcast %5 : vector<16x1xf32> to vector<16x1024xf32>
    %7 = arith.addf %4, %6 : vector<16x1024xf32>
    %cst_6 = arith.constant 0.000000e+00 : f32
    %8 = vector.broadcast %cst_6 : f32 to vector<16x1024xf32>
    %9 = arith.maximumf %7, %8 : vector<16x1024xf32>
    %10 = arith.truncf %9 : vector<16x1024xf32> to vector<16x1024xbf16>
    %c0_7 = arith.constant 0 : index
    %c0_8 = arith.constant 0 : index
    %11 = vector.load %arg4[%c0_7, %c0_8] : memref<16x1024xbf16, #tpu.memory_space<vmem>>, vector<16x1024xbf16>
    tpu.vector_store %arg4[%c0_7, %c0_8], %10 {strides = array<i32>} : memref<16x1024xbf16, #tpu.memory_space<vmem>>, vector<16x1024xbf16>,
    return
  }
  func.func @transform_0(%arg0: i32) -> (i32, i32) {
    %c0_i32 = arith.constant 0 : i32
    %c0_i32_0 = arith.constant 0 : i32
    return %c0_i32, %arg0 : i32, i32
  }
  func.func @transform_1(%arg0: i32) -> (i32, i32) {
    %c0_i32 = arith.constant 0 : i32
    %c0_i32_0 = arith.constant 0 : i32
    %c0_i32_1 = arith.constant 0 : i32
    return %c0_i32, %c0_i32_0 : i32, i32
  }
  func.func @transform_2(%arg0: i32) -> (i32, i32) {
    %c0_i32 = arith.constant 0 : i32
    %c0_i32_0 = arith.constant 0 : i32
    %c0_i32_1 = arith.constant 0 : i32
    return %c0_i32, %c0_i32_0 : i32, i32
  }
  func.func @transform_3(%arg0: i32) -> (i32, i32) {
    %c0_i32 = arith.constant 0 : i32
    %c0_i32_0 = arith.constant 0 : i32
    return %c0_i32, %arg0 : i32, i32
  }
}

module attributes {stable_mosaic.version = 11 : i64} {
  func.func @_conv_matmul_kernel(%arg0: i32, %arg1: memref<144x1024xbf16, #tpu.memory_space<vmem>>, %arg2: memref<4x144xbf16, #tpu.memory_space<vmem>>, %arg3: memref<4x1024xbf16, #tpu.memory_space<vmem>>) attributes {dimension_semantics = [#tpu.dimension_semantics<parallel>], iteration_bounds = array<i64: 2>, scalar_prefetch = 0 : i64, scratch_operands = 0 : i64, tpu.core_type = #tpu.core_type<tc>, window_params = [{transform_indices = @transform_0, window_bounds = array<i64: 144, 1024>}, {pipeline_mode = #tpu.pipeline_mode<synchronous>, transform_indices = @transform_1, window_bounds = array<i64: 4, 144>}, {transform_indices = @transform_2, window_bounds = array<i64: 4, 1024>}]} {
    %c0 = arith.constant 0 : index
    %c0_0 = arith.constant 0 : index
    %0 = vector.load %arg2[%c0, %c0_0] : memref<4x144xbf16, #tpu.memory_space<vmem>>, vector<4x144xbf16>
    %c0_1 = arith.constant 0 : index
    %c0_2 = arith.constant 0 : index
    %1 = vector.load %arg1[%c0_1, %c0_2] : memref<144x1024xbf16, #tpu.memory_space<vmem>>, vector<144x1024xbf16>
    %cst = arith.constant dense<0.000000e+00> : vector<4x1024xf32>
    %2 = tpu.matmul %0, %1, %cst {dimension_numbers = #tpu.dot_dimension_numbers<[1], [0], [0], [1], [0, 0, 1, 1], [], []>} : vector<4x144xbf16>, vector<144x1024xbf16>, vector<4x1024xf32> -> vector<4x1024xf32>
    %3 = arith.truncf %2 : vector<4x1024xf32> to vector<4x1024xbf16>
    %c0_3 = arith.constant 0 : index
    %c0_4 = arith.constant 0 : index
    %4 = vector.load %arg3[%c0_3, %c0_4] : memref<4x1024xbf16, #tpu.memory_space<vmem>>, vector<4x1024xbf16>
    tpu.vector_store %arg3[%c0_3, %c0_4], %3 {strides = array<i32>} : memref<4x1024xbf16, #tpu.memory_space<vmem>>, vector<4x1024xbf16>,
    return
  }
  func.func @transform_0(%arg0: i32) -> (i32, i32) {
    %c0_i32 = arith.constant 0 : i32
    %c0_i32_0 = arith.constant 0 : i32
    return %c0_i32, %arg0 : i32, i32
  }
  func.func @transform_1(%arg0: i32) -> (i32, i32) {
    %c0_i32 = arith.constant 0 : i32
    %c0_i32_0 = arith.constant 0 : i32
    %c0_i32_1 = arith.constant 0 : i32
    return %c0_i32, %c0_i32_0 : i32, i32
  }
  func.func @transform_2(%arg0: i32) -> (i32, i32) {
    %c0_i32 = arith.constant 0 : i32
    %c0_i32_0 = arith.constant 0 : i32
    return %c0_i32, %arg0 : i32, i32
  }
}

module attributes {stable_mosaic.version = 11 : i64} {
  func.func @_layer_head_kernel(%arg0: i32, %arg1: memref<12x1024xbf16, #tpu.memory_space<vmem>>, %arg2: memref<16x12xbf16, #tpu.memory_space<vmem>>, %arg3: memref<16x1xf32, #tpu.memory_space<vmem>>, %arg4: memref<16x1024xbf16, #tpu.memory_space<vmem>>) attributes {dimension_semantics = [#tpu.dimension_semantics<parallel>], iteration_bounds = array<i64: 2>, scalar_prefetch = 0 : i64, scratch_operands = 0 : i64, tpu.core_type = #tpu.core_type<tc>, window_params = [{transform_indices = @transform_0, window_bounds = array<i64: 12, 1024>}, {pipeline_mode = #tpu.pipeline_mode<synchronous>, transform_indices = @transform_1, window_bounds = array<i64: 16, 12>}, {pipeline_mode = #tpu.pipeline_mode<synchronous>, transform_indices = @transform_2, window_bounds = array<i64: 16, 1>}, {transform_indices = @transform_3, window_bounds = array<i64: 16, 1024>}]} {
    %c0 = arith.constant 0 : index
    %c0_0 = arith.constant 0 : index
    %0 = vector.load %arg1[%c0, %c0_0] : memref<12x1024xbf16, #tpu.memory_space<vmem>>, vector<12x1024xbf16>
    %cst = arith.constant 0.000000e+00 : bf16
    %1 = vector.broadcast %cst : bf16 to vector<12x1024xbf16>
    %2 = arith.maximumf %0, %1 : vector<12x1024xbf16>
    %c0_1 = arith.constant 0 : index
    %c0_2 = arith.constant 0 : index
    %3 = vector.load %arg2[%c0_1, %c0_2] : memref<16x12xbf16, #tpu.memory_space<vmem>>, vector<16x12xbf16>
    %cst_3 = arith.constant dense<0.000000e+00> : vector<16x1024xf32>
    %4 = tpu.matmul %3, %2, %cst_3 {dimension_numbers = #tpu.dot_dimension_numbers<[1], [0], [0], [1], [0, 0, 1, 1], [], []>} : vector<16x12xbf16>, vector<12x1024xbf16>, vector<16x1024xf32> -> vector<16x1024xf32>
    %c0_4 = arith.constant 0 : index
    %c0_5 = arith.constant 0 : index
    %5 = vector.load %arg3[%c0_4, %c0_5] : memref<16x1xf32, #tpu.memory_space<vmem>>, vector<16x1xf32>
    %6 = vector.broadcast %5 : vector<16x1xf32> to vector<16x1024xf32>
    %7 = arith.addf %4, %6 : vector<16x1024xf32>
    %cst_6 = arith.constant 0.000000e+00 : f32
    %8 = vector.broadcast %cst_6 : f32 to vector<16x1024xf32>
    %9 = arith.maximumf %7, %8 : vector<16x1024xf32>
    %10 = arith.truncf %9 : vector<16x1024xf32> to vector<16x1024xbf16>
    %c0_7 = arith.constant 0 : index
    %c0_8 = arith.constant 0 : index
    %11 = vector.load %arg4[%c0_7, %c0_8] : memref<16x1024xbf16, #tpu.memory_space<vmem>>, vector<16x1024xbf16>
    tpu.vector_store %arg4[%c0_7, %c0_8], %10 {strides = array<i32>} : memref<16x1024xbf16, #tpu.memory_space<vmem>>, vector<16x1024xbf16>,
    return
  }
  func.func @transform_0(%arg0: i32) -> (i32, i32) {
    %c0_i32 = arith.constant 0 : i32
    %c0_i32_0 = arith.constant 0 : i32
    return %c0_i32, %arg0 : i32, i32
  }
  func.func @transform_1(%arg0: i32) -> (i32, i32) {
    %c0_i32 = arith.constant 0 : i32
    %c0_i32_0 = arith.constant 0 : i32
    %c0_i32_1 = arith.constant 0 : i32
    return %c0_i32, %c0_i32_0 : i32, i32
  }
  func.func @transform_2(%arg0: i32) -> (i32, i32) {
    %c0_i32 = arith.constant 0 : i32
    %c0_i32_0 = arith.constant 0 : i32
    %c0_i32_1 = arith.constant 0 : i32
    return %c0_i32, %c0_i32_0 : i32, i32
  }
  func.func @transform_3(%arg0: i32) -> (i32, i32) {
    %c0_i32 = arith.constant 0 : i32
    %c0_i32_0 = arith.constant 0 : i32
    return %c0_i32, %arg0 : i32, i32
  }
}

module attributes {stable_mosaic.version = 11 : i64} {
  func.func @_layer_head_kernel(%arg0: i32, %arg1: memref<16x512xbf16, #tpu.memory_space<vmem>>, %arg2: memref<16x16xbf16, #tpu.memory_space<vmem>>, %arg3: memref<16x1xf32, #tpu.memory_space<vmem>>, %arg4: memref<16x512xbf16, #tpu.memory_space<vmem>>) attributes {dimension_semantics = [#tpu.dimension_semantics<parallel>], iteration_bounds = array<i64: 1>, scalar_prefetch = 0 : i64, scratch_operands = 0 : i64, tpu.core_type = #tpu.core_type<tc>, window_params = [{transform_indices = @transform_0, window_bounds = array<i64: 16, 512>}, {pipeline_mode = #tpu.pipeline_mode<synchronous>, transform_indices = @transform_1, window_bounds = array<i64: 16, 16>}, {pipeline_mode = #tpu.pipeline_mode<synchronous>, transform_indices = @transform_2, window_bounds = array<i64: 16, 1>}, {transform_indices = @transform_3, window_bounds = array<i64: 16, 512>}]} {
    %c0 = arith.constant 0 : index
    %c0_0 = arith.constant 0 : index
    %0 = vector.load %arg1[%c0, %c0_0] : memref<16x512xbf16, #tpu.memory_space<vmem>>, vector<16x512xbf16>
    %cst = arith.constant 0.000000e+00 : bf16
    %1 = vector.broadcast %cst : bf16 to vector<16x512xbf16>
    %2 = arith.maximumf %0, %1 : vector<16x512xbf16>
    %c0_1 = arith.constant 0 : index
    %c0_2 = arith.constant 0 : index
    %3 = vector.load %arg2[%c0_1, %c0_2] : memref<16x16xbf16, #tpu.memory_space<vmem>>, vector<16x16xbf16>
    %cst_3 = arith.constant dense<0.000000e+00> : vector<16x512xf32>
    %4 = tpu.matmul %3, %2, %cst_3 {dimension_numbers = #tpu.dot_dimension_numbers<[1], [0], [0], [1], [0, 0, 1, 1], [], []>} : vector<16x16xbf16>, vector<16x512xbf16>, vector<16x512xf32> -> vector<16x512xf32>
    %c0_4 = arith.constant 0 : index
    %c0_5 = arith.constant 0 : index
    %5 = vector.load %arg3[%c0_4, %c0_5] : memref<16x1xf32, #tpu.memory_space<vmem>>, vector<16x1xf32>
    %6 = vector.broadcast %5 : vector<16x1xf32> to vector<16x512xf32>
    %7 = arith.addf %4, %6 : vector<16x512xf32>
    %cst_6 = arith.constant 0.000000e+00 : f32
    %8 = vector.broadcast %cst_6 : f32 to vector<16x512xf32>
    %9 = arith.maximumf %7, %8 : vector<16x512xf32>
    %10 = arith.truncf %9 : vector<16x512xf32> to vector<16x512xbf16>
    %c0_7 = arith.constant 0 : index
    %c0_8 = arith.constant 0 : index
    %11 = vector.load %arg4[%c0_7, %c0_8] : memref<16x512xbf16, #tpu.memory_space<vmem>>, vector<16x512xbf16>
    tpu.vector_store %arg4[%c0_7, %c0_8], %10 {strides = array<i32>} : memref<16x512xbf16, #tpu.memory_space<vmem>>, vector<16x512xbf16>,
    return
  }
  func.func @transform_0(%arg0: i32) -> (i32, i32) {
    %c0_i32 = arith.constant 0 : i32
    %c0_i32_0 = arith.constant 0 : i32
    return %c0_i32, %arg0 : i32, i32
  }
  func.func @transform_1(%arg0: i32) -> (i32, i32) {
    %c0_i32 = arith.constant 0 : i32
    %c0_i32_0 = arith.constant 0 : i32
    %c0_i32_1 = arith.constant 0 : i32
    return %c0_i32, %c0_i32_0 : i32, i32
  }
  func.func @transform_2(%arg0: i32) -> (i32, i32) {
    %c0_i32 = arith.constant 0 : i32
    %c0_i32_0 = arith.constant 0 : i32
    %c0_i32_1 = arith.constant 0 : i32
    return %c0_i32, %c0_i32_0 : i32, i32
  }
  func.func @transform_3(%arg0: i32) -> (i32, i32) {
    %c0_i32 = arith.constant 0 : i32
    %c0_i32_0 = arith.constant 0 : i32
    return %c0_i32, %arg0 : i32, i32
  }
}

module attributes {stable_mosaic.version = 11 : i64} {
  func.func @_conv_matmul_kernel(%arg0: i32, %arg1: memref<144x512xbf16, #tpu.memory_space<vmem>>, %arg2: memref<4x144xbf16, #tpu.memory_space<vmem>>, %arg3: memref<4x512xbf16, #tpu.memory_space<vmem>>) attributes {dimension_semantics = [#tpu.dimension_semantics<parallel>], iteration_bounds = array<i64: 1>, scalar_prefetch = 0 : i64, scratch_operands = 0 : i64, tpu.core_type = #tpu.core_type<tc>, window_params = [{transform_indices = @transform_0, window_bounds = array<i64: 144, 512>}, {pipeline_mode = #tpu.pipeline_mode<synchronous>, transform_indices = @transform_1, window_bounds = array<i64: 4, 144>}, {transform_indices = @transform_2, window_bounds = array<i64: 4, 512>}]} {
    %c0 = arith.constant 0 : index
    %c0_0 = arith.constant 0 : index
    %0 = vector.load %arg2[%c0, %c0_0] : memref<4x144xbf16, #tpu.memory_space<vmem>>, vector<4x144xbf16>
    %c0_1 = arith.constant 0 : index
    %c0_2 = arith.constant 0 : index
    %1 = vector.load %arg1[%c0_1, %c0_2] : memref<144x512xbf16, #tpu.memory_space<vmem>>, vector<144x512xbf16>
    %cst = arith.constant dense<0.000000e+00> : vector<4x512xf32>
    %2 = tpu.matmul %0, %1, %cst {dimension_numbers = #tpu.dot_dimension_numbers<[1], [0], [0], [1], [0, 0, 1, 1], [], []>} : vector<4x144xbf16>, vector<144x512xbf16>, vector<4x512xf32> -> vector<4x512xf32>
    %3 = arith.truncf %2 : vector<4x512xf32> to vector<4x512xbf16>
    %c0_3 = arith.constant 0 : index
    %c0_4 = arith.constant 0 : index
    %4 = vector.load %arg3[%c0_3, %c0_4] : memref<4x512xbf16, #tpu.memory_space<vmem>>, vector<4x512xbf16>
    tpu.vector_store %arg3[%c0_3, %c0_4], %3 {strides = array<i32>} : memref<4x512xbf16, #tpu.memory_space<vmem>>, vector<4x512xbf16>,
    return
  }
  func.func @transform_0(%arg0: i32) -> (i32, i32) {
    %c0_i32 = arith.constant 0 : i32
    %c0_i32_0 = arith.constant 0 : i32
    return %c0_i32, %arg0 : i32, i32
  }
  func.func @transform_1(%arg0: i32) -> (i32, i32) {
    %c0_i32 = arith.constant 0 : i32
    %c0_i32_0 = arith.constant 0 : i32
    %c0_i32_1 = arith.constant 0 : i32
    return %c0_i32, %c0_i32_0 : i32, i32
  }
  func.func @transform_2(%arg0: i32) -> (i32, i32) {
    %c0_i32 = arith.constant 0 : i32
    %c0_i32_0 = arith.constant 0 : i32
    return %c0_i32, %arg0 : i32, i32
  }
}

module attributes {stable_mosaic.version = 11 : i64} {
  func.func @_layer_head_kernel(%arg0: i32, %arg1: memref<20x512xbf16, #tpu.memory_space<vmem>>, %arg2: memref<16x20xbf16, #tpu.memory_space<vmem>>, %arg3: memref<16x1xf32, #tpu.memory_space<vmem>>, %arg4: memref<16x512xbf16, #tpu.memory_space<vmem>>) attributes {dimension_semantics = [#tpu.dimension_semantics<parallel>], iteration_bounds = array<i64: 1>, scalar_prefetch = 0 : i64, scratch_operands = 0 : i64, tpu.core_type = #tpu.core_type<tc>, window_params = [{transform_indices = @transform_0, window_bounds = array<i64: 20, 512>}, {pipeline_mode = #tpu.pipeline_mode<synchronous>, transform_indices = @transform_1, window_bounds = array<i64: 16, 20>}, {pipeline_mode = #tpu.pipeline_mode<synchronous>, transform_indices = @transform_2, window_bounds = array<i64: 16, 1>}, {transform_indices = @transform_3, window_bounds = array<i64: 16, 512>}]} {
    %c0 = arith.constant 0 : index
    %c0_0 = arith.constant 0 : index
    %0 = vector.load %arg1[%c0, %c0_0] : memref<20x512xbf16, #tpu.memory_space<vmem>>, vector<20x512xbf16>
    %cst = arith.constant 0.000000e+00 : bf16
    %1 = vector.broadcast %cst : bf16 to vector<20x512xbf16>
    %2 = arith.maximumf %0, %1 : vector<20x512xbf16>
    %c0_1 = arith.constant 0 : index
    %c0_2 = arith.constant 0 : index
    %3 = vector.load %arg2[%c0_1, %c0_2] : memref<16x20xbf16, #tpu.memory_space<vmem>>, vector<16x20xbf16>
    %cst_3 = arith.constant dense<0.000000e+00> : vector<16x512xf32>
    %4 = tpu.matmul %3, %2, %cst_3 {dimension_numbers = #tpu.dot_dimension_numbers<[1], [0], [0], [1], [0, 0, 1, 1], [], []>} : vector<16x20xbf16>, vector<20x512xbf16>, vector<16x512xf32> -> vector<16x512xf32>
    %c0_4 = arith.constant 0 : index
    %c0_5 = arith.constant 0 : index
    %5 = vector.load %arg3[%c0_4, %c0_5] : memref<16x1xf32, #tpu.memory_space<vmem>>, vector<16x1xf32>
    %6 = vector.broadcast %5 : vector<16x1xf32> to vector<16x512xf32>
    %7 = arith.addf %4, %6 : vector<16x512xf32>
    %cst_6 = arith.constant 0.000000e+00 : f32
    %8 = vector.broadcast %cst_6 : f32 to vector<16x512xf32>
    %9 = arith.maximumf %7, %8 : vector<16x512xf32>
    %10 = arith.truncf %9 : vector<16x512xf32> to vector<16x512xbf16>
    %c0_7 = arith.constant 0 : index
    %c0_8 = arith.constant 0 : index
    %11 = vector.load %arg4[%c0_7, %c0_8] : memref<16x512xbf16, #tpu.memory_space<vmem>>, vector<16x512xbf16>
    tpu.vector_store %arg4[%c0_7, %c0_8], %10 {strides = array<i32>} : memref<16x512xbf16, #tpu.memory_space<vmem>>, vector<16x512xbf16>,
    return
  }
  func.func @transform_0(%arg0: i32) -> (i32, i32) {
    %c0_i32 = arith.constant 0 : i32
    %c0_i32_0 = arith.constant 0 : i32
    return %c0_i32, %arg0 : i32, i32
  }
  func.func @transform_1(%arg0: i32) -> (i32, i32) {
    %c0_i32 = arith.constant 0 : i32
    %c0_i32_0 = arith.constant 0 : i32
    %c0_i32_1 = arith.constant 0 : i32
    return %c0_i32, %c0_i32_0 : i32, i32
  }
  func.func @transform_2(%arg0: i32) -> (i32, i32) {
    %c0_i32 = arith.constant 0 : i32
    %c0_i32_0 = arith.constant 0 : i32
    %c0_i32_1 = arith.constant 0 : i32
    return %c0_i32, %c0_i32_0 : i32, i32
  }
  func.func @transform_3(%arg0: i32) -> (i32, i32) {
    %c0_i32 = arith.constant 0 : i32
    %c0_i32_0 = arith.constant 0 : i32
    return %c0_i32, %arg0 : i32, i32
  }
}

module attributes {stable_mosaic.version = 11 : i64} {
  func.func @_layer_head_kernel(%arg0: i32, %arg1: memref<24x128xbf16, #tpu.memory_space<vmem>>, %arg2: memref<16x24xbf16, #tpu.memory_space<vmem>>, %arg3: memref<16x1xf32, #tpu.memory_space<vmem>>, %arg4: memref<16x128xbf16, #tpu.memory_space<vmem>>) attributes {dimension_semantics = [#tpu.dimension_semantics<parallel>], iteration_bounds = array<i64: 1>, scalar_prefetch = 0 : i64, scratch_operands = 0 : i64, tpu.core_type = #tpu.core_type<tc>, window_params = [{transform_indices = @transform_0, window_bounds = array<i64: 24, 128>}, {pipeline_mode = #tpu.pipeline_mode<synchronous>, transform_indices = @transform_1, window_bounds = array<i64: 16, 24>}, {pipeline_mode = #tpu.pipeline_mode<synchronous>, transform_indices = @transform_2, window_bounds = array<i64: 16, 1>}, {transform_indices = @transform_3, window_bounds = array<i64: 16, 128>}]} {
    %c0 = arith.constant 0 : index
    %c0_0 = arith.constant 0 : index
    %0 = vector.load %arg1[%c0, %c0_0] : memref<24x128xbf16, #tpu.memory_space<vmem>>, vector<24x128xbf16>
    %cst = arith.constant 0.000000e+00 : bf16
    %1 = vector.broadcast %cst : bf16 to vector<24x128xbf16>
    %2 = arith.maximumf %0, %1 : vector<24x128xbf16>
    %c0_1 = arith.constant 0 : index
    %c0_2 = arith.constant 0 : index
    %3 = vector.load %arg2[%c0_1, %c0_2] : memref<16x24xbf16, #tpu.memory_space<vmem>>, vector<16x24xbf16>
    %cst_3 = arith.constant dense<0.000000e+00> : vector<16x128xf32>
    %4 = tpu.matmul %3, %2, %cst_3 {dimension_numbers = #tpu.dot_dimension_numbers<[1], [0], [0], [1], [0, 0, 1, 1], [], []>} : vector<16x24xbf16>, vector<24x128xbf16>, vector<16x128xf32> -> vector<16x128xf32>
    %c0_4 = arith.constant 0 : index
    %c0_5 = arith.constant 0 : index
    %5 = vector.load %arg3[%c0_4, %c0_5] : memref<16x1xf32, #tpu.memory_space<vmem>>, vector<16x1xf32>
    %6 = vector.broadcast %5 : vector<16x1xf32> to vector<16x128xf32>
    %7 = arith.addf %4, %6 : vector<16x128xf32>
    %cst_6 = arith.constant 0.000000e+00 : f32
    %8 = vector.broadcast %cst_6 : f32 to vector<16x128xf32>
    %9 = arith.maximumf %7, %8 : vector<16x128xf32>
    %10 = arith.truncf %9 : vector<16x128xf32> to vector<16x128xbf16>
    %c0_7 = arith.constant 0 : index
    %c0_8 = arith.constant 0 : index
    %11 = vector.load %arg4[%c0_7, %c0_8] : memref<16x128xbf16, #tpu.memory_space<vmem>>, vector<16x128xbf16>
    tpu.vector_store %arg4[%c0_7, %c0_8], %10 {strides = array<i32>} : memref<16x128xbf16, #tpu.memory_space<vmem>>, vector<16x128xbf16>,
    return
  }
  func.func @transform_0(%arg0: i32) -> (i32, i32) {
    %c0_i32 = arith.constant 0 : i32
    %c0_i32_0 = arith.constant 0 : i32
    return %c0_i32, %arg0 : i32, i32
  }
  func.func @transform_1(%arg0: i32) -> (i32, i32) {
    %c0_i32 = arith.constant 0 : i32
    %c0_i32_0 = arith.constant 0 : i32
    %c0_i32_1 = arith.constant 0 : i32
    return %c0_i32, %c0_i32_0 : i32, i32
  }
  func.func @transform_2(%arg0: i32) -> (i32, i32) {
    %c0_i32 = arith.constant 0 : i32
    %c0_i32_0 = arith.constant 0 : i32
    %c0_i32_1 = arith.constant 0 : i32
    return %c0_i32, %c0_i32_0 : i32, i32
  }
  func.func @transform_3(%arg0: i32) -> (i32, i32) {
    %c0_i32 = arith.constant 0 : i32
    %c0_i32_0 = arith.constant 0 : i32
    return %c0_i32, %arg0 : i32, i32
  }
}

module attributes {stable_mosaic.version = 11 : i64} {
  func.func @_conv_matmul_kernel(%arg0: i32, %arg1: memref<144x128xbf16, #tpu.memory_space<vmem>>, %arg2: memref<4x144xbf16, #tpu.memory_space<vmem>>, %arg3: memref<4x128xbf16, #tpu.memory_space<vmem>>) attributes {dimension_semantics = [#tpu.dimension_semantics<parallel>], iteration_bounds = array<i64: 1>, scalar_prefetch = 0 : i64, scratch_operands = 0 : i64, tpu.core_type = #tpu.core_type<tc>, window_params = [{transform_indices = @transform_0, window_bounds = array<i64: 144, 128>}, {pipeline_mode = #tpu.pipeline_mode<synchronous>, transform_indices = @transform_1, window_bounds = array<i64: 4, 144>}, {transform_indices = @transform_2, window_bounds = array<i64: 4, 128>}]} {
    %c0 = arith.constant 0 : index
    %c0_0 = arith.constant 0 : index
    %0 = vector.load %arg2[%c0, %c0_0] : memref<4x144xbf16, #tpu.memory_space<vmem>>, vector<4x144xbf16>
    %c0_1 = arith.constant 0 : index
    %c0_2 = arith.constant 0 : index
    %1 = vector.load %arg1[%c0_1, %c0_2] : memref<144x128xbf16, #tpu.memory_space<vmem>>, vector<144x128xbf16>
    %cst = arith.constant dense<0.000000e+00> : vector<4x128xf32>
    %2 = tpu.matmul %0, %1, %cst {dimension_numbers = #tpu.dot_dimension_numbers<[1], [0], [0], [1], [0, 0, 1, 1], [], []>} : vector<4x144xbf16>, vector<144x128xbf16>, vector<4x128xf32> -> vector<4x128xf32>
    %3 = arith.truncf %2 : vector<4x128xf32> to vector<4x128xbf16>
    %c0_3 = arith.constant 0 : index
    %c0_4 = arith.constant 0 : index
    %4 = vector.load %arg3[%c0_3, %c0_4] : memref<4x128xbf16, #tpu.memory_space<vmem>>, vector<4x128xbf16>
    tpu.vector_store %arg3[%c0_3, %c0_4], %3 {strides = array<i32>} : memref<4x128xbf16, #tpu.memory_space<vmem>>, vector<4x128xbf16>,
    return
  }
  func.func @transform_0(%arg0: i32) -> (i32, i32) {
    %c0_i32 = arith.constant 0 : i32
    %c0_i32_0 = arith.constant 0 : i32
    return %c0_i32, %arg0 : i32, i32
  }
  func.func @transform_1(%arg0: i32) -> (i32, i32) {
    %c0_i32 = arith.constant 0 : i32
    %c0_i32_0 = arith.constant 0 : i32
    %c0_i32_1 = arith.constant 0 : i32
    return %c0_i32, %c0_i32_0 : i32, i32
  }
  func.func @transform_2(%arg0: i32) -> (i32, i32) {
    %c0_i32 = arith.constant 0 : i32
    %c0_i32_0 = arith.constant 0 : i32
    return %c0_i32, %arg0 : i32, i32
  }
}

module attributes {stable_mosaic.version = 11 : i64} {
  func.func @_layer_head_kernel(%arg0: i32, %arg1: memref<28x128xbf16, #tpu.memory_space<vmem>>, %arg2: memref<16x28xbf16, #tpu.memory_space<vmem>>, %arg3: memref<16x1xf32, #tpu.memory_space<vmem>>, %arg4: memref<16x128xbf16, #tpu.memory_space<vmem>>) attributes {dimension_semantics = [#tpu.dimension_semantics<parallel>], iteration_bounds = array<i64: 1>, scalar_prefetch = 0 : i64, scratch_operands = 0 : i64, tpu.core_type = #tpu.core_type<tc>, window_params = [{transform_indices = @transform_0, window_bounds = array<i64: 28, 128>}, {pipeline_mode = #tpu.pipeline_mode<synchronous>, transform_indices = @transform_1, window_bounds = array<i64: 16, 28>}, {pipeline_mode = #tpu.pipeline_mode<synchronous>, transform_indices = @transform_2, window_bounds = array<i64: 16, 1>}, {transform_indices = @transform_3, window_bounds = array<i64: 16, 128>}]} {
    %c0 = arith.constant 0 : index
    %c0_0 = arith.constant 0 : index
    %0 = vector.load %arg1[%c0, %c0_0] : memref<28x128xbf16, #tpu.memory_space<vmem>>, vector<28x128xbf16>
    %cst = arith.constant 0.000000e+00 : bf16
    %1 = vector.broadcast %cst : bf16 to vector<28x128xbf16>
    %2 = arith.maximumf %0, %1 : vector<28x128xbf16>
    %c0_1 = arith.constant 0 : index
    %c0_2 = arith.constant 0 : index
    %3 = vector.load %arg2[%c0_1, %c0_2] : memref<16x28xbf16, #tpu.memory_space<vmem>>, vector<16x28xbf16>
    %cst_3 = arith.constant dense<0.000000e+00> : vector<16x128xf32>
    %4 = tpu.matmul %3, %2, %cst_3 {dimension_numbers = #tpu.dot_dimension_numbers<[1], [0], [0], [1], [0, 0, 1, 1], [], []>} : vector<16x28xbf16>, vector<28x128xbf16>, vector<16x128xf32> -> vector<16x128xf32>
    %c0_4 = arith.constant 0 : index
    %c0_5 = arith.constant 0 : index
    %5 = vector.load %arg3[%c0_4, %c0_5] : memref<16x1xf32, #tpu.memory_space<vmem>>, vector<16x1xf32>
    %6 = vector.broadcast %5 : vector<16x1xf32> to vector<16x128xf32>
    %7 = arith.addf %4, %6 : vector<16x128xf32>
    %cst_6 = arith.constant 0.000000e+00 : f32
    %8 = vector.broadcast %cst_6 : f32 to vector<16x128xf32>
    %9 = arith.maximumf %7, %8 : vector<16x128xf32>
    %10 = arith.truncf %9 : vector<16x128xf32> to vector<16x128xbf16>
    %c0_7 = arith.constant 0 : index
    %c0_8 = arith.constant 0 : index
    %11 = vector.load %arg4[%c0_7, %c0_8] : memref<16x128xbf16, #tpu.memory_space<vmem>>, vector<16x128xbf16>
    tpu.vector_store %arg4[%c0_7, %c0_8], %10 {strides = array<i32>} : memref<16x128xbf16, #tpu.memory_space<vmem>>, vector<16x128xbf16>,
    return
  }
  func.func @transform_0(%arg0: i32) -> (i32, i32) {
    %c0_i32 = arith.constant 0 : i32
    %c0_i32_0 = arith.constant 0 : i32
    return %c0_i32, %arg0 : i32, i32
  }
  func.func @transform_1(%arg0: i32) -> (i32, i32) {
    %c0_i32 = arith.constant 0 : i32
    %c0_i32_0 = arith.constant 0 : i32
    %c0_i32_1 = arith.constant 0 : i32
    return %c0_i32, %c0_i32_0 : i32, i32
  }
  func.func @transform_2(%arg0: i32) -> (i32, i32) {
    %c0_i32 = arith.constant 0 : i32
    %c0_i32_0 = arith.constant 0 : i32
    %c0_i32_1 = arith.constant 0 : i32
    return %c0_i32, %c0_i32_0 : i32, i32
  }
  func.func @transform_3(%arg0: i32) -> (i32, i32) {
    %c0_i32 = arith.constant 0 : i32
    %c0_i32_0 = arith.constant 0 : i32
    return %c0_i32, %arg0 : i32, i32
  }
}

module attributes {stable_mosaic.version = 11 : i64} {
  func.func @_final_head_kernel(%arg0: memref<32x2x64xbf16, #tpu.memory_space<vmem>>, %arg1: memref<32x1x1xf32, #tpu.memory_space<vmem>>, %arg2: memref<32x1x1xf32, #tpu.memory_space<vmem>>, %arg3: memref<10x32xbf16, #tpu.memory_space<vmem>>, %arg4: memref<10x1xf32, #tpu.memory_space<vmem>>, %arg5: memref<10x2xf32, #tpu.memory_space<vmem>>) attributes {dimension_semantics = [], scalar_prefetch = 0 : i64, scratch_operands = 0 : i64, tpu.core_type = #tpu.core_type<tc>} {
    %c0 = arith.constant 0 : index
    %c0_0 = arith.constant 0 : index
    %c0_1 = arith.constant 0 : index
    %0 = vector.load %arg0[%c0, %c0_0, %c0_1] : memref<32x2x64xbf16, #tpu.memory_space<vmem>>, vector<32x2x64xbf16>
    %1 = arith.extf %0 : vector<32x2x64xbf16> to vector<32x2x64xf32>
    %c0_2 = arith.constant 0 : index
    %c0_3 = arith.constant 0 : index
    %c0_4 = arith.constant 0 : index
    %2 = vector.load %arg1[%c0_2, %c0_3, %c0_4] : memref<32x1x1xf32, #tpu.memory_space<vmem>>, vector<32x1x1xf32>
    %3 = vector.broadcast %2 : vector<32x1x1xf32> to vector<32x2x64xf32>
    %4 = arith.mulf %1, %3 : vector<32x2x64xf32>
    %c0_5 = arith.constant 0 : index
    %c0_6 = arith.constant 0 : index
    %c0_7 = arith.constant 0 : index
    %5 = vector.load %arg2[%c0_5, %c0_6, %c0_7] : memref<32x1x1xf32, #tpu.memory_space<vmem>>, vector<32x1x1xf32>
    %6 = vector.broadcast %5 : vector<32x1x1xf32> to vector<32x2x64xf32>
    %7 = arith.addf %4, %6 : vector<32x2x64xf32>
    %cst = arith.constant 0.000000e+00 : f32
    %8 = vector.broadcast %cst : f32 to vector<32x2x64xf32>
    %9 = arith.maximumf %7, %8 : vector<32x2x64xf32>
    %cst_8 = arith.constant dense<0.000000e+00> : vector<32x2xf32>
    %10 = vector.multi_reduction <add>, %9, %cst_8 [2] : vector<32x2x64xf32> to vector<32x2xf32>
    %cst_9 = arith.constant 6.400000e+01 : f32
    %11 = vector.broadcast %cst_9 : f32 to vector<32x2xf32>
    %12 = arith.divf %10, %11 : vector<32x2xf32>
    %13 = arith.truncf %12 : vector<32x2xf32> to vector<32x2xbf16>
    %c0_10 = arith.constant 0 : index
    %c0_11 = arith.constant 0 : index
    %14 = vector.load %arg3[%c0_10, %c0_11] : memref<10x32xbf16, #tpu.memory_space<vmem>>, vector<10x32xbf16>
    %cst_12 = arith.constant dense<0.000000e+00> : vector<10x2xf32>
    %15 = tpu.matmul %14, %13, %cst_12 {dimension_numbers = #tpu.dot_dimension_numbers<[1], [0], [0], [1], [0, 0, 1, 1], [], []>} : vector<10x32xbf16>, vector<32x2xbf16>, vector<10x2xf32> -> vector<10x2xf32>
    %c0_13 = arith.constant 0 : index
    %c0_14 = arith.constant 0 : index
    %16 = vector.load %arg4[%c0_13, %c0_14] : memref<10x1xf32, #tpu.memory_space<vmem>>, vector<10x1xf32>
    %17 = vector.broadcast %16 : vector<10x1xf32> to vector<10x2xf32>
    %18 = arith.addf %15, %17 : vector<10x2xf32>
    %c0_15 = arith.constant 0 : index
    %c0_16 = arith.constant 0 : index
    %19 = vector.load %arg5[%c0_15, %c0_16] : memref<10x2xf32, #tpu.memory_space<vmem>>, vector<10x2xf32>
    tpu.vector_store %arg5[%c0_15, %c0_16], %18 {strides = array<i32>} : memref<10x2xf32, #tpu.memory_space<vmem>>, vector<10x2xf32>,
    return
  }
}

</mosaic_0001>

<bundles_post_ra>
// kernel: condensenet_forward.15
= control target key start
LH: loop header
LB: loop body
LE: loop exit
PB: predicated region body
PF: predicated region fallthrough
CT: control target
= control target key end

     0   :  { %s699_s12 = smov 0   ;;  %s701_s13 = smov 0   ;;  %s784_s0 = inlined_call_operand.vmem [shape: bf16[8,2048], index: 0, kind: input, shape index: {}]   ;;  %s785_s1 = inlined_call_operand.vmem [shape: bf16[16,8], index: 1, kind: input, shape index: {}]   ;;  %s786_s2 = inlined_call_operand.vmem [shape: f32[16,1], index: 2, kind: input, shape index: {}]   ;;  %s787_s3 = inlined_call_operand.vmem [shape: bf16[16,2048], index: 3, kind: output, shape index: {}]  }
   0x1   :  { %s703_s14 = smov 0  }
   0x2 LB: > { %s712_s15 = sadd.s32 4294967295, %s676_s14   ;;  %s714_s16 = sadd.s32 1, %s676_s14   ;;  %s676_s14 = sphi %s703_s14, %s791_s14   ;;  %s672_s13 = sphi %s701_s13, %s790_s13   ;;  %s668_s12 = sphi %s699_s12, %s789_s12  }
   0x3   : > { %s85_s17 = ssub.s32 %s676_s14, %s714_s16  ;;  %s88_s18 = sadd.s32 1, %s672_s13 }
   0x4   : > { %p86_p0 = scmp.eq.s32.totalorder %s85_s17, 0  ;;  %p98_p1 = scmp.ne.s32.totalorder %s672_s13, %s668_s12 }
   0x5   : > { %p99_p2 = scmp.eq.s32.totalorder %s712_s15, 1  ;;  %p584_p3 = scmp.ge.s32.totalorder %s676_s14, 1 }
   0x6   : > { %s722_s19 = scalar_select %p86_p0, %s672_s13, %s88_s18  }
   0x7   : > { %p724_p4 = por %p99_p2, %p98_p1  ;;  %p138_p5 = scmp.lt.s32.totalorder %s676_s14, 3 }
   0x9   : > { %p139_p6 = pnand %p584_p3, %p138_p5 }
   0xa   : > { %s586_s21 = sshll.u32 (!%p139_p6), %s712_s15, 3  ;;  %s158_s5 = sand.u32 (!%p139_p6), 1, %s668_s12  }
   0xb   : > { %142 = sbr.rel (%p139_p6) target bundleno = 250 (0xfa), region = 32  ;;  %p162_p7 = scmp.lt.s32.totalorder (!%p139_p6), %s586_s21, 15 }
   0xc   : > { %s585_s6 = sshll.u32 (!%p139_p6), %s158_s5, 6 }
   0xd   : > { %s750_s7 = scalar_lea.vmem (!%p139_p6), [#allocation2], %s585_s6 }
  0x10   : > { %v678_v0 = vmov 0   ;;  %v179_v1 = vld [vmem:[%s786_s2] sm:$0xff]  ;;  %s793_s21 = smov (!%p162_p7, %s586_s21), 15  ;;  %v180_v2 = vld [vmem:[%s786_s2 + $0x8] sm:$0xff]  ;;  %vm220_vm0 = vcmask 1043456   ;;  %vm216_vm1 = vcmask 64512  }
  0x11   : > { %277 = vmatprep.mubr.bf16.mxu0 %v678_v0  ;;  %320 = vmatprep.mubr.bf16.mxu1 %v678_v0  ;;  %s587_s26 = sshll.u32 %s793_s21, 2  ;;  %v653_v21 = vld [vmem:[%s785_s1] sm:$0xff]   ;;  %s626_s8 = sshll.u32 (%p724_p4), %s712_s15, 5 }
  0x12   : > { %652 = vset.pattern.permute.xlu0 %v678_v0  ;;  %s165_s29 = scalar_lea.vmem %s784_s0, %s587_s26  ;;  %s498_s11 = scalar_lea.vmem (%p724_p4), %s787_s3, %s626_s8 }
  0x13   : > { %183 = vperm.xlu0 %652, %v179_v1   ;;  %v169_v3 = vld [vmem:[%s165_s29] sm:$0xff]  ;;  %v170_v4 = vld [vmem:[%s165_s29 + $0x8] sm:$0xff]  ;;  %v171_v5 = vld [vmem:[%s165_s29 + $0x10] sm:$0xff] }
  0x14   : > { %v173_v6 = vmax.bf16 %v678_v0, %v169_v3  ;;  %v174_v7 = vmax.bf16 %v678_v0, %v170_v4  ;;  %v175_v8 = vmax.bf16 %v678_v0, %v171_v5  ;;  %v172_v9 = vld [vmem:[%s165_s29 + $0x18] sm:$0xff] }
  0x15   : > { %v176_v10 = vmax.bf16 %v678_v0, %v172_v9 }
  0x16   : > { %v590_v11 = vcombine.high %v173_v6, %v173_v6  ;;  %v592_v12 = vcombine.high %v174_v7, %v174_v7  ;;  %v589_v13 = vcombine.low %v173_v6, %v173_v6  ;;  %v591_v14 = vcombine.low %v174_v7, %v174_v7 }
  0x17   : > { %188 = vperm.xlu0 %652, %v180_v2   ;;  %v594_v15 = vcombine.high %v175_v8, %v175_v8  ;;  %v596_v16 = vcombine.high %v176_v10, %v176_v10  ;;  %v593_v17 = vcombine.low %v175_v8, %v175_v8  ;;  %v595_v18 = vcombine.low %v176_v10, %v176_v10 }
  0x18   : > { %597 = vmatprep.subr.msk.bf16.mxu0 %vm220_vm0, %v590_v11  ;;  %599 = vmatprep.subr.msk.bf16.mxu1 %vm220_vm0, %v592_v12  ;;  %v222_v19 = vsel %vm220_vm0, %v589_v13, 0  ;;  %v228_v20 = vsel %vm220_vm0, %v591_v14, 0 }
  0x19   : > { %260 = vmatpush1.bf16.msra.mxu0 %v222_v19  ;;  %303 = vmatpush1.bf16.msra.mxu1 %v228_v20  ;;  %v234_v22 = vsel %vm220_vm0, %v593_v17, 0  ;;  %v240_v23 = vsel %vm220_vm0, %v595_v18, 0 }
  0x1a   : > { %601 = vmatprep.subr.msk.bf16.mxu0 %vm220_vm0, %v594_v15  ;;  %603 = vmatprep.subr.msk.bf16.mxu1 %vm220_vm0, %v596_v16 }
  0x1c   : > { %598 = vmatmul.mubr.msk.bf16.vlgmr.msra.gmra.mxu0 %vm216_vm1, %v653_v21  ;;  %600 = vmatmul.mubr.msk.bf16.vlgmr.msra.gmra.mxu1 %vm216_vm1, %v653_v21 }
  0x1d   : > { %346 = vmatpush1.bf16.msra.mxu0 %v234_v22  ;;  %389 = vmatpush1.bf16.msra.mxu1 %v240_v23 }
  0x1e   : > { %363 = vmatprep.mubr.bf16.mxu0 %v678_v0  ;;  %406 = vmatprep.mubr.bf16.mxu1 %v678_v0 }
  0x24   : > { %602 = vmatmul.mubr.msk.bf16.vlgmr.msra.gmra.mxu0 %vm216_vm1, %v653_v21  ;;  %604 = vmatmul.mubr.msk.bf16.vlgmr.msra.gmra.mxu1 %vm216_vm1, %v653_v21 }
  0x8e   : > { %v184_v24 = vpop.permute.xlu0 %183 }
  0x92   : > { %v189_v33 = vpop.permute.xlu0 %188 }
  0xdc   : > { %v279_v25 = vpop.f32.mrf.mxu0  ;;  %v322_v26 = vpop.f32.mrf.mxu1 }
  0xdd   : > { %v280_v27 = vadd.f32 %v279_v25, %v184_v24  ;;  %v323_v28 = vadd.f32 %v322_v26, %v184_v24 }
  0xde   : > { %v281_v29 = vpop.f32.mrf.mxu0  ;;  %v324_v30 = vpop.f32.mrf.mxu1 }
  0xdf   : > { %v282_v31 = vadd.f32 %v281_v29, %v184_v24  ;;  %v325_v32 = vadd.f32 %v324_v30, %v184_v24  ;;  %v417_v36 = vmax.f32 %v280_v27, 0.0  ;;  %v419_v37 = vmax.f32 %v323_v28, 0.0 }
  0xe0   : > { %v283_v34 = vpop.f32.mrf.mxu0  ;;  %v326_v35 = vpop.f32.mrf.mxu1 }
  0xe1   : > { %v418_v38 = vmax.f32 %v282_v31, 0.0  ;;  %v420_v39 = vmax.f32 %v325_v32, 0.0  ;;  %v284_v40 = vadd.f32 %v283_v34, %v189_v33  ;;  %v327_v41 = vadd.f32 %v326_v35, %v189_v33 }
  0xe2   : > { %v285_v42 = vpop.f32.mrf.mxu0  ;;  %v328_v43 = vpop.f32.mrf.mxu1 }
  0xe3   : > { %v618_v44 = vpack.c.bf16 %v418_v38, %v417_v36  ;;  %v619_v45 = vpack.c.bf16 %v420_v39, %v419_v37  ;;  %v286_v46 = vadd.f32 %v285_v42, %v189_v33  ;;  %v329_v47 = vadd.f32 %v328_v43, %v189_v33 }
  0xe4   : > { %v365_v48 = vpop.f32.mrf.mxu0  ;;  %v408_v49 = vpop.f32.mrf.mxu1  ;;  %v425_v52 = vmax.f32 %v284_v40, 0.0  ;;  %v427_v53 = vmax.f32 %v327_v41, 0.0 }
  0xe5   : > { %481 = vst [vmem:[%s750_s7] sm:$0xff] %v618_v44  ;;  %482 = vst [vmem:[%s750_s7 + $0x8] sm:$0xff] %v619_v45  ;;  %v366_v50 = vadd.f32 %v365_v48, %v184_v24  ;;  %v409_v51 = vadd.f32 %v408_v49, %v184_v24  ;;  %v426_v54 = vmax.f32 %v286_v46, 0.0  ;;  %v428_v55 = vmax.f32 %v329_v47, 0.0 }
  0xe6   : > { %v367_v56 = vpop.f32.mrf.mxu0  ;;  %v410_v57 = vpop.f32.mrf.mxu1 }
  0xe7   : > { %v368_v58 = vadd.f32 %v367_v56, %v184_v24  ;;  %v411_v59 = vadd.f32 %v410_v57, %v184_v24  ;;  %v622_v60 = vpack.c.bf16 %v426_v54, %v425_v52  ;;  %v623_v61 = vpack.c.bf16 %v428_v55, %v427_v53 }
  0xe8   : > { %v369_v62 = vpop.f32.mrf.mxu0  ;;  %v412_v63 = vpop.f32.mrf.mxu1  ;;  %v421_v0 = vmax.f32 %v366_v50, 0.0  ;;  %v423_v1 = vmax.f32 %v409_v51, 0.0 }
  0xe9   : > { %v422_v2 = vmax.f32 %v368_v58, 0.0  ;;  %v424_v3 = vmax.f32 %v411_v59, 0.0  ;;  %485 = vst [vmem:[%s750_s7 + $0x20] sm:$0xff] %v622_v60  ;;  %486 = vst [vmem:[%s750_s7 + $0x28] sm:$0xff] %v623_v61  ;;  %v370_v4 = vadd.f32 %v369_v62, %v189_v33  ;;  %v413_v5 = vadd.f32 %v412_v63, %v189_v33 }
  0xea   : > { %v371_v6 = vpop.f32.mrf.mxu0  ;;  %v414_v7 = vpop.f32.mrf.mxu1 }
  0xeb   : > { %v620_v8 = vpack.c.bf16 %v422_v2, %v421_v0  ;;  %v621_v9 = vpack.c.bf16 %v424_v3, %v423_v1  ;;  %v372_v10 = vadd.f32 %v371_v6, %v189_v33  ;;  %v415_v11 = vadd.f32 %v414_v7, %v189_v33 }
  0xec   : > { %v429_v12 = vmax.f32 %v370_v4, 0.0  ;;  %v431_v13 = vmax.f32 %v413_v5, 0.0  ;;  %v511_v18 = vld [vmem:[%s750_s7] sm:$0xff] (%p724_p4)  ;;  %v513_v19 = vld [vmem:[%s750_s7 + $0x8] sm:$0xff] (%p724_p4) }
  0xed   : > { %483 = vst [vmem:[%s750_s7 + $0x10] sm:$0xff] %v620_v8  ;;  %484 = vst [vmem:[%s750_s7 + $0x18] sm:$0xff] %v621_v9  ;;  %v430_v14 = vmax.f32 %v372_v10, 0.0  ;;  %v432_v15 = vmax.f32 %v415_v11, 0.0  ;;  %495 = sbr.rel (!%p724_p4) target bundleno = 250 (0xfa), region = 36 }
  0xee   : > { %512 = vst [vmem:[%s498_s11] sm:$0xff] (%p724_p4), %v511_v18  ;;  %514 = vst [vmem:[%s498_s11 + $0x8] sm:$0xff] (%p724_p4), %v513_v19 }
  0xef   : > { %v624_v16 = vpack.c.bf16 %v430_v14, %v429_v12  ;;  %v625_v17 = vpack.c.bf16 %v432_v15, %v431_v13 }
  0xf0   : > { %v519_v22 = vld [vmem:[%s750_s7 + $0x20] sm:$0xff] (%p724_p4)  ;;  %v521_v23 = vld [vmem:[%s750_s7 + $0x28] sm:$0xff] (%p724_p4) }
  0xf1   : > { %487 = vst [vmem:[%s750_s7 + $0x30] sm:$0xff] %v624_v16  ;;  %488 = vst [vmem:[%s750_s7 + $0x38] sm:$0xff] %v625_v17 }
  0xf2   : > { %520 = vst [vmem:[%s498_s11 + $0x40] sm:$0xff] %v519_v22  ;;  %522 = vst [vmem:[%s498_s11 + $0x48] sm:$0xff] %v521_v23 }
  0xf4   : > { %v515_v20 = vld [vmem:[%s750_s7 + $0x10] sm:$0xff]  ;;  %v517_v21 = vld [vmem:[%s750_s7 + $0x18] sm:$0xff] }
  0xf5   : > { %516 = vst [vmem:[%s498_s11 + $0x10] sm:$0xff] %v515_v20  ;;  %518 = vst [vmem:[%s498_s11 + $0x18] sm:$0xff] %v517_v21 }
  0xf8   : > { %v523_v24 = vld [vmem:[%s750_s7 + $0x30] sm:$0xff]  ;;  %v525_v25 = vld [vmem:[%s750_s7 + $0x38] sm:$0xff] }
  0xf9   : > { %524 = vst [vmem:[%s498_s11 + $0x50] sm:$0xff] %v523_v24  ;;  %526 = vst [vmem:[%s498_s11 + $0x58] sm:$0xff] %v525_v25 }
  0xfa PF: > { %p10_p8 = scmp.ge.s32.totalorder %s714_s16, 4   ;;  %s789_s12 = smov %s672_s13 }
  0xfb   : > { %s790_s13 = smov %s722_s19  ;;  %s791_s14 = smov %s714_s16 }
  0xfc   :  { %12 = sbr.rel (!%p10_p8) target bundleno = 2 (0x2), region = 85 }

// kernel: condensenet_forward.14
= control target key start
LH: loop header
LB: loop body
LE: loop exit
PB: predicated region body
PF: predicated region fallthrough
CT: control target
= control target key end

     0   :  { %s689_s9 = smov 0   ;;  %s691_s10 = smov 0   ;;  %s788_s0 = inlined_call_operand.vmem [shape: bf16[27,2048], index: 0, kind: input, shape index: {}]   ;;  %s789_s1 = inlined_call_operand.vmem [shape: bf16[8,27], index: 1, kind: input, shape index: {}]   ;;  %s790_s2 = inlined_call_operand.vmem [shape: bf16[8,2048], index: 2, kind: output, shape index: {}]  }
   0x1   :  { %s693_s11 = smov 0  }
   0x2 LB: > { %s580_s12 = sadd.s32 4294967295, %s670_s11   ;;  %s706_s13 = sadd.s32 1, %s670_s11   ;;  %s670_s11 = sphi %s693_s11, %s793_s11   ;;  %s666_s10 = sphi %s691_s10, %s792_s10   ;;  %s662_s9 = sphi %s689_s9, %s791_s9  }
   0x3   : > { %s16_s14 = ssub.s32 %s670_s11, %s706_s13  ;;  %s19_s15 = sadd.s32 1, %s666_s10 }
   0x4   : > { %p17_p0 = scmp.eq.s32.totalorder %s16_s14, 0  ;;  %p26_p1 = scmp.ne.s32.totalorder %s666_s10, %s662_s9 }
   0x5   : > { %p27_p2 = scmp.eq.s32.totalorder %s670_s11, 0  ;;  %p583_p4 = scmp.ge.s32.totalorder %s670_s11, 2 }
   0x6   : > { %s715_s16 = scalar_select %p17_p0, %s666_s10, %s19_s15  }
   0x7   : > { %p28_p3 = por %p27_p2, %p26_p1  ;;  %102 = sbr.rel (%p583_p4) target bundleno = 24 (0x18), region = 20 }
   0xc   : > { %105 = sbr.rel (!%p28_p3) target bundleno = 24 (0x18), region = 24  ;;  %s107_s17 = sand.u32 (%p28_p3), 1, %s666_s10  }
   0xd   : > { %s617_s18 = sshll.u32 (%p28_p3), %s670_s11, 5  ;;  %s584_s19 = sshll.u32 (%p28_p3), %s107_s17, 7 }
   0xe   : > { %s723_s22 = scalar_lea.vmem (%p28_p3), %s788_s0, %s617_s18  ;;  %s109_s23 = scalar_lea.vmem (%p28_p3), [#allocation2], %s584_s19 }
   0xf   : > { %v125_v0 = vld [vmem:[%s723_s22] sm:$0xff] (%p28_p3)  ;;  %v127_v1 = vld [vmem:[%s723_s22 + $0x8] sm:$0xff] (%p28_p3)  ;;  %v129_v2 = vld [vmem:[%s723_s22 + $0x10] sm:$0xff] (%p28_p3) }
  0x10   : > { %126 = vst [vmem:[%s109_s23] sm:$0xff] (%p28_p3), %v125_v0  ;;  %128 = vst [vmem:[%s109_s23 + $0x8] sm:$0xff] (%p28_p3), %v127_v1  ;;  %v131_v3 = vld [vmem:[%s723_s22 + $0x18] sm:$0xff] (%p28_p3)  ;;  %v133_v4 = vld [vmem:[%s723_s22 + $0x40] sm:$0xff] (%p28_p3) }
  0x11   : > { %130 = vst [vmem:[%s109_s23 + $0x10] sm:$0xff] %v129_v2  ;;  %v135_v5 = vld [vmem:[%s723_s22 + $0x48] sm:$0xff]  ;;  %132 = vst [vmem:[%s109_s23 + $0x18] sm:$0xff] %v131_v3  ;;  %v137_v6 = vld [vmem:[%s723_s22 + $0x50] sm:$0xff] }
  0x12   : > { %134 = vst [vmem:[%s109_s23 + $0x20] sm:$0xff] %v133_v4  ;;  %136 = vst [vmem:[%s109_s23 + $0x28] sm:$0xff] %v135_v5  ;;  %v139_v7 = vld [vmem:[%s723_s22 + $0x58] sm:$0xff]  ;;  %v141_v8 = vld [vmem:[%s723_s22 + $0x80] sm:$0xff] }
  0x13   : > { %138 = vst [vmem:[%s109_s23 + $0x30] sm:$0xff] %v137_v6  ;;  %140 = vst [vmem:[%s109_s23 + $0x38] sm:$0xff] %v139_v7  ;;  %v143_v9 = vld [vmem:[%s723_s22 + $0x88] sm:$0xff]  ;;  %v145_v10 = vld [vmem:[%s723_s22 + $0x90] sm:$0xff] }
  0x14   : > { %142 = vst [vmem:[%s109_s23 + $0x40] sm:$0xff] %v141_v8  ;;  %v147_v11 = vld [vmem:[%s723_s22 + $0x98] sm:$0xff]  ;;  %144 = vst [vmem:[%s109_s23 + $0x48] sm:$0xff] %v143_v9  ;;  %v149_v12 = vld [vmem:[%s723_s22 + $0xc0] sm:$0xff] }
  0x15   : > { %146 = vst [vmem:[%s109_s23 + $0x50] sm:$0xff] %v145_v10  ;;  %148 = vst [vmem:[%s109_s23 + $0x58] sm:$0xff] %v147_v11  ;;  %v151_v13 = vld [vmem:[%s723_s22 + $0xc8] sm:$0xff]  ;;  %v153_v14 = vld [vmem:[%s723_s22 + $0xd0] sm:$0xff] }
  0x16   : > { %150 = vst [vmem:[%s109_s23 + $0x60] sm:$0xff] %v149_v12  ;;  %152 = vst [vmem:[%s109_s23 + $0x68] sm:$0xff] %v151_v13  ;;  %v155_v15 = vld [vmem:[%s723_s22 + $0xd8] sm:$0xff] }
  0x17   : > { %154 = vst [vmem:[%s109_s23 + $0x70] sm:$0xff] %v153_v14  ;;  %156 = vst [vmem:[%s109_s23 + $0x78] sm:$0xff] %v155_v15 }
  0x18 PF: > { %p587_p5 = scmp.ge.s32.totalorder %s670_s11, 1  ;;  %p161_p6 = scmp.lt.s32.totalorder %s670_s11, 3 }
  0x1a   : > { %p162_p7 = pnand %p587_p5, %p161_p6 }
  0x1b   : > { %s168_s24 = sand.u32 (!%p162_p7), 1, %s662_s9   ;;  %s589_s29 = sshll.u32 (!%p162_p7), %s580_s12, 3 }
  0x1c   : > { %165 = sbr.rel (%p162_p7) target bundleno = 254 (0xfe), region = 47  ;;  %s588_s25 = sshll.u32 (!%p162_p7), %s168_s24, 7 }
  0x1d   : > { %s746_s26 = scalar_lea.vmem (!%p162_p7), [#allocation2], %s588_s25  ;;  %p191_p8 = scmp.lt.s32.totalorder (!%p162_p7), %s589_s29, 15 }
  0x21   : > { %vm290_vm0 = vcmask 1044480   ;;  %vm291_vm1 = vcmask 1045504   ;;  %v672_v16 = vmov 65535   ;;  %v673_v18 = vmov 0   ;;  %v206_v19 = vld [vmem:[%s746_s26 + $0x40] sm:$0xff]  ;;  %v207_v22 = vld [vmem:[%s746_s26 + $0x48] sm:$0xff] }
  0x22   : > { %v292_v17 = vsel %vm290_vm0, 4294967295, %v672_v16  ;;  %350 = vmatprep.mubr.bf16.mxu0 %v673_v18  ;;  %391 = vmatprep.mubr.bf16.mxu1 %v673_v18  ;;  %v210_v20 = vld [vmem:[%s746_s26 + $0x60] sm:$0x33]  ;;  %v211_v24 = vld [vmem:[%s746_s26 + $0x68] sm:$0x33]  ;;  %v208_v32 = vld [vmem:[%s746_s26 + $0x50] sm:$0xff] }
  0x23   : > { %v293_v21 = vsel %vm291_vm1, %v292_v17, 0  ;;  %v600_v23 = vcombine.high %v206_v19, %v210_v20  ;;  %v599_v25 = vcombine.low %v206_v19, %v210_v20  ;;  %v198_v26 = vld [vmem:[%s746_s26] sm:$0xff]  ;;  %v602_v28 = vcombine.high %v207_v22, %v211_v24  ;;  %v199_v30 = vld [vmem:[%s746_s26 + $0x8] sm:$0xff]  ;;  %v212_v36 = vld [vmem:[%s746_s26 + $0x70] sm:$0x33]  ;;  %s795_s29 = smov (!%p191_p8, %s589_s29), 15 }
  0x24   : > { %v202_v27 = vld [vmem:[%s746_s26 + $0x20] sm:$0xff]  ;;  %v601_v29 = vcombine.low %v207_v22, %v211_v24  ;;  %v203_v31 = vld [vmem:[%s746_s26 + $0x28] sm:$0xff]  ;;  %v209_v37 = vld [vmem:[%s746_s26 + $0x58] sm:$0xff]  ;;  %v604_v42 = vcombine.high %v208_v32, %v212_v36  ;;  %v603_v45 = vcombine.low %v208_v32, %v212_v36  ;;  %vm286_vm2 = vcmask 220160   ;;  %s590_s30 = sshll.u32 %s795_s29, 2 }
  0x25   : > { %v298_v33 = vand.u32 %v600_v23, %v293_v21  ;;  %v295_v34 = vand.u32 %v599_v25, %v293_v21  ;;  %v592_v35 = vcombine.high %v198_v26, %v202_v27  ;;  %v213_v38 = vld [vmem:[%s746_s26 + $0x78] sm:$0x33]  ;;  %v304_v39 = vand.u32 %v602_v28, %v293_v21  ;;  %v200_v50 = vld [vmem:[%s746_s26 + $0x10] sm:$0xff]  ;;  %s194_s5 = scalar_lea.vmem %s790_s2, %s590_s30 }
  0x26   : > { %v301_v40 = vand.u32 %v601_v29, %v293_v21  ;;  %v594_v41 = vcombine.high %v199_v30, %v203_v31  ;;  %v606_v43 = vcombine.high %v209_v37, %v213_v38  ;;  %v591_v44 = vcombine.low %v198_v26, %v202_v27  ;;  %v204_v51 = vld [vmem:[%s746_s26 + $0x30] sm:$0xff]  ;;  %v201_v52 = vld [vmem:[%s746_s26 + $0x18] sm:$0xff] }
  0x27   : > { %330 = vmatprep.subr.bf16.mxu0 %v298_v33  ;;  %371 = vmatprep.subr.bf16.mxu1 %v304_v39  ;;  %v593_v46 = vcombine.low %v199_v30, %v203_v31  ;;  %v310_v47 = vand.u32 %v604_v42, %v293_v21  ;;  %v605_v48 = vcombine.low %v209_v37, %v213_v38  ;;  %v205_v53 = vld [vmem:[%s746_s26 + $0x38] sm:$0xff]  ;;  %v197_v54 = vld [vmem:[%s789_s1] sm:$0xf] }
  0x28   : > { %331 = vmatpush1.bf16.msra.mxu0 %v295_v34  ;;  %372 = vmatpush1.bf16.msra.mxu1 %v301_v40  ;;  %v316_v49 = vand.u32 %v606_v43, %v293_v21  ;;  %v307_v55 = vand.u32 %v603_v45, %v293_v21  ;;  %v596_v57 = vcombine.high %v200_v50, %v204_v51 }
  0x29   : > { %332 = vmatprep.subr.bf16.mxu0 %v592_v35  ;;  %373 = vmatprep.subr.bf16.mxu1 %v594_v41  ;;  %v313_v56 = vand.u32 %v605_v48, %v293_v21  ;;  %v598_v58 = vcombine.high %v201_v52, %v205_v53  ;;  %v595_v59 = vcombine.low %v200_v50, %v204_v51 }
  0x2a   : > { %v597_v60 = vcombine.low %v201_v52, %v205_v53 }
  0x2c   : > { %333 = vmatpush1.bf16.msra.mxu0 %v591_v44  ;;  %374 = vmatpush1.bf16.msra.mxu1 %v593_v46 }
  0x2d   : > { %412 = vmatprep.subr.bf16.mxu0 %v310_v47  ;;  %453 = vmatprep.subr.bf16.mxu1 %v316_v49 }
  0x2f   : > { %607 = vmatmul.mubr.msk.bf16.vlgmr.msra.gmra.mxu0 %vm286_vm2, %v197_v54  ;;  %608 = vmatmul.mubr.msk.bf16.vlgmr.msra.gmra.mxu1 %vm286_vm2, %v197_v54 }
  0x30   : > { %413 = vmatpush1.bf16.msra.mxu0 %v307_v55  ;;  %454 = vmatpush1.bf16.msra.mxu1 %v313_v56 }
  0x31   : > { %414 = vmatprep.subr.bf16.mxu0 %v596_v57  ;;  %455 = vmatprep.subr.bf16.mxu1 %v598_v58 }
  0x32   : > { %432 = vmatprep.mubr.bf16.mxu0 %v673_v18  ;;  %473 = vmatprep.mubr.bf16.mxu1 %v673_v18 }
  0x34   : > { %415 = vmatpush1.bf16.msra.mxu0 %v595_v59  ;;  %456 = vmatpush1.bf16.msra.mxu1 %v597_v60 }
  0x37   : > { %609 = vmatmul.mubr.msk.bf16.vlgmr.msra.gmra.mxu0 %vm286_vm2, %v197_v54  ;;  %610 = vmatmul.mubr.msk.bf16.vlgmr.msra.gmra.mxu1 %vm286_vm2, %v197_v54 }
  0xef   : > { %v352_v61 = vpop.f32.mrf.mxu0  ;;  %v393_v62 = vpop.f32.mrf.mxu1 }
  0xf1   : > { %v354_v63 = vpop.f32.mrf.mxu0  ;;  %v395_v1 = vpop.f32.mrf.mxu1 }
  0xf2   : > { %v618_v0 = vpack.c.bf16 %v354_v63, %v352_v61  ;;  %v619_v2 = vpack.c.bf16 %v395_v1, %v393_v62 }
  0xf3   : > { %v356_v3 = vpop.f32.mrf.mxu0  ;;  %v397_v4 = vpop.f32.mrf.mxu1 }
  0xf4   : > { %514 = vst [vmem:[%s194_s5] sm:$0xff] %v618_v0  ;;  %515 = vst [vmem:[%s194_s5 + $0x8] sm:$0xff] %v619_v2 }
  0xf5   : > { %v357_v5 = vpop.f32.mrf.mxu0  ;;  %v398_v6 = vpop.f32.mrf.mxu1 }
  0xf7   : > { %v434_v7 = vpop.f32.mrf.mxu0  ;;  %v475_v8 = vpop.f32.mrf.mxu1 }
  0xf9   : > { %v436_v9 = vpop.f32.mrf.mxu0  ;;  %v477_v11 = vpop.f32.mrf.mxu1 }
  0xfa   : > { %v620_v10 = vpack.c.bf16 %v436_v9, %v434_v7  ;;  %v621_v12 = vpack.c.bf16 %v477_v11, %v475_v8 }
  0xfb   : > { %v438_v13 = vpop.f32.mrf.mxu0  ;;  %v479_v14 = vpop.f32.mrf.mxu1 }
  0xfc   : > { %516 = vst [vmem:[%s194_s5 + $0x10] sm:$0xff] %v620_v10  ;;  %517 = vst [vmem:[%s194_s5 + $0x18] sm:$0xff] %v621_v12 }
  0xfd   : > { %v439_v15 = vpop.f32.mrf.mxu0  ;;  %v480_v16 = vpop.f32.mrf.mxu1 }
  0xfe PF: > { %p9_p9 = scmp.ge.s32.totalorder %s706_s13, 4   ;;  %s791_s9 = smov %s666_s10 }
  0xff   : > { %s792_s10 = smov %s715_s16  ;;  %s793_s11 = smov %s706_s13 }
 0x100   :  { %11 = sbr.rel (!%p9_p9) target bundleno = 2 (0x2), region = 86 }

// kernel: condensenet_forward.16
= control target key start
LH: loop header
LB: loop body
LE: loop exit
PB: predicated region body
PF: predicated region fallthrough
CT: control target
= control target key end

     0   :  { %s1196_s9 = smov 0   ;;  %s1198_s10 = smov 0   ;;  %s1491_s0 = inlined_call_operand.vmem [shape: bf16[144,2048], index: 0, kind: input, shape index: {}]   ;;  %s1492_s1 = inlined_call_operand.vmem [shape: bf16[4,144], index: 1, kind: input, shape index: {}]   ;;  %s1493_s2 = inlined_call_operand.vmem [shape: bf16[4,2048], index: 2, kind: output, shape index: {}]  }
   0x1   :  { %s1200_s11 = smov 0  }
   0x2 LB: > { %s1036_s12 = sadd.s32 4294967295, %s1178_s11   ;;  %s1213_s13 = sadd.s32 1, %s1178_s11   ;;  %s1178_s11 = sphi %s1200_s11, %s1496_s11   ;;  %s1174_s10 = sphi %s1198_s10, %s1495_s10   ;;  %s1170_s9 = sphi %s1196_s9, %s1494_s9  }
   0x3   : > { %s16_s14 = ssub.s32 %s1178_s11, %s1213_s13  ;;  %s19_s15 = sadd.s32 1, %s1174_s10 }
   0x4   : > { %p17_p0 = scmp.eq.s32.totalorder %s16_s14, 0  ;;  %p26_p1 = scmp.ne.s32.totalorder %s1174_s10, %s1170_s9 }
   0x5   : > { %p27_p2 = scmp.eq.s32.totalorder %s1178_s11, 0  ;;  %p1039_p4 = scmp.ge.s32.totalorder %s1178_s11, 2 }
   0x6   : > { %s1222_s16 = scalar_select %p17_p0, %s1174_s10, %s19_s15  }
   0x7   : > { %p28_p3 = por %p27_p2, %p26_p1  ;;  %102 = sbr.rel (%p1039_p4) target bundleno = 53 (0x35), region = 20 }
   0xc   : > { %105 = sbr.rel (!%p28_p3) target bundleno = 53 (0x35), region = 24  ;;  %s107_s17 = sand.u32 (%p28_p3), 1, %s1174_s10  }
   0xd   : > { %s1128_s18 = sshll.u32 (%p28_p3), %s1178_s11, 5  ;;  %s1129_s19 = smul.u32 (%p28_p3), 576, %s107_s17 }
   0xe   : > { %s1230_s22 = scalar_lea.vmem (%p28_p3), %s1491_s0, %s1128_s18 }
   0xf   : > { %v125_v0 = vld [vmem:[%s1230_s22] sm:$0xff] (%p28_p3)  ;;  %v127_v1 = vld [vmem:[%s1230_s22 + $0x8] sm:$0xff] (%p28_p3)  ;;  %v129_v2 = vld [vmem:[%s1230_s22 + $0x10] sm:$0xff] (%p28_p3)  ;;  %s1238_s23 = scalar_lea.vmem (%p28_p3), [#allocation2], %s1129_s19 }
  0x10   : > { %v131_v3 = vld [vmem:[%s1230_s22 + $0x18] sm:$0xff] (%p28_p3)  ;;  %v133_v4 = vld [vmem:[%s1230_s22 + $0x40] sm:$0xff] (%p28_p3)  ;;  %v135_v5 = vld [vmem:[%s1230_s22 + $0x48] sm:$0xff] (%p28_p3)  ;;  %126 = vst [vmem:[%s1238_s23] sm:$0xff] (%p28_p3), %v125_v0 }
  0x11   : > { %128 = vst [vmem:[%s1238_s23 + $0x8] sm:$0xff] %v127_v1  ;;  %130 = vst [vmem:[%s1238_s23 + $0x10] sm:$0xff] %v129_v2  ;;  %v137_v6 = vld [vmem:[%s1230_s22 + $0x50] sm:$0xff]  ;;  %v139_v7 = vld [vmem:[%s1230_s22 + $0x58] sm:$0xff] }
  0x12   : > { %132 = vst [vmem:[%s1238_s23 + $0x18] sm:$0xff] %v131_v3  ;;  %134 = vst [vmem:[%s1238_s23 + $0x20] sm:$0xff] %v133_v4  ;;  %v141_v8 = vld [vmem:[%s1230_s22 + $0x80] sm:$0xff]  ;;  %v143_v9 = vld [vmem:[%s1230_s22 + $0x88] sm:$0xff] }
  0x13   : > { %136 = vst [vmem:[%s1238_s23 + $0x28] sm:$0xff] %v135_v5  ;;  %138 = vst [vmem:[%s1238_s23 + $0x30] sm:$0xff] %v137_v6  ;;  %v145_v10 = vld [vmem:[%s1230_s22 + $0x90] sm:$0xff]  ;;  %v147_v11 = vld [vmem:[%s1230_s22 + $0x98] sm:$0xff] }
  0x14   : > { %140 = vst [vmem:[%s1238_s23 + $0x38] sm:$0xff] %v139_v7  ;;  %142 = vst [vmem:[%s1238_s23 + $0x40] sm:$0xff] %v141_v8  ;;  %v149_v12 = vld [vmem:[%s1230_s22 + $0xc0] sm:$0xff]  ;;  %v151_v13 = vld [vmem:[%s1230_s22 + $0xc8] sm:$0xff] }
  0x15   : > { %144 = vst [vmem:[%s1238_s23 + $0x48] sm:$0xff] %v143_v9  ;;  %146 = vst [vmem:[%s1238_s23 + $0x50] sm:$0xff] %v145_v10  ;;  %v153_v14 = vld [vmem:[%s1230_s22 + $0xd0] sm:$0xff]  ;;  %v155_v15 = vld [vmem:[%s1230_s22 + $0xd8] sm:$0xff] }
  0x16   : > { %148 = vst [vmem:[%s1238_s23 + $0x58] sm:$0xff] %v147_v11  ;;  %150 = vst [vmem:[%s1238_s23 + $0x60] sm:$0xff] %v149_v12  ;;  %v157_v16 = vld [vmem:[%s1230_s22 + $0x100] sm:$0xff]  ;;  %v159_v17 = vld [vmem:[%s1230_s22 + $0x108] sm:$0xff] }
  0x17   : > { %152 = vst [vmem:[%s1238_s23 + $0x68] sm:$0xff] %v151_v13  ;;  %154 = vst [vmem:[%s1238_s23 + $0x70] sm:$0xff] %v153_v14  ;;  %v161_v18 = vld [vmem:[%s1230_s22 + $0x110] sm:$0xff]  ;;  %v163_v19 = vld [vmem:[%s1230_s22 + $0x118] sm:$0xff] }
  0x18   : > { %156 = vst [vmem:[%s1238_s23 + $0x78] sm:$0xff] %v155_v15  ;;  %158 = vst [vmem:[%s1238_s23 + $0x80] sm:$0xff] %v157_v16  ;;  %v165_v20 = vld [vmem:[%s1230_s22 + $0x140] sm:$0xff]  ;;  %v167_v21 = vld [vmem:[%s1230_s22 + $0x148] sm:$0xff] }
  0x19   : > { %160 = vst [vmem:[%s1238_s23 + $0x88] sm:$0xff] %v159_v17  ;;  %162 = vst [vmem:[%s1238_s23 + $0x90] sm:$0xff] %v161_v18  ;;  %v169_v22 = vld [vmem:[%s1230_s22 + $0x150] sm:$0xff]  ;;  %v171_v23 = vld [vmem:[%s1230_s22 + $0x158] sm:$0xff] }
  0x1a   : > { %164 = vst [vmem:[%s1238_s23 + $0x98] sm:$0xff] %v163_v19  ;;  %166 = vst [vmem:[%s1238_s23 + $0xa0] sm:$0xff] %v165_v20  ;;  %v173_v24 = vld [vmem:[%s1230_s22 + $0x180] sm:$0xff]  ;;  %v175_v25 = vld [vmem:[%s1230_s22 + $0x188] sm:$0xff] }
  0x1b   : > { %168 = vst [vmem:[%s1238_s23 + $0xa8] sm:$0xff] %v167_v21  ;;  %170 = vst [vmem:[%s1238_s23 + $0xb0] sm:$0xff] %v169_v22  ;;  %v177_v26 = vld [vmem:[%s1230_s22 + $0x190] sm:$0xff]  ;;  %v179_v27 = vld [vmem:[%s1230_s22 + $0x198] sm:$0xff] }
  0x1c   : > { %172 = vst [vmem:[%s1238_s23 + $0xb8] sm:$0xff] %v171_v23  ;;  %174 = vst [vmem:[%s1238_s23 + $0xc0] sm:$0xff] %v173_v24  ;;  %v181_v28 = vld [vmem:[%s1230_s22 + $0x1c0] sm:$0xff]  ;;  %v183_v29 = vld [vmem:[%s1230_s22 + $0x1c8] sm:$0xff] }
  0x1d   : > { %176 = vst [vmem:[%s1238_s23 + $0xc8] sm:$0xff] %v175_v25  ;;  %178 = vst [vmem:[%s1238_s23 + $0xd0] sm:$0xff] %v177_v26  ;;  %v185_v30 = vld [vmem:[%s1230_s22 + $0x1d0] sm:$0xff]  ;;  %v187_v31 = vld [vmem:[%s1230_s22 + $0x1d8] sm:$0xff] }
  0x1e   : > { %180 = vst [vmem:[%s1238_s23 + $0xd8] sm:$0xff] %v179_v27  ;;  %182 = vst [vmem:[%s1238_s23 + $0xe0] sm:$0xff] %v181_v28  ;;  %v189_v32 = vld [vmem:[%s1230_s22 + $0x200] sm:$0xff]  ;;  %v191_v33 = vld [vmem:[%s1230_s22 + $0x208] sm:$0xff] }
  0x1f   : > { %184 = vst [vmem:[%s1238_s23 + $0xe8] sm:$0xff] %v183_v29  ;;  %186 = vst [vmem:[%s1238_s23 + $0xf0] sm:$0xff] %v185_v30  ;;  %v193_v34 = vld [vmem:[%s1230_s22 + $0x210] sm:$0xff]  ;;  %v195_v35 = vld [vmem:[%s1230_s22 + $0x218] sm:$0xff] }
  0x20   : > { %188 = vst [vmem:[%s1238_s23 + $0xf8] sm:$0xff] %v187_v31  ;;  %190 = vst [vmem:[%s1238_s23 + $0x100] sm:$0xff] %v189_v32  ;;  %v197_v36 = vld [vmem:[%s1230_s22 + $0x240] sm:$0xff]  ;;  %v199_v37 = vld [vmem:[%s1230_s22 + $0x248] sm:$0xff] }
  0x21   : > { %192 = vst [vmem:[%s1238_s23 + $0x108] sm:$0xff] %v191_v33  ;;  %194 = vst [vmem:[%s1238_s23 + $0x110] sm:$0xff] %v193_v34  ;;  %v201_v38 = vld [vmem:[%s1230_s22 + $0x250] sm:$0xff]  ;;  %v203_v39 = vld [vmem:[%s1230_s22 + $0x258] sm:$0xff] }
  0x22   : > { %196 = vst [vmem:[%s1238_s23 + $0x118] sm:$0xff] %v195_v35  ;;  %198 = vst [vmem:[%s1238_s23 + $0x120] sm:$0xff] %v197_v36  ;;  %v205_v40 = vld [vmem:[%s1230_s22 + $0x280] sm:$0xff]  ;;  %v207_v41 = vld [vmem:[%s1230_s22 + $0x288] sm:$0xff] }
  0x23   : > { %200 = vst [vmem:[%s1238_s23 + $0x128] sm:$0xff] %v199_v37  ;;  %202 = vst [vmem:[%s1238_s23 + $0x130] sm:$0xff] %v201_v38  ;;  %v209_v42 = vld [vmem:[%s1230_s22 + $0x290] sm:$0xff]  ;;  %v211_v43 = vld [vmem:[%s1230_s22 + $0x298] sm:$0xff] }
  0x24   : > { %204 = vst [vmem:[%s1238_s23 + $0x138] sm:$0xff] %v203_v39  ;;  %206 = vst [vmem:[%s1238_s23 + $0x140] sm:$0xff] %v205_v40  ;;  %v213_v44 = vld [vmem:[%s1230_s22 + $0x2c0] sm:$0xff]  ;;  %v215_v45 = vld [vmem:[%s1230_s22 + $0x2c8] sm:$0xff] }
  0x25   : > { %208 = vst [vmem:[%s1238_s23 + $0x148] sm:$0xff] %v207_v41  ;;  %210 = vst [vmem:[%s1238_s23 + $0x150] sm:$0xff] %v209_v42  ;;  %v217_v46 = vld [vmem:[%s1230_s22 + $0x2d0] sm:$0xff]  ;;  %v219_v47 = vld [vmem:[%s1230_s22 + $0x2d8] sm:$0xff] }
  0x26   : > { %212 = vst [vmem:[%s1238_s23 + $0x158] sm:$0xff] %v211_v43  ;;  %214 = vst [vmem:[%s1238_s23 + $0x160] sm:$0xff] %v213_v44  ;;  %v221_v48 = vld [vmem:[%s1230_s22 + $0x300] sm:$0xff]  ;;  %v223_v49 = vld [vmem:[%s1230_s22 + $0x308] sm:$0xff] }
  0x27   : > { %216 = vst [vmem:[%s1238_s23 + $0x168] sm:$0xff] %v215_v45  ;;  %218 = vst [vmem:[%s1238_s23 + $0x170] sm:$0xff] %v217_v46  ;;  %v225_v50 = vld [vmem:[%s1230_s22 + $0x310] sm:$0xff]  ;;  %v227_v51 = vld [vmem:[%s1230_s22 + $0x318] sm:$0xff] }
  0x28   : > { %220 = vst [vmem:[%s1238_s23 + $0x178] sm:$0xff] %v219_v47  ;;  %222 = vst [vmem:[%s1238_s23 + $0x180] sm:$0xff] %v221_v48  ;;  %v229_v52 = vld [vmem:[%s1230_s22 + $0x340] sm:$0xff]  ;;  %v231_v53 = vld [vmem:[%s1230_s22 + $0x348] sm:$0xff] }
  0x29   : > { %224 = vst [vmem:[%s1238_s23 + $0x188] sm:$0xff] %v223_v49  ;;  %226 = vst [vmem:[%s1238_s23 + $0x190] sm:$0xff] %v225_v50  ;;  %v233_v54 = vld [vmem:[%s1230_s22 + $0x350] sm:$0xff]  ;;  %v235_v55 = vld [vmem:[%s1230_s22 + $0x358] sm:$0xff] }
  0x2a   : > { %228 = vst [vmem:[%s1238_s23 + $0x198] sm:$0xff] %v227_v51  ;;  %230 = vst [vmem:[%s1238_s23 + $0x1a0] sm:$0xff] %v229_v52  ;;  %v237_v56 = vld [vmem:[%s1230_s22 + $0x380] sm:$0xff]  ;;  %v239_v57 = vld [vmem:[%s1230_s22 + $0x388] sm:$0xff] }
  0x2b   : > { %232 = vst [vmem:[%s1238_s23 + $0x1a8] sm:$0xff] %v231_v53  ;;  %234 = vst [vmem:[%s1238_s23 + $0x1b0] sm:$0xff] %v233_v54  ;;  %v241_v58 = vld [vmem:[%s1230_s22 + $0x390] sm:$0xff]  ;;  %v243_v59 = vld [vmem:[%s1230_s22 + $0x398] sm:$0xff] }
  0x2c   : > { %236 = vst [vmem:[%s1238_s23 + $0x1b8] sm:$0xff] %v235_v55  ;;  %238 = vst [vmem:[%s1238_s23 + $0x1c0] sm:$0xff] %v237_v56  ;;  %v245_v60 = vld [vmem:[%s1230_s22 + $0x3c0] sm:$0xff]  ;;  %v247_v61 = vld [vmem:[%s1230_s22 + $0x3c8] sm:$0xff] }
  0x2d   : > { %240 = vst [vmem:[%s1238_s23 + $0x1c8] sm:$0xff] %v239_v57  ;;  %242 = vst [vmem:[%s1238_s23 + $0x1d0] sm:$0xff] %v241_v58  ;;  %v249_v62 = vld [vmem:[%s1230_s22 + $0x3d0] sm:$0xff]  ;;  %v251_v63 = vld [vmem:[%s1230_s22 + $0x3d8] sm:$0xff] }
  0x2e   : > { %244 = vst [vmem:[%s1238_s23 + $0x1d8] sm:$0xff] %v243_v59  ;;  %246 = vst [vmem:[%s1238_s23 + $0x1e0] sm:$0xff] %v245_v60  ;;  %v253_v0 = vld [vmem:[%s1230_s22 + $0x400] sm:$0xff]  ;;  %v255_v1 = vld [vmem:[%s1230_s22 + $0x408] sm:$0xff] }
  0x2f   : > { %248 = vst [vmem:[%s1238_s23 + $0x1e8] sm:$0xff] %v247_v61  ;;  %250 = vst [vmem:[%s1238_s23 + $0x1f0] sm:$0xff] %v249_v62  ;;  %v257_v2 = vld [vmem:[%s1230_s22 + $0x410] sm:$0xff]  ;;  %v259_v3 = vld [vmem:[%s1230_s22 + $0x418] sm:$0xff] }
  0x30   : > { %252 = vst [vmem:[%s1238_s23 + $0x1f8] sm:$0xff] %v251_v63  ;;  %254 = vst [vmem:[%s1238_s23 + $0x200] sm:$0xff] %v253_v0  ;;  %v261_v4 = vld [vmem:[%s1230_s22 + $0x440] sm:$0xff]  ;;  %v263_v5 = vld [vmem:[%s1230_s22 + $0x448] sm:$0xff] }
  0x31   : > { %256 = vst [vmem:[%s1238_s23 + $0x208] sm:$0xff] %v255_v1  ;;  %258 = vst [vmem:[%s1238_s23 + $0x210] sm:$0xff] %v257_v2  ;;  %v265_v6 = vld [vmem:[%s1230_s22 + $0x450] sm:$0xff]  ;;  %v267_v7 = vld [vmem:[%s1230_s22 + $0x458] sm:$0xff] }
  0x32   : > { %260 = vst [vmem:[%s1238_s23 + $0x218] sm:$0xff] %v259_v3  ;;  %262 = vst [vmem:[%s1238_s23 + $0x220] sm:$0xff] %v261_v4 }
  0x33   : > { %264 = vst [vmem:[%s1238_s23 + $0x228] sm:$0xff] %v263_v5  ;;  %266 = vst [vmem:[%s1238_s23 + $0x230] sm:$0xff] %v265_v6 }
  0x34   : > { %268 = vst [vmem:[%s1238_s23 + $0x238] sm:$0xff] %v267_v7 }
  0x35 PF: > { %p1042_p5 = scmp.ge.s32.totalorder %s1178_s11, 1  ;;  %p273_p6 = scmp.lt.s32.totalorder %s1178_s11, 3 }
  0x37   : > { %p274_p7 = pnand %p1042_p5, %p273_p6 }
  0x38   : > { %s280_s24 = sand.u32 (!%p274_p7), 1, %s1170_s9   ;;  %s1043_s29 = sshll.u32 (!%p274_p7), %s1036_s12, 3 }
  0x39   : > { %277 = sbr.rel (%p274_p7) target bundleno = 341 (0x155), region = 47  ;;  %p303_p8 = scmp.lt.s32.totalorder (!%p274_p7), %s1043_s29, 15 }
  0x3a   : > { %s1130_s27 = smul.u32 (!%p274_p7), 576, %s280_s24 }
  0x3c   : > { %s1394_s28 = scalar_lea.vmem (!%p274_p7), [#allocation2], %s1130_s27 }
  0x3e   : > { %v1384_v8 = vld.sshfl [vmem:[%s1492_s1] sm:$0x33 pattern:$0x76325410]  ;;  %vm752_vm0 = vcmask 130048   ;;  %v366_v10 = vld [vmem:[%s1394_s28 + $0x1c0] sm:$0xff] }
  0x3f   : > { %v1388_v9 = vcombine.high %v1384_v8, %v1384_v8  ;;  %v370_v11 = vld [vmem:[%s1394_s28 + $0x1e0] sm:$0xff]  ;;  %v367_v12 = vld [vmem:[%s1394_s28 + $0x1c8] sm:$0xff]  ;;  %s1498_s29 = smov (!%p303_p8, %s1043_s29), 15 }
  0x40   : > { %v1103_v13 = vcombine.high %v366_v10, %v370_v11  ;;  %v371_v14 = vld [vmem:[%s1394_s28 + $0x1e8] sm:$0xff]  ;;  %v1102_v15 = vcombine.low %v366_v10, %v370_v11  ;;  %v358_v16 = vld [vmem:[%s1394_s28 + $0x180] sm:$0xff]  ;;  %s1044_s30 = sshll.u32 %s1498_s29, 1 }
  0x41   : > { %1118 = vmatprep.mubr.msk.bf16.mxu0 %vm752_vm0, %v1388_v9  ;;  %1119 = vmatprep.mubr.msk.bf16.mxu1 %vm752_vm0, %v1388_v9  ;;  %v362_v17 = vld [vmem:[%s1394_s28 + $0x1a0] sm:$0xff]  ;;  %v1105_v18 = vcombine.high %v367_v12, %v371_v14  ;;  %v1104_v19 = vcombine.low %v367_v12, %v371_v14  ;;  %v359_v21 = vld [vmem:[%s1394_s28 + $0x188] sm:$0xff]  ;;  %s306_s5 = scalar_lea.vmem %s1493_s2, %s1044_s30 }
  0x42   : > { %v1095_v20 = vcombine.high %v358_v16, %v362_v17  ;;  %v363_v22 = vld [vmem:[%s1394_s28 + $0x1a8] sm:$0xff]  ;;  %v350_v23 = vld [vmem:[%s1394_s28 + $0x140] sm:$0xff]  ;;  %756 = vmatprep.subr.bf16.mxu0 %v1103_v13  ;;  %v1094_v28 = vcombine.low %v358_v16, %v362_v17 }
  0x43   : > { %v1097_v24 = vcombine.high %v359_v21, %v363_v22  ;;  %v354_v25 = vld [vmem:[%s1394_s28 + $0x160] sm:$0xff]  ;;  %v351_v26 = vld [vmem:[%s1394_s28 + $0x148] sm:$0xff]  ;;  %797 = vmatprep.subr.bf16.mxu1 %v1105_v18  ;;  %757 = vmatpush1.bf16.msra.mxu0 %v1102_v15  ;;  %v1096_v29 = vcombine.low %v359_v21, %v363_v22  ;;  %v368_v18 = vld [vmem:[%s1394_s28 + $0x1d0] sm:$0xff] }
  0x44   : > { %v355_v27 = vld [vmem:[%s1394_s28 + $0x168] sm:$0xff]  ;;  %798 = vmatpush1.bf16.msra.mxu1 %v1104_v19  ;;  %758 = vmatprep.subr.bf16.mxu0 %v1095_v20  ;;  %v1087_v30 = vcombine.high %v350_v23, %v354_v25  ;;  %v342_v32 = vld [vmem:[%s1394_s28 + $0x100] sm:$0xff]  ;;  %v1086_v36 = vcombine.low %v350_v23, %v354_v25  ;;  %v372_v19 = vld [vmem:[%s1394_s28 + $0x1f0] sm:$0xff] }
  0x45   : > { %799 = vmatprep.subr.bf16.mxu1 %v1097_v24  ;;  %v1089_v31 = vcombine.high %v351_v26, %v355_v27  ;;  %v346_v33 = vld [vmem:[%s1394_s28 + $0x120] sm:$0xff]  ;;  %v343_v34 = vld [vmem:[%s1394_s28 + $0x108] sm:$0xff]  ;;  %v1088_v37 = vcombine.low %v351_v26, %v355_v27  ;;  %v369_v20 = vld [vmem:[%s1394_s28 + $0x1d8] sm:$0xff]  ;;  %v1107_v24 = vcombine.high %v368_v18, %v372_v19 }
  0x46   : > { %v347_v35 = vld [vmem:[%s1394_s28 + $0x128] sm:$0xff]  ;;  %v1079_v38 = vcombine.high %v342_v32, %v346_v33  ;;  %v334_v40 = vld [vmem:[%s1394_s28 + $0xc0] sm:$0xff]  ;;  %v1078_v44 = vcombine.low %v342_v32, %v346_v33  ;;  %v373_v21 = vld [vmem:[%s1394_s28 + $0x1f8] sm:$0xff] }
  0x47   : > { %759 = vmatpush1.bf16.msra.mxu0 %v1094_v28  ;;  %v1081_v39 = vcombine.high %v343_v34, %v347_v35  ;;  %v338_v41 = vld [vmem:[%s1394_s28 + $0xe0] sm:$0xff]  ;;  %v335_v42 = vld [vmem:[%s1394_s28 + $0xc8] sm:$0xff]  ;;  %v1080_v45 = vcombine.low %v343_v34, %v347_v35  ;;  %v1109_v25 = vcombine.high %v369_v20, %v373_v21  ;;  %v360_v26 = vld [vmem:[%s1394_s28 + $0x190] sm:$0xff] }
  0x48   : > { %800 = vmatpush1.bf16.msra.mxu1 %v1096_v29  ;;  %760 = vmatprep.subr.bf16.mxu0 %v1087_v30  ;;  %v339_v43 = vld [vmem:[%s1394_s28 + $0xe8] sm:$0xff]  ;;  %v1071_v46 = vcombine.high %v334_v40, %v338_v41  ;;  %v326_v48 = vld [vmem:[%s1394_s28 + $0x80] sm:$0xff]  ;;  %v1070_v52 = vcombine.low %v334_v40, %v338_v41  ;;  %v364_v27 = vld [vmem:[%s1394_s28 + $0x1b0] sm:$0xff]  ;;  %v1106_v30 = vcombine.low %v368_v18, %v372_v19 }
  0x49   : > { %801 = vmatprep.subr.bf16.mxu1 %v1089_v31  ;;  %v1073_v47 = vcombine.high %v335_v42, %v339_v43  ;;  %v330_v49 = vld [vmem:[%s1394_s28 + $0xa0] sm:$0xff]  ;;  %v327_v50 = vld [vmem:[%s1394_s28 + $0x88] sm:$0xff]  ;;  %v1072_v53 = vcombine.low %v335_v42, %v339_v43  ;;  %v361_v28 = vld [vmem:[%s1394_s28 + $0x198] sm:$0xff]  ;;  %v1108_v31 = vcombine.low %v369_v20, %v373_v21  ;;  %v1099_v32 = vcombine.high %v360_v26, %v364_v27 }
  0x4a   : > { %v331_v51 = vld [vmem:[%s1394_s28 + $0xa8] sm:$0xff]  ;;  %v1063_v54 = vcombine.high %v326_v48, %v330_v49  ;;  %v318_v56 = vld [vmem:[%s1394_s28 + $0x40] sm:$0xff]  ;;  %v1062_v60 = vcombine.low %v326_v48, %v330_v49  ;;  %v365_v29 = vld [vmem:[%s1394_s28 + $0x1b8] sm:$0xff] }
  0x4b   : > { %761 = vmatpush1.bf16.msra.mxu0 %v1086_v36  ;;  %v1065_v55 = vcombine.high %v327_v50, %v331_v51  ;;  %v322_v57 = vld [vmem:[%s1394_s28 + $0x60] sm:$0xff]  ;;  %v319_v58 = vld [vmem:[%s1394_s28 + $0x48] sm:$0xff]  ;;  %v1064_v61 = vcombine.low %v327_v50, %v331_v51  ;;  %v1101_v33 = vcombine.high %v361_v28, %v365_v29  ;;  %v352_v34 = vld [vmem:[%s1394_s28 + $0x150] sm:$0xff] }
  0x4c   : > { %802 = vmatpush1.bf16.msra.mxu1 %v1088_v37  ;;  %762 = vmatprep.subr.bf16.mxu0 %v1079_v38  ;;  %v323_v59 = vld [vmem:[%s1394_s28 + $0x68] sm:$0xff]  ;;  %v1055_v62 = vcombine.high %v318_v56, %v322_v57  ;;  %v310_v0 = vld [vmem:[%s1394_s28] sm:$0xff]  ;;  %v1054_v4 = vcombine.low %v318_v56, %v322_v57  ;;  %v356_v35 = vld [vmem:[%s1394_s28 + $0x170] sm:$0xff]  ;;  %v1098_v38 = vcombine.low %v360_v26, %v364_v27 }
  0x4d   : > { %803 = vmatprep.subr.bf16.mxu1 %v1081_v39  ;;  %v1057_v63 = vcombine.high %v319_v58, %v323_v59  ;;  %v314_v1 = vld [vmem:[%s1394_s28 + $0x20] sm:$0xff]  ;;  %v311_v2 = vld [vmem:[%s1394_s28 + $0x8] sm:$0xff]  ;;  %v1056_v5 = vcombine.low %v319_v58, %v323_v59  ;;  %v353_v36 = vld [vmem:[%s1394_s28 + $0x158] sm:$0xff]  ;;  %v1100_v39 = vcombine.low %v361_v28, %v365_v29  ;;  %v1091_v40 = vcombine.high %v352_v34, %v356_v35 }
  0x4e   : > { %v315_v3 = vld [vmem:[%s1394_s28 + $0x28] sm:$0xff]  ;;  %v1047_v6 = vcombine.high %v310_v0, %v314_v1  ;;  %v374_v10 = vld [vmem:[%s1394_s28 + $0x200] sm:$0xff]  ;;  %v1046_v14 = vcombine.low %v310_v0, %v314_v1  ;;  %v357_v37 = vld [vmem:[%s1394_s28 + $0x178] sm:$0xff]  ;;  %v1180_v29 = vmov 1983009808  }
  0x4f   : > { %763 = vmatpush1.bf16.msra.mxu0 %v1078_v44  ;;  %v1049_v7 = vcombine.high %v311_v2, %v315_v3  ;;  %v378_v11 = vld [vmem:[%s1394_s28 + $0x220] sm:$0xff]  ;;  %v375_v12 = vld [vmem:[%s1394_s28 + $0x208] sm:$0xff]  ;;  %v1048_v15 = vcombine.low %v311_v2, %v315_v3  ;;  %v1093_v41 = vcombine.high %v353_v36, %v357_v37  ;;  %v344_v42 = vld [vmem:[%s1394_s28 + $0x110] sm:$0xff] }
  0x50   : > { %804 = vmatpush1.bf16.msra.mxu1 %v1080_v45  ;;  %764 = vmatprep.subr.bf16.mxu0 %v1071_v46  ;;  %v379_v13 = vld [vmem:[%s1394_s28 + $0x228] sm:$0xff]  ;;  %v1111_v16 = vcombine.high %v374_v10, %v378_v11  ;;  %v1110_v22 = vcombine.low %v374_v10, %v378_v11  ;;  %v348_v43 = vld [vmem:[%s1394_s28 + $0x130] sm:$0xff]  ;;  %v345_v44 = vld [vmem:[%s1394_s28 + $0x118] sm:$0xff]  ;;  %v1090_v46 = vcombine.low %v352_v34, %v356_v35 }
  0x51   : > { %805 = vmatprep.subr.bf16.mxu1 %v1073_v47  ;;  %v1113_v17 = vcombine.high %v375_v12, %v379_v13  ;;  %v1112_v23 = vcombine.low %v375_v12, %v379_v13  ;;  %v349_v45 = vld [vmem:[%s1394_s28 + $0x138] sm:$0xff]  ;;  %v1092_v47 = vcombine.low %v353_v36, %v357_v37  ;;  %v1083_v48 = vcombine.high %v344_v42, %v348_v43  ;;  %v336_v50 = vld [vmem:[%s1394_s28 + $0xd0] sm:$0xff] }
  0x52   : > { %v1085_v49 = vcombine.high %v345_v44, %v349_v45  ;;  %v340_v51 = vld [vmem:[%s1394_s28 + $0xf0] sm:$0xff]  ;;  %v329_v59 = vld [vmem:[%s1394_s28 + $0x98] sm:$0xff] }
  0x53   : > { %765 = vmatpush1.bf16.msra.mxu0 %v1070_v52  ;;  %v337_v52 = vld [vmem:[%s1394_s28 + $0xd8] sm:$0xff]  ;;  %v328_v57 = vld [vmem:[%s1394_s28 + $0x90] sm:$0xff] }
  0x54   : > { %806 = vmatpush1.bf16.msra.mxu1 %v1072_v53  ;;  %766 = vmatprep.subr.bf16.mxu0 %v1063_v54  ;;  %v341_v53 = vld [vmem:[%s1394_s28 + $0xf8] sm:$0xff]  ;;  %v1082_v54 = vcombine.low %v344_v42, %v348_v43  ;;  %v332_v58 = vld [vmem:[%s1394_s28 + $0xb0] sm:$0xff] }
  0x55   : > { %807 = vmatprep.subr.bf16.mxu1 %v1065_v55  ;;  %v1075_v55 = vcombine.high %v336_v50, %v340_v51  ;;  %v1077_v56 = vcombine.high %v337_v52, %v341_v53  ;;  %v320_v1 = vld [vmem:[%s1394_s28 + $0x50] sm:$0xff]  ;;  %v321_v3 = vld [vmem:[%s1394_s28 + $0x58] sm:$0xff] }
  0x56   : > { %v324_v2 = vld [vmem:[%s1394_s28 + $0x70] sm:$0xff]  ;;  %v313_v13 = vld [vmem:[%s1394_s28 + $0x18] sm:$0xff] }
  0x57   : > { %767 = vmatpush1.bf16.msra.mxu0 %v1062_v60  ;;  %v333_v60 = vld [vmem:[%s1394_s28 + $0xb8] sm:$0xff]  ;;  %v312_v11 = vld [vmem:[%s1394_s28 + $0x10] sm:$0xff] }
  0x58   : > { %808 = vmatpush1.bf16.msra.mxu1 %v1064_v61  ;;  %768 = vmatprep.subr.bf16.mxu0 %v1055_v62  ;;  %v1074_v61 = vcombine.low %v336_v50, %v340_v51  ;;  %v1076_v62 = vcombine.low %v337_v52, %v341_v53  ;;  %v1069_v0 = vcombine.high %v329_v59, %v333_v60  ;;  %v316_v12 = vld [vmem:[%s1394_s28 + $0x30] sm:$0xff]  ;;  %v377_v21 = vld [vmem:[%s1394_s28 + $0x218] sm:$0xff] }
  0x59   : > { %809 = vmatprep.subr.bf16.mxu1 %v1057_v63  ;;  %v1067_v63 = vcombine.high %v328_v57, %v332_v58  ;;  %v376_v19 = vld [vmem:[%s1394_s28 + $0x210] sm:$0xff] }
  0x5a   : > { %v380_v20 = vld [vmem:[%s1394_s28 + $0x230] sm:$0xff] }
  0x5b   : > { %769 = vmatpush1.bf16.msra.mxu0 %v1054_v4  ;;  %v325_v4 = vld [vmem:[%s1394_s28 + $0x78] sm:$0xff]  ;;  %v1114_v27 = vcombine.low %v376_v19, %v380_v20 }
  0x5c   : > { %810 = vmatpush1.bf16.msra.mxu1 %v1056_v5  ;;  %770 = vmatprep.subr.bf16.mxu0 %v1047_v6  ;;  %v1066_v5 = vcombine.low %v328_v57, %v332_v58  ;;  %v1068_v6 = vcombine.low %v329_v59, %v333_v60  ;;  %v1061_v10 = vcombine.high %v321_v3, %v325_v4 }
  0x5d   : > { %811 = vmatprep.subr.bf16.mxu1 %v1049_v7  ;;  %v1059_v7 = vcombine.high %v320_v1, %v324_v2 }
  0x5f   : > { %771 = vmatpush1.bf16.msra.mxu0 %v1046_v14  ;;  %v317_v14 = vld [vmem:[%s1394_s28 + $0x38] sm:$0xff] }
  0x60   : > { %812 = vmatpush1.bf16.msra.mxu1 %v1048_v15  ;;  %786 = vmatprep.subr.bf16.mxu0 %v1111_v16  ;;  %v1058_v15 = vcombine.low %v320_v1, %v324_v2  ;;  %v1060_v16 = vcombine.low %v321_v3, %v325_v4  ;;  %v1053_v18 = vcombine.high %v313_v13, %v317_v14 }
  0x61   : > { %827 = vmatprep.subr.bf16.mxu1 %v1113_v17  ;;  %v1051_v17 = vcombine.high %v312_v11, %v316_v12 }
  0x63   : > { %787 = vmatpush2.bf16.msra.mxu0 %v1110_v22  ;;  %v381_v22 = vld [vmem:[%s1394_s28 + $0x238] sm:$0xff] }
  0x64   : > { %828 = vmatpush2.bf16.msra.mxu1 %v1112_v23  ;;  %838 = vmatprep.subr.bf16.mxu0 %v1107_v24  ;;  %v1050_v23 = vcombine.low %v312_v11, %v316_v12  ;;  %v1052_v24 = vcombine.low %v313_v13, %v317_v14  ;;  %v1117_v26 = vcombine.high %v377_v21, %v381_v22 }
  0x65   : > { %879 = vmatprep.subr.bf16.mxu1 %v1109_v25  ;;  %v1115_v25 = vcombine.high %v376_v19, %v380_v20  ;;  %v1116_v28 = vcombine.low %v377_v21, %v381_v22 }
  0x66   : > { %789 = vmatmul.mubr.bf16.vlgmr.msra.gmra.mxu0 %v1384_v8 }
  0x67   : > { %830 = vmatmul.mubr.bf16.vlgmr.msra.gmra.mxu1 %v1384_v8  ;;  %839 = vmatpush1.bf16.msra.mxu0 %v1106_v30  ;;  %v939_v30 = vunpack.c.l.s4 %v1180_v29 }
  0x68   : > { %880 = vmatpush1.bf16.msra.mxu1 %v1108_v31  ;;  %840 = vmatprep.subr.bf16.mxu0 %v1099_v32  ;;  %v941_v31 = vlaneseq }
  0x69   : > { %881 = vmatprep.subr.bf16.mxu1 %v1101_v33  ;;  %1120 = vmatprep.mubr.msk.bf16.mxu0 %vm752_vm0, %v1388_v9  ;;  %v940_v32 = vunpack.c.0.s8 %v939_v30 }
  0x6a   : > { %1121 = vmatprep.mubr.msk.bf16.mxu1 %vm752_vm0, %v1388_v9  ;;  %v1084_v9 = vcombine.low %v345_v44, %v349_v45  ;;  %v942_v33 = vshrl.u32 %v941_v31, 7 }
  0x6b   : > { %841 = vmatpush1.bf16.msra.mxu0 %v1098_v38 }
  0x6c   : > { %882 = vmatpush1.bf16.msra.mxu1 %v1100_v39  ;;  %842 = vmatprep.subr.bf16.mxu0 %v1091_v40  ;;  %v943_v36 = vsub.s32 %v940_v32, %v942_v33 }
  0x6d   : > { %883 = vmatprep.subr.bf16.mxu1 %v1093_v41 }
  0x6f   : > { %843 = vmatpush1.bf16.msra.mxu0 %v1090_v46 }
  0x70   : > { %884 = vmatpush1.bf16.msra.mxu1 %v1092_v47  ;;  %844 = vmatprep.subr.bf16.mxu0 %v1083_v48 }
  0x71   : > { %885 = vmatprep.subr.bf16.mxu1 %v1085_v49 }
  0x73   : > { %845 = vmatpush1.bf16.msra.mxu0 %v1082_v54 }
  0x74   : > { %886 = vmatpush1.bf16.msra.mxu1 %v1084_v9  ;;  %846 = vmatprep.subr.bf16.mxu0 %v1075_v55 }
  0x75   : > { %887 = vmatprep.subr.bf16.mxu1 %v1077_v56 }
  0x77   : > { %847 = vmatpush1.bf16.msra.mxu0 %v1074_v61 }
  0x78   : > { %888 = vmatpush1.bf16.msra.mxu1 %v1076_v62  ;;  %848 = vmatprep.subr.bf16.mxu0 %v1067_v63 }
  0x79   : > { %889 = vmatprep.subr.bf16.mxu1 %v1069_v0 }
  0x7b   : > { %849 = vmatpush1.bf16.msra.mxu0 %v1066_v5 }
  0x7c   : > { %890 = vmatpush1.bf16.msra.mxu1 %v1068_v6  ;;  %850 = vmatprep.subr.bf16.mxu0 %v1059_v7 }
  0x7d   : > { %891 = vmatprep.subr.bf16.mxu1 %v1061_v10 }
  0x7f   : > { %851 = vmatpush1.bf16.msra.mxu0 %v1058_v15 }
  0x80   : > { %892 = vmatpush1.bf16.msra.mxu1 %v1060_v16  ;;  %852 = vmatprep.subr.bf16.mxu0 %v1051_v17 }
  0x81   : > { %893 = vmatprep.subr.bf16.mxu1 %v1053_v18 }
  0x83   : > { %853 = vmatpush1.bf16.msra.mxu0 %v1050_v23 }
  0x84   : > { %894 = vmatpush1.bf16.msra.mxu1 %v1052_v24  ;;  %868 = vmatprep.subr.bf16.mxu0 %v1115_v25 }
  0x85   : > { %909 = vmatprep.subr.bf16.mxu1 %v1117_v26 }
  0x87   : > { %869 = vmatpush2.bf16.msra.mxu0 %v1114_v27 }
  0x88   : > { %910 = vmatpush2.bf16.msra.mxu1 %v1116_v28 }
  0x8a   : > { %871 = vmatmul.mubr.bf16.vlgmr.msra.gmra.mxu0 %v1384_v8 }
  0x8b   : > { %912 = vmatmul.mubr.bf16.vlgmr.msra.gmra.mxu1 %v1384_v8 }
 0x126   : > { %v790_v34 = vpop.f32.mrf.mxu0 }
 0x127   : > { %v831_v35 = vpop.f32.mrf.mxu1 }
 0x128   : > { %v792_v37 = vpop.f32.mrf.mxu0 }
 0x129   : > { %v1122_v38 = vpack.c.bf16 %v792_v37, %v790_v34  ;;  %v833_v39 = vpop.f32.mrf.mxu1 }
 0x12a   : > { %v1123_v40 = vpack.c.bf16 %v833_v39, %v831_v35  ;;  %v794_v41 = vpop.f32.mrf.mxu0 }
 0x12b   : > { %v944_v42 = vrot.slane %v1122_v38, %v943_v36  ;;  %v835_v8 = vpop.f32.mrf.mxu1 }
 0x12c   : > { %v951_v43 = vrot.slane %v1123_v40, %v943_v36  ;;  %v795_v44 = vpop.f32.mrf.mxu0 }
 0x12d   : > { %v836_v45 = vpop.f32.mrf.mxu1 }
 0x12e   : > { %v952_v46 = vcombine.low %v944_v42, %v951_v43 }
 0x130   : > { %972 = vst [vmem:[%s306_s5] sm:$0xff] %v952_v46 }
 0x14a   : > { %v872_v47 = vpop.f32.mrf.mxu0 }
 0x14b   : > { %v913_v48 = vpop.f32.mrf.mxu1 }
 0x14c   : > { %v874_v49 = vpop.f32.mrf.mxu0 }
 0x14d   : > { %v1124_v50 = vpack.c.bf16 %v874_v49, %v872_v47  ;;  %v915_v51 = vpop.f32.mrf.mxu1 }
 0x14e   : > { %v1125_v52 = vpack.c.bf16 %v915_v51, %v913_v48  ;;  %v876_v53 = vpop.f32.mrf.mxu0 }
 0x14f   : > { %v961_v54 = vrot.slane %v1124_v50, %v943_v36  ;;  %v917_v9 = vpop.f32.mrf.mxu1 }
 0x150   : > { %v968_v55 = vrot.slane %v1125_v52, %v943_v36  ;;  %v877_v56 = vpop.f32.mrf.mxu0 }
 0x151   : > { %v918_v57 = vpop.f32.mrf.mxu1 }
 0x152   : > { %v969_v58 = vcombine.low %v961_v54, %v968_v55 }
 0x154   : > { %973 = vst [vmem:[%s306_s5 + $0x8] sm:$0xff] %v969_v58 }
 0x155 PF: > { %p9_p9 = scmp.ge.s32.totalorder %s1213_s13, 4   ;;  %s1494_s9 = smov %s1174_s10 }
 0x156   : > { %s1495_s10 = smov %s1222_s16  ;;  %s1496_s11 = smov %s1213_s13 }
 0x157   :  { %11 = sbr.rel (!%p9_p9) target bundleno = 2 (0x2), region = 86 }

// kernel: condensenet_forward.17
= control target key start
LH: loop header
LB: loop body
LE: loop exit
PB: predicated region body
PF: predicated region fallthrough
CT: control target
= control target key end

     0   :  { %s761_s12 = smov 0   ;;  %s763_s13 = smov 0   ;;  %s860_s0 = inlined_call_operand.vmem [shape: bf16[12,2048], index: 0, kind: input, shape index: {}]   ;;  %s861_s1 = inlined_call_operand.vmem [shape: bf16[16,12], index: 1, kind: input, shape index: {}]   ;;  %s862_s2 = inlined_call_operand.vmem [shape: f32[16,1], index: 2, kind: input, shape index: {}]   ;;  %s863_s3 = inlined_call_operand.vmem [shape: bf16[16,2048], index: 3, kind: output, shape index: {}]  }
   0x1   :  { %s765_s14 = smov 0  }
   0x2 LB: > { %s639_s15 = sadd.s32 4294967295, %s738_s14   ;;  %s778_s16 = sadd.s32 1, %s738_s14   ;;  %s738_s14 = sphi %s765_s14, %s867_s14   ;;  %s734_s13 = sphi %s763_s13, %s866_s13   ;;  %s730_s12 = sphi %s761_s12, %s865_s12  }
   0x3   : > { %s17_s17 = ssub.s32 %s738_s14, %s778_s16  ;;  %s20_s18 = sadd.s32 1, %s734_s13 }
   0x4   : > { %p18_p0 = scmp.eq.s32.totalorder %s17_s17, 0  ;;  %p27_p1 = scmp.ne.s32.totalorder %s734_s13, %s730_s12 }
   0x5   : > { %p28_p2 = scmp.eq.s32.totalorder %s738_s14, 0  ;;  %p99_p3 = scmp.eq.s32.totalorder %s639_s15, 1 }
   0x6   : > { %s789_s19 = scalar_select %p18_p0, %s734_s13, %s20_s18  }
   0x7   : > { %p29_p4 = por %p28_p2, %p27_p1  ;;  %p791_p5 = por %p99_p3, %p27_p1 }
   0x8   : > { %p642_p6 = scmp.ge.s32.totalorder %s738_s14, 2 }
   0xa   : > { %127 = sbr.rel (%p642_p6) target bundleno = 23 (0x17), region = 24 }
   0xf   : > { %130 = sbr.rel (!%p29_p4) target bundleno = 23 (0x17), region = 28  ;;  %s132_s21 = sand.u32 (%p29_p4), 1, %s734_s13  }
  0x10   : > { %s679_s22 = sshll.u32 (%p29_p4), %s738_s14, 5  ;;  %s643_s23 = sshll.u32 (%p29_p4), %s132_s21, 6 }
  0x11   : > { %s137_s26 = scalar_lea.vmem (%p29_p4), %s860_s0, %s679_s22  ;;  %s134_s27 = scalar_lea.vmem (%p29_p4), [#allocation2], %s643_s23 }
  0x12   : > { %v150_v0 = vld [vmem:[%s137_s26] sm:$0xff] (%p29_p4)  ;;  %v152_v1 = vld [vmem:[%s137_s26 + $0x8] sm:$0xff] (%p29_p4)  ;;  %v154_v2 = vld [vmem:[%s137_s26 + $0x10] sm:$0xff] (%p29_p4) }
  0x13   : > { %151 = vst [vmem:[%s134_s27] sm:$0xff] (%p29_p4), %v150_v0  ;;  %153 = vst [vmem:[%s134_s27 + $0x8] sm:$0xff] (%p29_p4), %v152_v1  ;;  %v156_v3 = vld [vmem:[%s137_s26 + $0x18] sm:$0xff] (%p29_p4)  ;;  %v158_v4 = vld [vmem:[%s137_s26 + $0x40] sm:$0xff] (%p29_p4) }
  0x14   : > { %155 = vst [vmem:[%s134_s27 + $0x10] sm:$0xff] %v154_v2  ;;  %v160_v5 = vld [vmem:[%s137_s26 + $0x48] sm:$0xff]  ;;  %157 = vst [vmem:[%s134_s27 + $0x18] sm:$0xff] %v156_v3  ;;  %v162_v6 = vld [vmem:[%s137_s26 + $0x50] sm:$0xff] }
  0x15   : > { %159 = vst [vmem:[%s134_s27 + $0x20] sm:$0xff] %v158_v4  ;;  %161 = vst [vmem:[%s134_s27 + $0x28] sm:$0xff] %v160_v5  ;;  %v164_v7 = vld [vmem:[%s137_s26 + $0x58] sm:$0xff] }
  0x16   : > { %163 = vst [vmem:[%s134_s27 + $0x30] sm:$0xff] %v162_v6  ;;  %165 = vst [vmem:[%s134_s27 + $0x38] sm:$0xff] %v164_v7 }
  0x17 PF: > { %p646_p7 = scmp.ge.s32.totalorder %s738_s14, 1  ;;  %p170_p8 = scmp.lt.s32.totalorder %s738_s14, 3 }
  0x19   : > { %p171_p9 = pnand %p646_p7, %p170_p8 }
  0x1a   : > { %s177_s28 = sand.u32 (!%p171_p9), 1, %s730_s12  }
  0x1b   : > { %174 = sbr.rel (%p171_p9) target bundleno = 265 (0x109), region = 51  ;;  %s804_s29 = sshll.u32 (!%p171_p9), %s177_s28, 6 }
  0x1c   : > { %s179_s7 = scalar_lea.vmem (!%p171_p9), [#allocation2], %s804_s29  ;;  %s825_s10 = scalar_lea.vmem (!%p171_p9), [#allocation3], %s804_s29 }
  0x20   : > { %v740_v8 = vmov 0   ;;  %v220_v9 = vld [vmem:[%s862_s2] sm:$0xff]  ;;  %v221_v10 = vld [vmem:[%s862_s2 + $0x8] sm:$0xff]  ;;  %v202_v11 = vld [vmem:[%s179_s7] sm:$0xff]  ;;  %vm273_vm0 = vcmask 1045504   ;;  %vm269_vm1 = vcmask 97280  }
  0x21   : > { %330 = vmatprep.mubr.bf16.mxu0 %v740_v8  ;;  %373 = vmatprep.mubr.bf16.mxu1 %v740_v8  ;;  %v206_v12 = vld [vmem:[%s179_s7 + $0x20] sm:$0x33]  ;;  %v203_v13 = vld [vmem:[%s179_s7 + $0x8] sm:$0xff]  ;;  %v210_v14 = vmax.bf16 %v740_v8, %v202_v11  ;;  %v204_v18 = vld [vmem:[%s179_s7 + $0x10] sm:$0xff]  ;;  %s688_s11 = sshll.u32 (%p791_p5), %s639_s15, 5 }
  0x22   : > { %714 = vset.pattern.permute.xlu0 %v740_v8  ;;  %v214_v15 = vmax.bf16 %v740_v8, %v206_v12  ;;  %v207_v16 = vld [vmem:[%s179_s7 + $0x28] sm:$0x33]  ;;  %v211_v17 = vmax.bf16 %v740_v8, %v203_v13  ;;  %v208_v19 = vld [vmem:[%s179_s7 + $0x30] sm:$0x33]  ;;  %v212_v21 = vmax.bf16 %v740_v8, %v204_v18  ;;  %v205_v23 = vld [vmem:[%s179_s7 + $0x18] sm:$0xff]  ;;  %s551_s18 = scalar_lea.vmem (%p791_p5), %s863_s3, %s688_s11 }
  0x23   : > { %224 = vperm.xlu0 %714, %v220_v9   ;;  %v215_v20 = vmax.bf16 %v740_v8, %v207_v16  ;;  %v216_v22 = vmax.bf16 %v740_v8, %v208_v19  ;;  %v209_v24 = vld [vmem:[%s179_s7 + $0x38] sm:$0x33]  ;;  %v213_v27 = vmax.bf16 %v740_v8, %v205_v23  ;;  %v715_v34 = vld [vmem:[%s861_s1] sm:$0xff]  }
  0x24   : > { %v651_v25 = vcombine.high %v210_v14, %v214_v15  ;;  %v650_v26 = vcombine.low %v210_v14, %v214_v15  ;;  %v217_v28 = vmax.bf16 %v740_v8, %v209_v24 }
  0x25   : > { %v653_v29 = vcombine.high %v211_v17, %v215_v20  ;;  %v652_v30 = vcombine.low %v211_v17, %v215_v20  ;;  %v655_v31 = vcombine.high %v212_v21, %v216_v22  ;;  %v654_v32 = vcombine.low %v212_v21, %v216_v22 }
  0x26   : > { %658 = vmatprep.subr.msk.bf16.mxu0 %vm273_vm0, %v651_v25  ;;  %v275_v33 = vsel %vm273_vm0, %v650_v26, 0  ;;  %v657_v35 = vcombine.high %v213_v27, %v217_v28  ;;  %v656_v36 = vcombine.low %v213_v27, %v217_v28 }
  0x27   : > { %229 = vperm.xlu0 %714, %v221_v10   ;;  %660 = vmatprep.subr.msk.bf16.mxu1 %vm273_vm0, %v653_v29  ;;  %v281_v37 = vsel %vm273_vm0, %v652_v30, 0  ;;  %v287_v38 = vsel %vm273_vm0, %v654_v32, 0 }
  0x28   : > { %313 = vmatpush1.bf16.msra.mxu0 %v275_v33  ;;  %356 = vmatpush1.bf16.msra.mxu1 %v281_v37  ;;  %v293_v39 = vsel %vm273_vm0, %v656_v36, 0 }
  0x29   : > { %662 = vmatprep.subr.msk.bf16.mxu0 %vm273_vm0, %v655_v31  ;;  %664 = vmatprep.subr.msk.bf16.mxu1 %vm273_vm0, %v657_v35 }
  0x2b   : > { %659 = vmatmul.mubr.msk.bf16.vlgmr.msra.gmra.mxu0 %vm269_vm1, %v715_v34  ;;  %661 = vmatmul.mubr.msk.bf16.vlgmr.msra.gmra.mxu1 %vm269_vm1, %v715_v34 }
  0x2c   : > { %399 = vmatpush1.bf16.msra.mxu0 %v287_v38  ;;  %442 = vmatpush1.bf16.msra.mxu1 %v293_v39 }
  0x2d   : > { %416 = vmatprep.mubr.bf16.mxu0 %v740_v8  ;;  %459 = vmatprep.mubr.bf16.mxu1 %v740_v8 }
  0x33   : > { %663 = vmatmul.mubr.msk.bf16.vlgmr.msra.gmra.mxu0 %vm269_vm1, %v715_v34  ;;  %665 = vmatmul.mubr.msk.bf16.vlgmr.msra.gmra.mxu1 %vm269_vm1, %v715_v34 }
  0x9e   : > { %v225_v40 = vpop.permute.xlu0 %224 }
  0xa2   : > { %v230_v46 = vpop.permute.xlu0 %229 }
  0xeb   : > { %v332_v41 = vpop.f32.mrf.mxu0  ;;  %v375_v43 = vpop.f32.mrf.mxu1 }
  0xec   : > { %v333_v42 = vadd.f32 %v332_v41, %v225_v40  ;;  %v376_v44 = vadd.f32 %v375_v43, %v225_v40 }
  0xed   : > { %v334_v45 = vpop.f32.mrf.mxu0  ;;  %v377_v48 = vpop.f32.mrf.mxu1 }
  0xee   : > { %v335_v47 = vadd.f32 %v334_v45, %v225_v40  ;;  %v378_v49 = vadd.f32 %v377_v48, %v225_v40  ;;  %v470_v51 = vmax.f32 %v333_v42, 0.0  ;;  %v472_v55 = vmax.f32 %v376_v44, 0.0 }
  0xef   : > { %v336_v50 = vpop.f32.mrf.mxu0  ;;  %v379_v54 = vpop.f32.mrf.mxu1 }
  0xf0   : > { %v471_v52 = vmax.f32 %v335_v47, 0.0  ;;  %v337_v53 = vadd.f32 %v336_v50, %v230_v46  ;;  %v473_v56 = vmax.f32 %v378_v49, 0.0  ;;  %v380_v57 = vadd.f32 %v379_v54, %v230_v46 }
  0xf1   : > { %v338_v58 = vpop.f32.mrf.mxu0  ;;  %v381_v61 = vpop.f32.mrf.mxu1 }
  0xf2   : > { %v680_v59 = vpack.c.bf16 %v471_v52, %v470_v51  ;;  %v339_v60 = vadd.f32 %v338_v58, %v230_v46  ;;  %v681_v62 = vpack.c.bf16 %v473_v56, %v472_v55  ;;  %v382_v63 = vadd.f32 %v381_v61, %v230_v46 }
  0xf3   : > { %v418_v0 = vpop.f32.mrf.mxu0  ;;  %v478_v1 = vmax.f32 %v337_v53, 0.0  ;;  %v461_v4 = vpop.f32.mrf.mxu1  ;;  %v480_v5 = vmax.f32 %v380_v57, 0.0 }
  0xf4   : > { %534 = vst [vmem:[%s825_s10] sm:$0xff] %v680_v59  ;;  %v479_v2 = vmax.f32 %v339_v60, 0.0  ;;  %v419_v3 = vadd.f32 %v418_v0, %v225_v40  ;;  %535 = vst [vmem:[%s825_s10 + $0x8] sm:$0xff] %v681_v62  ;;  %v481_v6 = vmax.f32 %v382_v63, 0.0  ;;  %v462_v7 = vadd.f32 %v461_v4, %v225_v40 }
  0xf5   : > { %v420_v8 = vpop.f32.mrf.mxu0  ;;  %v463_v11 = vpop.f32.mrf.mxu1 }
  0xf6   : > { %v684_v9 = vpack.c.bf16 %v479_v2, %v478_v1  ;;  %v421_v10 = vadd.f32 %v420_v8, %v225_v40  ;;  %v685_v12 = vpack.c.bf16 %v481_v6, %v480_v5  ;;  %v464_v13 = vadd.f32 %v463_v11, %v225_v40 }
  0xf7   : > { %v422_v14 = vpop.f32.mrf.mxu0  ;;  %v474_v15 = vmax.f32 %v419_v3, 0.0  ;;  %v465_v18 = vpop.f32.mrf.mxu1  ;;  %v476_v19 = vmax.f32 %v462_v7, 0.0 }
  0xf8   : > { %538 = vst [vmem:[%s825_s10 + $0x20] sm:$0xff] %v684_v9  ;;  %v475_v16 = vmax.f32 %v421_v10, 0.0  ;;  %v423_v17 = vadd.f32 %v422_v14, %v230_v46  ;;  %539 = vst [vmem:[%s825_s10 + $0x28] sm:$0xff] %v685_v12  ;;  %v477_v20 = vmax.f32 %v464_v13, 0.0  ;;  %v466_v21 = vadd.f32 %v465_v18, %v230_v46 }
  0xf9   : > { %v424_v22 = vpop.f32.mrf.mxu0  ;;  %v467_v25 = vpop.f32.mrf.mxu1 }
  0xfa   : > { %v682_v23 = vpack.c.bf16 %v475_v16, %v474_v15  ;;  %v425_v24 = vadd.f32 %v424_v22, %v230_v46  ;;  %v683_v26 = vpack.c.bf16 %v477_v20, %v476_v19  ;;  %v468_v27 = vadd.f32 %v467_v25, %v230_v46 }
  0xfb   : > { %v482_v28 = vmax.f32 %v423_v17, 0.0  ;;  %v484_v30 = vmax.f32 %v466_v21, 0.0  ;;  %v564_v34 = vld [vmem:[%s825_s10] sm:$0xff] (%p791_p5)  ;;  %v566_v35 = vld [vmem:[%s825_s10 + $0x8] sm:$0xff] (%p791_p5) }
  0xfc   : > { %536 = vst [vmem:[%s825_s10 + $0x10] sm:$0xff] %v682_v23  ;;  %v483_v29 = vmax.f32 %v425_v24, 0.0  ;;  %537 = vst [vmem:[%s825_s10 + $0x18] sm:$0xff] %v683_v26  ;;  %v485_v31 = vmax.f32 %v468_v27, 0.0  ;;  %548 = sbr.rel (!%p791_p5) target bundleno = 265 (0x109), region = 59 }
  0xfd   : > { %565 = vst [vmem:[%s551_s18] sm:$0xff] (%p791_p5), %v564_v34  ;;  %567 = vst [vmem:[%s551_s18 + $0x8] sm:$0xff] (%p791_p5), %v566_v35 }
  0xfe   : > { %v686_v32 = vpack.c.bf16 %v483_v29, %v482_v28  ;;  %v687_v33 = vpack.c.bf16 %v485_v31, %v484_v30 }
  0xff   : > { %v572_v38 = vld [vmem:[%s825_s10 + $0x20] sm:$0xff] (%p791_p5)  ;;  %v574_v39 = vld [vmem:[%s825_s10 + $0x28] sm:$0xff] (%p791_p5) }
 0x100   : > { %540 = vst [vmem:[%s825_s10 + $0x30] sm:$0xff] %v686_v32  ;;  %541 = vst [vmem:[%s825_s10 + $0x38] sm:$0xff] %v687_v33 }
 0x101   : > { %573 = vst [vmem:[%s551_s18 + $0x40] sm:$0xff] %v572_v38  ;;  %575 = vst [vmem:[%s551_s18 + $0x48] sm:$0xff] %v574_v39 }
 0x103   : > { %v568_v36 = vld [vmem:[%s825_s10 + $0x10] sm:$0xff]  ;;  %v570_v37 = vld [vmem:[%s825_s10 + $0x18] sm:$0xff] }
 0x104   : > { %569 = vst [vmem:[%s551_s18 + $0x10] sm:$0xff] %v568_v36  ;;  %571 = vst [vmem:[%s551_s18 + $0x18] sm:$0xff] %v570_v37 }
 0x107   : > { %v576_v40 = vld [vmem:[%s825_s10 + $0x30] sm:$0xff]  ;;  %v578_v41 = vld [vmem:[%s825_s10 + $0x38] sm:$0xff] }
 0x108   : > { %577 = vst [vmem:[%s551_s18 + $0x50] sm:$0xff] %v576_v40  ;;  %579 = vst [vmem:[%s551_s18 + $0x58] sm:$0xff] %v578_v41 }
 0x109 PF: > { %p10_p10 = scmp.ge.s32.totalorder %s778_s16, 4   ;;  %s865_s12 = smov %s734_s13 }
 0x10a   : > { %s866_s13 = smov %s789_s19  ;;  %s867_s14 = smov %s778_s16 }
 0x10b   :  { %12 = sbr.rel (!%p10_p10) target bundleno = 2 (0x2), region = 113 }

// kernel: condensenet_forward.19
= control target key start
LH: loop header
LB: loop body
LE: loop exit
PB: predicated region body
PF: predicated region fallthrough
CT: control target
= control target key end

     0   :  { %v210_v3 = vmov 0   ;;  %vm62_vm0 = vcmask 130048   ;;  %s264_s0 = inlined_call_operand.vmem [shape: bf16[16,512], index: 0, kind: input, shape index: {}]   ;;  %s265_s2 = inlined_call_operand.vmem [shape: f32[16,1], index: 2, kind: input, shape index: {}]   ;;  %s266_s1 = inlined_call_operand.vmem [shape: bf16[16,16], index: 1, kind: input, shape index: {}]   ;;  %s267_s3 = inlined_call_operand.vmem [shape: bf16[16,512], index: 3, kind: output, shape index: {}]  }
   0x1   :  { %v15_v0 = vld [vmem:[%s264_s0] sm:$0xff]  ;;  %v17_v1 = vld [vmem:[%s264_s0 + $0x10] sm:$0xff]  ;;  %v16_v2 = vld [vmem:[%s264_s0 + $0x8] sm:$0xff]  ;;  %98 = vmatprep.mubr.bf16.mxu0 %v210_v3  ;;  %141 = vmatprep.mubr.bf16.mxu1 %v210_v3 }
   0x2   :  { %v19_v4 = vmax.bf16 %v210_v3, %v15_v0  ;;  %v21_v5 = vmax.bf16 %v210_v3, %v17_v1  ;;  %v18_v6 = vld [vmem:[%s264_s0 + $0x18] sm:$0xff]  ;;  %v20_v7 = vmax.bf16 %v210_v3, %v16_v2  ;;  %208 = vset.pattern.permute.xlu0 %v210_v3  ;;  %v25_v9 = vld [vmem:[%s265_s2] sm:$0xff]  ;;  %v26_v14 = vld [vmem:[%s265_s2 + $0x8] sm:$0xff] }
   0x3   :  { %v22_v8 = vmax.bf16 %v210_v3, %v18_v6  ;;  %29 = vperm.xlu0 %208, %v25_v9   ;;  %v209_v15 = vld [vmem:[%s266_s1] sm:$0xff]  }
   0x4   :  { %v194_v10 = vcombine.high %v19_v4, %v21_v5  ;;  %v193_v11 = vcombine.low %v19_v4, %v21_v5 }
   0x5   :  { %v196_v12 = vcombine.high %v20_v7, %v22_v8  ;;  %v195_v13 = vcombine.low %v20_v7, %v22_v8 }
   0x6   :  { %80 = vmatprep.subr.bf16.mxu0 %v194_v10 }
   0x7   :  { %123 = vmatprep.subr.bf16.mxu1 %v196_v12  ;;  %81 = vmatpush1.bf16.msra.mxu0 %v193_v11 }
   0x8   :  { %124 = vmatpush1.bf16.msra.mxu1 %v195_v13  ;;  %34 = vperm.xlu0 %208, %v26_v14  }
   0xa   :  { %197 = vmatmul.mubr.msk.bf16.vlgmr.msra.gmra.mxu0 %vm62_vm0, %v209_v15 }
   0xb   :  { %198 = vmatmul.mubr.msk.bf16.vlgmr.msra.gmra.mxu1 %vm62_vm0, %v209_v15 }
  0x7e   :  { %v30_v16 = vpop.permute.xlu0 %29 }
  0x83   :  { %v35_v24 = vpop.permute.xlu0 %34 }
  0xca   :  { %v100_v17 = vpop.f32.mrf.mxu0 }
  0xcb   :  { %v101_v18 = vadd.f32 %v100_v17, %v30_v16  ;;  %v143_v19 = vpop.f32.mrf.mxu1 }
  0xcc   :  { %v144_v20 = vadd.f32 %v143_v19, %v30_v16  ;;  %v102_v21 = vpop.f32.mrf.mxu0 }
  0xcd   :  { %v103_v22 = vadd.f32 %v102_v21, %v30_v16  ;;  %v145_v23 = vpop.f32.mrf.mxu1  ;;  %v152_v27 = vmax.f32 %v101_v18, 0.0 }
  0xce   :  { %v146_v25 = vadd.f32 %v145_v23, %v30_v16  ;;  %v104_v26 = vpop.f32.mrf.mxu0  ;;  %v154_v31 = vmax.f32 %v144_v20, 0.0 }
  0xcf   :  { %v153_v28 = vmax.f32 %v103_v22, 0.0  ;;  %v105_v29 = vadd.f32 %v104_v26, %v35_v24  ;;  %v147_v30 = vpop.f32.mrf.mxu1 }
  0xd0   :  { %v155_v32 = vmax.f32 %v146_v25, 0.0  ;;  %v148_v33 = vadd.f32 %v147_v30, %v35_v24  ;;  %v106_v34 = vpop.f32.mrf.mxu0 }
  0xd1   :  { %v203_v35 = vpack.c.bf16 %v153_v28, %v152_v27  ;;  %v107_v36 = vadd.f32 %v106_v34, %v35_v24  ;;  %v149_v37 = vpop.f32.mrf.mxu1  ;;  %v156_v40 = vmax.f32 %v105_v29, 0.0 }
  0xd2   :  { %v204_v38 = vpack.c.bf16 %v155_v32, %v154_v31  ;;  %v150_v39 = vadd.f32 %v149_v37, %v35_v24  ;;  %v158_v42 = vmax.f32 %v148_v33, 0.0 }
  0xd3   :  { %184 = vst [vmem:[%s267_s3] sm:$0xff] %v203_v35  ;;  %v157_v41 = vmax.f32 %v107_v36, 0.0 }
  0xd4   :  { %185 = vst [vmem:[%s267_s3 + $0x8] sm:$0xff] %v204_v38  ;;  %v159_v43 = vmax.f32 %v150_v39, 0.0 }
  0xd5   :  { %v205_v44 = vpack.c.bf16 %v157_v41, %v156_v40 }
  0xd6   :  { %v206_v45 = vpack.c.bf16 %v159_v43, %v158_v42 }
  0xd7   :  { %186 = vst [vmem:[%s267_s3 + $0x10] sm:$0xff] %v205_v44 }
  0xd8   :  { %187 = vst [vmem:[%s267_s3 + $0x18] sm:$0xff] %v206_v45 }

// kernel: condensenet_forward.20
= control target key start
LH: loop header
LB: loop body
LE: loop exit
PB: predicated region body
PF: predicated region fallthrough
CT: control target
= control target key end

     0   :  { %vm239_vm0 = vcmask 130048   ;;  %v452_v38 = vmov 1983009808   ;;  %v338_v40 = vlaneseq  ;;  %s582_s0 = inlined_call_operand.vmem [shape: bf16[144,512], index: 0, kind: input, shape index: {}]   ;;  %s583_s1 = inlined_call_operand.vmem [shape: bf16[4,144], index: 1, kind: input, shape index: {}]   ;;  %s584_s2 = inlined_call_operand.vmem [shape: bf16[4,512], index: 2, kind: output, shape index: {}]  }
   0x1   :  { %v398_v0 = vld [vmem:[%s582_s0 + $0xe4] ss:$16 sps:$4 sm:$0xff]   ;;  %v400_v1 = vld [vmem:[%s582_s0 + $0xec] ss:$16 sps:$4 sm:$0xff]   ;;  %v402_v2 = vld [vmem:[%s582_s0 + $0xe0] ss:$16 sps:$4 sm:$0xff]   ;;  %v336_v39 = vunpack.c.l.s4 %v452_v38 }
   0x2   :  { %243 = vmatprep.subr.bf16.mxu0 %v398_v0  ;;  %v403_v3 = vld [vmem:[%s582_s0 + $0xe8] ss:$16 sps:$4 sm:$0xff]   ;;  %284 = vmatprep.subr.bf16.mxu1 %v400_v1  ;;  %v404_v4 = vld [vmem:[%s582_s0 + $0xc4] ss:$16 sps:$4 sm:$0xff]   ;;  %v406_v5 = vld [vmem:[%s582_s0 + $0xcc] ss:$16 sps:$4 sm:$0xff]  }
   0x3   :  { %244 = vmatpush1.bf16.msra.mxu0 %v402_v2  ;;  %285 = vmatpush1.bf16.msra.mxu1 %v403_v3  ;;  %v408_v6 = vld [vmem:[%s582_s0 + $0xc0] ss:$16 sps:$4 sm:$0xff]   ;;  %v409_v7 = vld [vmem:[%s582_s0 + $0xc8] ss:$16 sps:$4 sm:$0xff]   ;;  %v410_v8 = vld [vmem:[%s582_s0 + $0xa4] ss:$16 sps:$4 sm:$0xff]   ;;  %v337_v41 = vunpack.c.0.s8 %v336_v39 }
   0x4   :  { %245 = vmatprep.subr.bf16.mxu0 %v404_v4  ;;  %286 = vmatprep.subr.bf16.mxu1 %v406_v5  ;;  %v412_v9 = vld [vmem:[%s582_s0 + $0xac] ss:$16 sps:$4 sm:$0xff]   ;;  %v414_v10 = vld [vmem:[%s582_s0 + $0xa0] ss:$16 sps:$4 sm:$0xff]   ;;  %v415_v11 = vld [vmem:[%s582_s0 + $0xa8] ss:$16 sps:$4 sm:$0xff]  }
   0x5   :  { %v416_v12 = vld [vmem:[%s582_s0 + $0x84] ss:$16 sps:$4 sm:$0xff]   ;;  %v418_v13 = vld [vmem:[%s582_s0 + $0x8c] ss:$16 sps:$4 sm:$0xff]   ;;  %v420_v14 = vld [vmem:[%s582_s0 + $0x80] ss:$16 sps:$4 sm:$0xff]  }
   0x6   :  { %v421_v15 = vld [vmem:[%s582_s0 + $0x88] ss:$16 sps:$4 sm:$0xff]   ;;  %v422_v16 = vld [vmem:[%s582_s0 + $0x64] ss:$16 sps:$4 sm:$0xff]   ;;  %v424_v17 = vld [vmem:[%s582_s0 + $0x6c] ss:$16 sps:$4 sm:$0xff]  }
   0x7   :  { %246 = vmatpush1.bf16.msra.mxu0 %v408_v6  ;;  %287 = vmatpush1.bf16.msra.mxu1 %v409_v7  ;;  %v426_v18 = vld [vmem:[%s582_s0 + $0x60] ss:$16 sps:$4 sm:$0xff]   ;;  %v427_v19 = vld [vmem:[%s582_s0 + $0x68] ss:$16 sps:$4 sm:$0xff]   ;;  %v428_v20 = vld [vmem:[%s582_s0 + $0x44] ss:$16 sps:$4 sm:$0xff]  }
   0x8   :  { %247 = vmatprep.subr.bf16.mxu0 %v410_v8  ;;  %288 = vmatprep.subr.bf16.mxu1 %v412_v9  ;;  %v430_v21 = vld [vmem:[%s582_s0 + $0x4c] ss:$16 sps:$4 sm:$0xff]   ;;  %v432_v22 = vld [vmem:[%s582_s0 + $0x40] ss:$16 sps:$4 sm:$0xff]   ;;  %v433_v23 = vld [vmem:[%s582_s0 + $0x48] ss:$16 sps:$4 sm:$0xff]  }
   0x9   :  { %v434_v24 = vld [vmem:[%s582_s0 + $0x24] ss:$16 sps:$4 sm:$0xff]   ;;  %v436_v25 = vld [vmem:[%s582_s0 + $0x2c] ss:$16 sps:$4 sm:$0xff]   ;;  %v438_v26 = vld [vmem:[%s582_s0 + $0x20] ss:$16 sps:$4 sm:$0xff]  }
   0xa   :  { %v439_v27 = vld [vmem:[%s582_s0 + $0x28] ss:$16 sps:$4 sm:$0xff]   ;;  %v356_v28 = vld.sshfl [vmem:[%s583_s1] sm:$0x33 pattern:$0x76325410] }
   0xb   :  { %248 = vmatpush1.bf16.msra.mxu0 %v414_v10  ;;  %289 = vmatpush1.bf16.msra.mxu1 %v415_v11  ;;  %v440_v29 = vld [vmem:[%s582_s0 + $0x4] ss:$16 sps:$4 sm:$0xff]   ;;  %v442_v30 = vld [vmem:[%s582_s0 + $0xc] ss:$16 sps:$4 sm:$0xff]   ;;  %v57_v31 = vcombine.high %v356_v28, %v356_v28  ;;  %v444_v32 = vld [vmem:[%s582_s0] ss:$16 sps:$4 sm:$0xff]  }
   0xc   :  { %249 = vmatprep.subr.bf16.mxu0 %v416_v12  ;;  %290 = vmatprep.subr.bf16.mxu1 %v418_v13  ;;  %v445_v33 = vld [vmem:[%s582_s0 + $0x8] ss:$16 sps:$4 sm:$0xff]   ;;  %v446_v34 = vld [vmem:[%s582_s0 + $0x104] ss:$16 sps:$4 sm:$0xff]   ;;  %v448_v35 = vld [vmem:[%s582_s0 + $0x10c] ss:$16 sps:$4 sm:$0xff]  }
   0xd   :  { %393 = vmatprep.mubr.msk.bf16.mxu0 %vm239_vm0, %v57_v31  ;;  %394 = vmatprep.mubr.msk.bf16.mxu1 %vm239_vm0, %v57_v31  ;;  %v450_v36 = vld [vmem:[%s582_s0 + $0x100] ss:$16 sps:$4 sm:$0xff]   ;;  %v451_v37 = vld [vmem:[%s582_s0 + $0x108] ss:$16 sps:$4 sm:$0xff]   ;;  %v339_v42 = vshrl.u32 %v338_v40, 7 }
   0xf   :  { %250 = vmatpush1.bf16.msra.mxu0 %v420_v14  ;;  %291 = vmatpush1.bf16.msra.mxu1 %v421_v15  ;;  %v340_v45 = vsub.s32 %v337_v41, %v339_v42 }
  0x10   :  { %251 = vmatprep.subr.bf16.mxu0 %v422_v16  ;;  %292 = vmatprep.subr.bf16.mxu1 %v424_v17 }
  0x13   :  { %252 = vmatpush1.bf16.msra.mxu0 %v426_v18  ;;  %293 = vmatpush1.bf16.msra.mxu1 %v427_v19 }
  0x14   :  { %253 = vmatprep.subr.bf16.mxu0 %v428_v20  ;;  %294 = vmatprep.subr.bf16.mxu1 %v430_v21 }
  0x17   :  { %254 = vmatpush1.bf16.msra.mxu0 %v432_v22  ;;  %295 = vmatpush1.bf16.msra.mxu1 %v433_v23 }
  0x18   :  { %255 = vmatprep.subr.bf16.mxu0 %v434_v24  ;;  %296 = vmatprep.subr.bf16.mxu1 %v436_v25 }
  0x1b   :  { %256 = vmatpush1.bf16.msra.mxu0 %v438_v26  ;;  %297 = vmatpush1.bf16.msra.mxu1 %v439_v27 }
  0x1c   :  { %257 = vmatprep.subr.bf16.mxu0 %v440_v29  ;;  %298 = vmatprep.subr.bf16.mxu1 %v442_v30 }
  0x1f   :  { %258 = vmatpush1.bf16.msra.mxu0 %v444_v32  ;;  %299 = vmatpush1.bf16.msra.mxu1 %v445_v33 }
  0x20   :  { %273 = vmatprep.subr.bf16.mxu0 %v446_v34  ;;  %314 = vmatprep.subr.bf16.mxu1 %v448_v35 }
  0x23   :  { %274 = vmatpush2.bf16.msra.mxu0 %v450_v36  ;;  %315 = vmatpush2.bf16.msra.mxu1 %v451_v37 }
  0x26   :  { %276 = vmatmul.mubr.bf16.vlgmr.msra.gmra.mxu0 %v356_v28  ;;  %317 = vmatmul.mubr.bf16.vlgmr.msra.gmra.mxu1 %v356_v28 }
  0xe6   :  { %v277_v43 = vpop.f32.mrf.mxu0  ;;  %v318_v44 = vpop.f32.mrf.mxu1 }
  0xe8   :  { %v279_v46 = vpop.f32.mrf.mxu0  ;;  %v320_v47 = vpop.f32.mrf.mxu1 }
  0xe9   :  { %v395_v48 = vpack.c.bf16 %v279_v46, %v277_v43  ;;  %v396_v49 = vpack.c.bf16 %v320_v47, %v318_v44 }
  0xea   :  { %v281_v50 = vpop.f32.mrf.mxu0  ;;  %v322_v51 = vpop.f32.mrf.mxu1 }
  0xeb   :  { %v341_v52 = vrot.slane %v395_v48, %v340_v45  ;;  %v348_v53 = vrot.slane %v396_v49, %v340_v45 }
  0xec   :  { %v282_v54 = vpop.f32.mrf.mxu0  ;;  %v323_v55 = vpop.f32.mrf.mxu1 }
  0xed   :  { %v349_v56 = vcombine.low %v341_v52, %v348_v53 }
  0xef   :  { %351 = vst [vmem:[%s584_s2] sm:$0xff] %v349_v56 }

// kernel: condensenet_forward.21
= control target key start
LH: loop header
LB: loop body
LE: loop exit
PB: predicated region body
PF: predicated region fallthrough
CT: control target
= control target key end

     0   :  { %v243_v3 = vmov 0   ;;  %vm80_vm0 = vcmask 1041408   ;;  %vm76_vm1 = vcmask 162816   ;;  %s303_s0 = inlined_call_operand.vmem [shape: bf16[20,512], index: 0, kind: input, shape index: {}]   ;;  %s304_s2 = inlined_call_operand.vmem [shape: f32[16,1], index: 2, kind: input, shape index: {}]   ;;  %s305_s1 = inlined_call_operand.vmem [shape: bf16[16,20], index: 1, kind: input, shape index: {}]   ;;  %s306_s3 = inlined_call_operand.vmem [shape: bf16[16,512], index: 3, kind: output, shape index: {}]  }
   0x1   :  { %v19_v0 = vld [vmem:[%s303_s0 + $0x20] sm:$0x33]  ;;  %v20_v1 = vld [vmem:[%s303_s0 + $0x28] sm:$0x33]  ;;  %125 = vmatprep.mubr.bf16.mxu0 %v243_v3  ;;  %168 = vmatprep.mubr.bf16.mxu1 %v243_v3  ;;  %v17_v6 = vld [vmem:[%s303_s0 + $0x10] sm:$0xff] }
   0x2   :  { %v15_v2 = vld [vmem:[%s303_s0] sm:$0xff]  ;;  %v25_v4 = vmax.bf16 %v243_v3, %v19_v0  ;;  %v26_v5 = vmax.bf16 %v243_v3, %v20_v1  ;;  %v16_v8 = vld [vmem:[%s303_s0 + $0x8] sm:$0xff]  ;;  %v18_v9 = vld [vmem:[%s303_s0 + $0x18] sm:$0xff]  ;;  %241 = vset.pattern.permute.xlu0 %v243_v3  ;;  %v23_v10 = vmax.bf16 %v243_v3, %v17_v6 }
   0x3   :  { %v21_v7 = vmax.bf16 %v243_v3, %v15_v2  ;;  %v22_v11 = vmax.bf16 %v243_v3, %v16_v8  ;;  %v24_v12 = vmax.bf16 %v243_v3, %v18_v9  ;;  %v29_v17 = vld [vmem:[%s304_s2] sm:$0xff]  ;;  %v30_v22 = vld [vmem:[%s304_s2 + $0x8] sm:$0xff] }
   0x4   :  { %v225_v13 = vcombine.high %v25_v4, %v25_v4  ;;  %v227_v14 = vcombine.high %v26_v5, %v26_v5  ;;  %v224_v15 = vcombine.low %v25_v4, %v25_v4  ;;  %v226_v16 = vcombine.low %v26_v5, %v26_v5  ;;  %33 = vperm.xlu0 %241, %v29_v17   ;;  %v242_v25 = vld [vmem:[%s305_s1] sm:$0xff]  }
   0x5   :  { %v221_v18 = vcombine.high %v21_v7, %v23_v10  ;;  %v223_v19 = vcombine.high %v22_v11, %v24_v12  ;;  %v220_v23 = vcombine.low %v21_v7, %v23_v10  ;;  %v222_v24 = vcombine.low %v22_v11, %v24_v12 }
   0x6   :  { %228 = vmatprep.subr.msk.bf16.mxu0 %vm80_vm0, %v225_v13  ;;  %230 = vmatprep.subr.msk.bf16.mxu1 %vm80_vm0, %v227_v14  ;;  %v82_v20 = vsel %vm80_vm0, %v224_v15, 0  ;;  %v88_v21 = vsel %vm80_vm0, %v226_v16, 0 }
   0x7   :  { %106 = vmatpush1.bf16.msra.mxu0 %v82_v20  ;;  %149 = vmatpush1.bf16.msra.mxu1 %v88_v21 }
   0x8   :  { %107 = vmatprep.subr.bf16.mxu0 %v221_v18  ;;  %150 = vmatprep.subr.bf16.mxu1 %v223_v19 }
   0x9   :  { %38 = vperm.xlu0 %241, %v30_v22  }
   0xb   :  { %108 = vmatpush1.bf16.msra.mxu0 %v220_v23  ;;  %151 = vmatpush1.bf16.msra.mxu1 %v222_v24 }
   0xe   :  { %229 = vmatmul.mubr.msk.bf16.vlgmr.msra.gmra.mxu0 %vm76_vm1, %v242_v25  ;;  %231 = vmatmul.mubr.msk.bf16.vlgmr.msra.gmra.mxu1 %vm76_vm1, %v242_v25 }
  0x7f   :  { %v34_v26 = vpop.permute.xlu0 %33 }
  0x84   :  { %v39_v39 = vpop.permute.xlu0 %38 }
  0xce   :  { %v127_v27 = vpop.f32.mrf.mxu0  ;;  %v170_v28 = vpop.f32.mrf.mxu1 }
  0xcf   :  { %v128_v29 = vadd.f32 %v127_v27, %v34_v26  ;;  %v171_v30 = vadd.f32 %v170_v28, %v34_v26 }
  0xd0   :  { %v129_v31 = vpop.f32.mrf.mxu0  ;;  %v172_v32 = vpop.f32.mrf.mxu1 }
  0xd1   :  { %v130_v33 = vadd.f32 %v129_v31, %v34_v26  ;;  %v173_v34 = vadd.f32 %v172_v32, %v34_v26  ;;  %v179_v37 = vmax.f32 %v128_v29, 0.0  ;;  %v181_v38 = vmax.f32 %v171_v30, 0.0 }
  0xd2   :  { %v131_v35 = vpop.f32.mrf.mxu0  ;;  %v174_v36 = vpop.f32.mrf.mxu1 }
  0xd3   :  { %v180_v40 = vmax.f32 %v130_v33, 0.0  ;;  %v182_v41 = vmax.f32 %v173_v34, 0.0  ;;  %v132_v42 = vadd.f32 %v131_v35, %v39_v39  ;;  %v175_v43 = vadd.f32 %v174_v36, %v39_v39 }
  0xd4   :  { %v133_v44 = vpop.f32.mrf.mxu0  ;;  %v176_v45 = vpop.f32.mrf.mxu1 }
  0xd5   :  { %v236_v46 = vpack.c.bf16 %v180_v40, %v179_v37  ;;  %v237_v47 = vpack.c.bf16 %v182_v41, %v181_v38  ;;  %v134_v48 = vadd.f32 %v133_v44, %v39_v39  ;;  %v177_v49 = vadd.f32 %v176_v45, %v39_v39 }
  0xd6   :  { %v183_v50 = vmax.f32 %v132_v42, 0.0  ;;  %v185_v51 = vmax.f32 %v175_v43, 0.0 }
  0xd7   :  { %211 = vst [vmem:[%s306_s3] sm:$0xff] %v236_v46  ;;  %212 = vst [vmem:[%s306_s3 + $0x8] sm:$0xff] %v237_v47  ;;  %v184_v52 = vmax.f32 %v134_v48, 0.0  ;;  %v186_v53 = vmax.f32 %v177_v49, 0.0 }
  0xd9   :  { %v238_v54 = vpack.c.bf16 %v184_v52, %v183_v50  ;;  %v239_v55 = vpack.c.bf16 %v186_v53, %v185_v51 }
  0xdb   :  { %213 = vst [vmem:[%s306_s3 + $0x10] sm:$0xff] %v238_v54  ;;  %214 = vst [vmem:[%s306_s3 + $0x18] sm:$0xff] %v239_v55 }

// kernel: condensenet_forward.23
= control target key start
LH: loop header
LB: loop body
LE: loop exit
PB: predicated region body
PF: predicated region fallthrough
CT: control target
= control target key end

     0   :  { %v143_v0 = vmov 0.0   ;;  %vm144_vm0 = vmmov 0   ;;  %v145_v4 = vmov 0   ;;  %vm53_vm1 = vcmask 1043456   ;;  %s187_s0 = inlined_call_operand.vmem [shape: bf16[24,128], index: 0, kind: input, shape index: {}]   ;;  %s188_s2 = inlined_call_operand.vmem [shape: f32[16,1], index: 2, kind: input, shape index: {}]   ;;  %s189_s1 = inlined_call_operand.vmem [shape: bf16[16,24], index: 1, kind: input, shape index: {}]   ;;  %s190_s3 = inlined_call_operand.vmem [shape: bf16[16,128], index: 3, kind: output, shape index: {}]  }
   0x1   :  { %130 = vmatprep.subr.bf16.mxu0 %v143_v0  ;;  %v17_v1 = vld [vmem:[%s187_s0 + $0x8] sm:$0xf]  ;;  %v15_v2 = vld [vmem:[%s187_s0] sm:$0xf]  ;;  %v16_v3 = vld [vmem:[%s187_s0 + $0x4] sm:$0xf]  ;;  %134 = vmatprep.mubr.msk.bf16.mxu0 %vm144_vm0, %v143_v0 }
   0x2   :  { %v20_v5 = vmax.bf16 %v145_v4, %v17_v1  ;;  %141 = vset.pattern.permute.xlu0 %v145_v4  ;;  %v18_v6 = vmax.bf16 %v145_v4, %v15_v2  ;;  %v19_v7 = vmax.bf16 %v145_v4, %v16_v3  ;;  %v23_v8 = vld [vmem:[%s188_s2] sm:$0xff]  ;;  %v24_v10 = vld [vmem:[%s188_s2 + $0x8] sm:$0xff]  ;;  %vm49_vm2 = vcmask 195584  }
   0x3   :  { %27 = vperm.xlu0 %141, %v23_v8   ;;  %v142_v13 = vld [vmem:[%s189_s1] sm:$0xff]  }
   0x4   :  { %v116_v9 = vcombine.low %v20_v5, %v20_v5  ;;  %v115_v12 = vcombine.low %v18_v6, %v19_v7 }
   0x6   :  { %v55_v11 = vsel %vm53_vm1, %v116_v9, 0 }
   0x7   :  { %131 = vmatpush3.bf16.msra.mxu0 %v55_v11  ;;  %32 = vperm.xlu0 %141, %v24_v10  }
   0x8   :  { %132 = vmatprep.subr.bf16.mxu0 %v143_v0 }
   0xb   :  { %133 = vmatpush3.bf16.msra.mxu0 %v115_v12 }
   0xe   :  { %135 = vmatmul.mubr.msk.bf16.vlgmr.msra.gmra.mxu0 %vm49_vm2, %v142_v13 }
  0x7e   :  { %v28_v14 = vpop.permute.xlu0 %27 }
  0x82   :  { %v33_v18 = vpop.permute.xlu0 %32 }
  0xce   :  { %v91_v15 = vpop.f32.mrf.mxu0 }
  0xcf   :  { %v92_v17 = vadd.f32 %v91_v15, %v28_v14 }
  0xd0   :  { %v136_v16 = vpop.f32.mrf.mxu0 }
  0xd1   :  { %v98_v22 = vmax.f32 %v92_v17, 0.0 }
  0xd2   :  { %v94_v19 = vpop.f32.mrf.mxu0 }
  0xd3   :  { %v95_v20 = vadd.f32 %v94_v19, %v33_v18 }
  0xd4   :  { %v137_v21 = vpop.f32.mrf.mxu0 }
  0xd5   :  { %v99_v23 = vmax.f32 %v95_v20, 0.0 }
  0xd7   :  { %v125_v24 = vpack.c.bf16 %v99_v23, %v98_v22 }
  0xd9   :  { %126 = vst [vmem:[%s190_s3] sm:$0xff] %v125_v24  }

// kernel: condensenet_forward.24
= control target key start
LH: loop header
LB: loop body
LE: loop exit
PB: predicated region body
PF: predicated region fallthrough
CT: control target
= control target key end

     0   :  { %v166_v0 = vmov 0   ;;  %vm95_vm0 = vcmask 130048   ;;  %s215_s0 = inlined_call_operand.vmem [shape: bf16[144,128], index: 0, kind: input, shape index: {}]   ;;  %s216_s1 = inlined_call_operand.vmem [shape: bf16[4,144], index: 1, kind: input, shape index: {}]   ;;  %s217_s2 = inlined_call_operand.vmem [shape: bf16[4,128], index: 2, kind: output, shape index: {}]  }
   0x1   :  { %99 = vmatprep.subr.bf16.mxu0 %v166_v0  ;;  %v157_v1 = vld [vmem:[%s215_s0 + $0x38] sm:$0xff]   ;;  %v158_v2 = vld [vmem:[%s215_s0 + $0x30] sm:$0xff]   ;;  %v159_v3 = vld [vmem:[%s215_s0 + $0x28] sm:$0xff]  }
   0x2   :  { %100 = vmatpush1.bf16.msra.mxu0 %v157_v1  ;;  %v145_v4 = vld.sshfl [vmem:[%s216_s1] sm:$0x33 pattern:$0x76325410]  ;;  %v161_v7 = vld [vmem:[%s215_s0 + $0x18] sm:$0xff]   ;;  %v162_v8 = vld [vmem:[%s215_s0 + $0x10] sm:$0xff]  }
   0x3   :  { %101 = vmatprep.subr.bf16.mxu0 %v166_v0  ;;  %v160_v5 = vld [vmem:[%s215_s0 + $0x20] sm:$0xff]   ;;  %v39_v6 = vcombine.high %v145_v4, %v145_v4  ;;  %v163_v9 = vld [vmem:[%s215_s0 + $0x8] sm:$0xff]  }
   0x4   :  { %v164_v10 = vld [vmem:[%s215_s0] sm:$0xff]  }
   0x5   :  { %155 = vmatprep.mubr.msk.bf16.mxu0 %vm95_vm0, %v39_v6  ;;  %v165_v11 = vld [vmem:[%s215_s0 + $0x40] sm:$0xff]  }
   0x6   :  { %102 = vmatpush1.bf16.msra.mxu0 %v158_v2 }
   0x7   :  { %103 = vmatprep.subr.bf16.mxu0 %v166_v0 }
   0xa   :  { %104 = vmatpush1.bf16.msra.mxu0 %v159_v3 }
   0xb   :  { %105 = vmatprep.subr.bf16.mxu0 %v166_v0 }
   0xe   :  { %106 = vmatpush1.bf16.msra.mxu0 %v160_v5 }
   0xf   :  { %107 = vmatprep.subr.bf16.mxu0 %v166_v0 }
  0x12   :  { %108 = vmatpush1.bf16.msra.mxu0 %v161_v7 }
  0x13   :  { %109 = vmatprep.subr.bf16.mxu0 %v166_v0 }
  0x16   :  { %110 = vmatpush1.bf16.msra.mxu0 %v162_v8 }
  0x17   :  { %111 = vmatprep.subr.bf16.mxu0 %v166_v0 }
  0x1a   :  { %112 = vmatpush1.bf16.msra.mxu0 %v163_v9 }
  0x1b   :  { %113 = vmatprep.subr.bf16.mxu0 %v166_v0 }
  0x1e   :  { %114 = vmatpush1.bf16.msra.mxu0 %v164_v10 }
  0x1f   :  { %129 = vmatprep.subr.bf16.mxu0 %v166_v0 }
  0x22   :  { %130 = vmatpush2.bf16.msra.mxu0 %v165_v11 }
  0x25   :  { %132 = vmatmul.mubr.bf16.vlgmr.msra.gmra.mxu0 %v145_v4 }
  0xe5   :  { %v133_v12 = vpop.f32.mrf.mxu0 }
  0xe6   :  { %v139_v13 = vpack.c.bf16 %v133_v12, %v133_v12 }
  0xe7   :  { %v135_v14 = vpop.f32.mrf.mxu0 }
  0xe8   :  { %140 = vst [vmem:[%s217_s2] sm:$0x3] %v139_v13 }
  0xe9   :  { %v136_v15 = vpop.f32.mrf.mxu0 }
  0xeb   :  { %v137_v16 = vpop.f32.mrf.mxu0 }

// kernel: condensenet_forward.25
= control target key start
LH: loop header
LB: loop body
LE: loop exit
PB: predicated region body
PF: predicated region fallthrough
CT: control target
= control target key end

     0   :  { %v147_v0 = vmov 0.0   ;;  %vm148_vm0 = vmmov 0   ;;  %v149_v4 = vmov 0   ;;  %vm57_vm1 = vcmask 1045504   ;;  %s194_s0 = inlined_call_operand.vmem [shape: bf16[28,128], index: 0, kind: input, shape index: {}]   ;;  %s195_s2 = inlined_call_operand.vmem [shape: f32[16,1], index: 2, kind: input, shape index: {}]   ;;  %s196_s1 = inlined_call_operand.vmem [shape: bf16[16,28], index: 1, kind: input, shape index: {}]   ;;  %s197_s3 = inlined_call_operand.vmem [shape: bf16[16,128], index: 3, kind: output, shape index: {}]  }
   0x1   :  { %134 = vmatprep.subr.bf16.mxu0 %v147_v0  ;;  %v17_v1 = vld [vmem:[%s194_s0 + $0x8] sm:$0xf]  ;;  %v18_v2 = vld [vmem:[%s194_s0 + $0xc] sm:$0x3]  ;;  %v15_v3 = vld [vmem:[%s194_s0] sm:$0xf]  ;;  %138 = vmatprep.mubr.msk.bf16.mxu0 %vm148_vm0, %v147_v0 }
   0x2   :  { %v21_v5 = vmax.bf16 %v149_v4, %v17_v1  ;;  %v22_v6 = vmax.bf16 %v149_v4, %v18_v2  ;;  %v16_v7 = vld [vmem:[%s194_s0 + $0x4] sm:$0xf]  ;;  %145 = vset.pattern.permute.xlu0 %v149_v4  ;;  %v19_v8 = vmax.bf16 %v149_v4, %v15_v3  ;;  %v26_v12 = vld [vmem:[%s195_s2 + $0x8] sm:$0xff]  ;;  %vm53_vm2 = vcmask 228352  }
   0x3   :  { %v20_v9 = vmax.bf16 %v149_v4, %v16_v7  ;;  %v25_v10 = vld [vmem:[%s195_s2] sm:$0xff] }
   0x4   :  { %v120_v11 = vcombine.low %v21_v5, %v22_v6  ;;  %29 = vperm.xlu0 %145, %v25_v10   ;;  %v146_v15 = vld [vmem:[%s196_s1] sm:$0xff]  }
   0x5   :  { %v119_v14 = vcombine.low %v19_v8, %v20_v9 }
   0x6   :  { %v59_v13 = vsel %vm57_vm1, %v120_v11, 0 }
   0x7   :  { %135 = vmatpush3.bf16.msra.mxu0 %v59_v13 }
   0x8   :  { %136 = vmatprep.subr.bf16.mxu0 %v147_v0  ;;  %34 = vperm.xlu0 %145, %v26_v12  }
   0xb   :  { %137 = vmatpush3.bf16.msra.mxu0 %v119_v14 }
   0xe   :  { %139 = vmatmul.mubr.msk.bf16.vlgmr.msra.gmra.mxu0 %vm53_vm2, %v146_v15 }
  0x7f   :  { %v30_v16 = vpop.permute.xlu0 %29 }
  0x83   :  { %v35_v20 = vpop.permute.xlu0 %34 }
  0xce   :  { %v95_v17 = vpop.f32.mrf.mxu0 }
  0xcf   :  { %v96_v19 = vadd.f32 %v95_v17, %v30_v16 }
  0xd0   :  { %v140_v18 = vpop.f32.mrf.mxu0 }
  0xd1   :  { %v102_v24 = vmax.f32 %v96_v19, 0.0 }
  0xd2   :  { %v98_v21 = vpop.f32.mrf.mxu0 }
  0xd3   :  { %v99_v22 = vadd.f32 %v98_v21, %v35_v20 }
  0xd4   :  { %v141_v23 = vpop.f32.mrf.mxu0 }
  0xd5   :  { %v103_v25 = vmax.f32 %v99_v22, 0.0 }
  0xd7   :  { %v129_v26 = vpack.c.bf16 %v103_v25, %v102_v24 }
  0xd9   :  { %130 = vst [vmem:[%s197_s3] sm:$0xff] %v129_v26  }

// kernel: condensenet_forward.27
= control target key start
LH: loop header
LB: loop body
LE: loop exit
PB: predicated region body
PF: predicated region fallthrough
CT: control target
= control target key end

     0   :  { %v1371_v0 = vmov 0   ;;  %vm821_vm0 = vcmask 517120   ;;  %vm1373_vm1 = vmmov 0   ;;  %vm1196_vm2 = vcmask 1041409   ;;  %s1882_s1 = inlined_call_operand.vmem [shape: f32[32,1,1], index: 1, kind: input, shape index: {}]   ;;  %s1883_s2 = inlined_call_operand.vmem [shape: f32[32,1,1], index: 2, kind: input, shape index: {}]   ;;  %s1884_s0 = inlined_call_operand.vmem [shape: bf16[32,2,64], index: 0, kind: input, shape index: {}]   ;;  %s1885_s4 = inlined_call_operand.vmem [shape: f32[10,1], index: 4, kind: input, shape index: {}]   ;;  %s1886_s3 = inlined_call_operand.vmem [shape: bf16[10,32], index: 3, kind: input, shape index: {}]   ;;  %s1887_s5 = inlined_call_operand.vmem [shape: f32[10,2], index: 5, kind: output, shape index: {}]  }
   0x1   :  { %1369 = vset.pattern.permute.xlu1 %v1371_v0  ;;  %1368 = vset.pattern.permute.xlu0 %v1371_v0  ;;  %v1312_v1 = vld [vmem:[%s1882_s1 + $0x18] ss:$0 sm:$0xff]  ;;  %v1304_v2 = vld [vmem:[%s1882_s1 + $0x10] ss:$0 sm:$0xff]  ;;  %v1313_v3 = vld [vmem:[%s1882_s1 + $0x19] ss:$0 sm:$0xff] }
   0x2   :  { %374 = vperm.xlu1 %1369, %v1312_v1   ;;  %342 = vperm.xlu0 %1368, %v1304_v2   ;;  %v1305_v4 = vld [vmem:[%s1882_s1 + $0x11] ss:$0 sm:$0xff]  ;;  %v1314_v5 = vld [vmem:[%s1882_s1 + $0x1a] ss:$0 sm:$0xff]  ;;  %v1306_v6 = vld [vmem:[%s1882_s1 + $0x12] ss:$0 sm:$0xff] }
   0x3   :  { %v1315_v7 = vld [vmem:[%s1882_s1 + $0x1b] ss:$0 sm:$0xff]  ;;  %v1307_v8 = vld [vmem:[%s1882_s1 + $0x13] ss:$0 sm:$0xff]  ;;  %v1337_v9 = vld [vmem:[%s1883_s2 + $0x11] ss:$0 sm:$0xff] }
   0x4   :  { %v1336_v10 = vld [vmem:[%s1883_s2 + $0x10] ss:$0 sm:$0xff]  ;;  %v1345_v11 = vld [vmem:[%s1883_s2 + $0x19] ss:$0 sm:$0xff]  ;;  %v1344_v12 = vld [vmem:[%s1883_s2 + $0x18] ss:$0 sm:$0xff] }
   0x5   :  { %v1316_v13 = vld [vmem:[%s1882_s1 + $0x1c] ss:$0 sm:$0xff]  ;;  %v1308_v14 = vld [vmem:[%s1882_s1 + $0x14] ss:$0 sm:$0xff]  ;;  %v1346_v15 = vld [vmem:[%s1883_s2 + $0x1a] ss:$0 sm:$0xff] }
   0x6   :  { %378 = vperm.xlu1 %1369, %v1313_v3   ;;  %346 = vperm.xlu0 %1368, %v1305_v4   ;;  %v1338_v16 = vld [vmem:[%s1883_s2 + $0x12] ss:$0 sm:$0xff]  ;;  %v1289_v17 = vld [vmem:[%s1882_s1 + $0x1] ss:$0 sm:$0xff]  ;;  %v1288_v18 = vld [vmem:[%s1882_s1] ss:$0 sm:$0xff] }
   0x7   :  { %v1297_v19 = vld [vmem:[%s1882_s1 + $0x9] ss:$0 sm:$0xff]  ;;  %v1296_v20 = vld [vmem:[%s1882_s1 + $0x8] ss:$0 sm:$0xff]  ;;  %v1317_v21 = vld [vmem:[%s1882_s1 + $0x1d] ss:$0 sm:$0xff] }
   0x8   :  { %v1309_v22 = vld [vmem:[%s1882_s1 + $0x15] ss:$0 sm:$0xff]  ;;  %v1347_v23 = vld [vmem:[%s1883_s2 + $0x1b] ss:$0 sm:$0xff]  ;;  %v1339_v24 = vld [vmem:[%s1883_s2 + $0x13] ss:$0 sm:$0xff] }
   0x9   :  { %v1298_v25 = vld [vmem:[%s1882_s1 + $0xa] ss:$0 sm:$0xff]  ;;  %v1290_v26 = vld [vmem:[%s1882_s1 + $0x2] ss:$0 sm:$0xff]  ;;  %v1318_v27 = vld [vmem:[%s1882_s1 + $0x1e] ss:$0 sm:$0xff] }
   0xa   :  { %382 = vperm.xlu1 %1369, %v1314_v5   ;;  %350 = vperm.xlu0 %1368, %v1306_v6   ;;  %v1310_v28 = vld [vmem:[%s1882_s1 + $0x16] ss:$0 sm:$0xff]  ;;  %v1348_v29 = vld [vmem:[%s1883_s2 + $0x1c] ss:$0 sm:$0xff]  ;;  %v1340_v30 = vld [vmem:[%s1883_s2 + $0x14] ss:$0 sm:$0xff] }
   0xb   :  { %v1299_v31 = vld [vmem:[%s1882_s1 + $0xb] ss:$0 sm:$0xff]  ;;  %v1291_v32 = vld [vmem:[%s1882_s1 + $0x3] ss:$0 sm:$0xff]  ;;  %v1319_v33 = vld [vmem:[%s1882_s1 + $0x1f] ss:$0 sm:$0xff] }
   0xc   :  { %v1311_v34 = vld [vmem:[%s1882_s1 + $0x17] ss:$0 sm:$0xff]  ;;  %v1321_v35 = vld [vmem:[%s1883_s2 + $0x1] ss:$0 sm:$0xff]  ;;  %v1320_v36 = vld [vmem:[%s1883_s2] ss:$0 sm:$0xff] }
   0xd   :  { %v1329_v37 = vld [vmem:[%s1883_s2 + $0x9] ss:$0 sm:$0xff]  ;;  %v1328_v38 = vld [vmem:[%s1883_s2 + $0x8] ss:$0 sm:$0xff]  ;;  %v1349_v39 = vld [vmem:[%s1883_s2 + $0x1d] ss:$0 sm:$0xff] }
   0xe   :  { %386 = vperm.xlu1 %1369, %v1315_v7   ;;  %354 = vperm.xlu0 %1368, %v1307_v8   ;;  %v1341_v40 = vld [vmem:[%s1883_s2 + $0x15] ss:$0 sm:$0xff]  ;;  %v1300_v41 = vld [vmem:[%s1882_s1 + $0xc] ss:$0 sm:$0xff]  ;;  %v1292_v42 = vld [vmem:[%s1882_s1 + $0x4] ss:$0 sm:$0xff] }
   0xf   :  { %v1330_v43 = vld [vmem:[%s1883_s2 + $0xa] ss:$0 sm:$0xff]  ;;  %v1322_v44 = vld [vmem:[%s1883_s2 + $0x2] ss:$0 sm:$0xff]  ;;  %v1350_v45 = vld [vmem:[%s1883_s2 + $0x1e] ss:$0 sm:$0xff] }
  0x10   :  { %v1342_v46 = vld [vmem:[%s1883_s2 + $0x16] ss:$0 sm:$0xff]  ;;  %v1301_v47 = vld [vmem:[%s1882_s1 + $0xd] ss:$0 sm:$0xff]  ;;  %v1293_v48 = vld [vmem:[%s1882_s1 + $0x5] ss:$0 sm:$0xff] }
  0x11   :  { %v1331_v49 = vld [vmem:[%s1883_s2 + $0xb] ss:$0 sm:$0xff]  ;;  %v1323_v50 = vld [vmem:[%s1883_s2 + $0x3] ss:$0 sm:$0xff]  ;;  %v1351_v51 = vld [vmem:[%s1883_s2 + $0x1f] ss:$0 sm:$0xff] }
  0x12   :  { %698 = vperm.xlu1 %1369, %v1337_v9   ;;  %694 = vperm.xlu0 %1368, %v1336_v10   ;;  %v1343_v52 = vld [vmem:[%s1883_s2 + $0x17] ss:$0 sm:$0xff]  ;;  %v1302_v53 = vld [vmem:[%s1882_s1 + $0xe] ss:$0 sm:$0xff]  ;;  %v1294_v54 = vld [vmem:[%s1882_s1 + $0x6] ss:$0 sm:$0xff] }
  0x13   :  { %v1332_v55 = vld [vmem:[%s1883_s2 + $0xc] ss:$0 sm:$0xff]  ;;  %v1324_v56 = vld [vmem:[%s1883_s2 + $0x4] ss:$0 sm:$0xff]  ;;  %v1303_v57 = vld [vmem:[%s1882_s1 + $0xf] ss:$0 sm:$0xff] }
  0x14   :  { %v1295_v58 = vld [vmem:[%s1882_s1 + $0x7] ss:$0 sm:$0xff]  ;;  %v1333_v59 = vld [vmem:[%s1883_s2 + $0xd] ss:$0 sm:$0xff]  ;;  %v1325_v60 = vld [vmem:[%s1883_s2 + $0x5] ss:$0 sm:$0xff] }
  0x15   :  { %v1334_v61 = vld [vmem:[%s1883_s2 + $0xe] ss:$0 sm:$0xff]  ;;  %v1326_v62 = vld [vmem:[%s1883_s2 + $0x6] ss:$0 sm:$0xff]  ;;  %v1335_v63 = vld [vmem:[%s1883_s2 + $0xf] ss:$0 sm:$0xff] }
  0x16   :  { %730 = vperm.xlu1 %1369, %v1345_v11   ;;  %726 = vperm.xlu0 %1368, %v1344_v12   ;;  %v1327_v0 = vld [vmem:[%s1883_s2 + $0x7] ss:$0 sm:$0xff]  ;;  %v37_v9 = vld [vmem:[%s1884_s0 + $0x10] sm:$0x1]  ;;  %vm1198_vm3 = vcmask 1042434   ;;  %vm1200_vm4 = vcmask 1043459  }
  0x17   :  { %v69_v12 = vunpack.c.l.bf16 %v37_v9  ;;  %v49_v9 = vld [vmem:[%s1884_s0 + $0x1c] sm:$0x1]  ;;  %vm1202_vm5 = vcmask 1044484   ;;  %vm1204_vm6 = vcmask 1045509   ;;  %vm1206_vm7 = vcmask 1046534  }
  0x18   :  { %vm1208_vm8 = vcmask 1047559   ;;  %vm1235_vm9 = vcmask 261120   ;;  %vm1280_vm10 = vcmask 15360   ;;  %vm1282_vm11 = vcmask 9216  }
  0x1a   :  { %390 = vperm.xlu1 %1369, %v1316_v13   ;;  %358 = vperm.xlu0 %1368, %v1308_v14   ;;  %v45_v13 = vld [vmem:[%s1884_s0 + $0x18] sm:$0x1]  ;;  %v38_v14 = vld [vmem:[%s1884_s0 + $0x11] sm:$0x1] }
  0x1e   :  { %734 = vperm.xlu1 %1369, %v1346_v15   ;;  %702 = vperm.xlu0 %1368, %v1338_v16  }
  0x22   :  { %282 = vperm.xlu1 %1369, %v1289_v17   ;;  %278 = vperm.xlu0 %1368, %v1288_v18   ;;  %v77_v17 = vunpack.c.l.bf16 %v45_v13  ;;  %v81_v13 = vunpack.c.l.bf16 %v49_v9 }
  0x26   :  { %314 = vperm.xlu1 %1369, %v1297_v19   ;;  %310 = vperm.xlu0 %1368, %v1296_v20   ;;  %v46_v19 = vld [vmem:[%s1884_s0 + $0x19] sm:$0x1]  ;;  %v70_v20 = vunpack.c.l.bf16 %v38_v14 }
  0x2a   :  { %394 = vperm.xlu1 %1369, %v1317_v21   ;;  %362 = vperm.xlu0 %1368, %v1309_v22   ;;  %v39_v21 = vld [vmem:[%s1884_s0 + $0x12] sm:$0x1] }
  0x2e   :  { %738 = vperm.xlu1 %1369, %v1347_v23   ;;  %706 = vperm.xlu0 %1368, %v1339_v24  }
  0x32   :  { %318 = vperm.xlu1 %1369, %v1298_v25   ;;  %286 = vperm.xlu0 %1368, %v1290_v26   ;;  %v78_v26 = vunpack.c.l.bf16 %v46_v19 }
  0x36   :  { %398 = vperm.xlu1 %1369, %v1318_v27   ;;  %366 = vperm.xlu0 %1368, %v1310_v28   ;;  %v47_v28 = vld [vmem:[%s1884_s0 + $0x1a] sm:$0x1] }
  0x3a   :  { %742 = vperm.xlu1 %1369, %v1348_v29   ;;  %710 = vperm.xlu0 %1368, %v1340_v30   ;;  %v71_v29 = vunpack.c.l.bf16 %v39_v21 }
  0x3e   :  { %322 = vperm.xlu1 %1369, %v1299_v31   ;;  %290 = vperm.xlu0 %1368, %v1291_v32  }
  0x42   :  { %402 = vperm.xlu1 %1369, %v1319_v33   ;;  %370 = vperm.xlu0 %1368, %v1311_v34  }
  0x46   :  { %634 = vperm.xlu1 %1369, %v1321_v35   ;;  %630 = vperm.xlu0 %1368, %v1320_v36   ;;  %v79_v36 = vunpack.c.l.bf16 %v47_v28  ;;  %v21_v28 = vld [vmem:[%s1884_s0] sm:$0x1] }
  0x4a   :  { %666 = vperm.xlu1 %1369, %v1329_v37   ;;  %662 = vperm.xlu0 %1368, %v1328_v38  }
  0x4e   :  { %746 = vperm.xlu1 %1369, %v1349_v39   ;;  %714 = vperm.xlu0 %1368, %v1341_v40  }
  0x52   :  { %326 = vperm.xlu1 %1369, %v1300_v41   ;;  %294 = vperm.xlu0 %1368, %v1292_v42  }
  0x56   :  { %670 = vperm.xlu1 %1369, %v1330_v43   ;;  %638 = vperm.xlu0 %1368, %v1322_v44  }
  0x5a   :  { %750 = vperm.xlu1 %1369, %v1350_v45   ;;  %718 = vperm.xlu0 %1368, %v1342_v46  }
  0x5e   :  { %330 = vperm.xlu1 %1369, %v1301_v47   ;;  %298 = vperm.xlu0 %1368, %v1293_v48  }
  0x62   :  { %674 = vperm.xlu1 %1369, %v1331_v49   ;;  %642 = vperm.xlu0 %1368, %v1323_v50   ;;  %v48_v49 = vld [vmem:[%s1884_s0 + $0x1b] sm:$0x1]  ;;  %v40_v50 = vld [vmem:[%s1884_s0 + $0x13] sm:$0x1] }
  0x66   :  { %754 = vperm.xlu1 %1369, %v1351_v51   ;;  %722 = vperm.xlu0 %1368, %v1343_v52  }
  0x6a   :  { %334 = vperm.xlu1 %1369, %v1302_v53   ;;  %302 = vperm.xlu0 %1368, %v1294_v54  }
  0x6e   :  { %678 = vperm.xlu1 %1369, %v1332_v55   ;;  %646 = vperm.xlu0 %1368, %v1324_v56   ;;  %v80_v55 = vunpack.c.l.bf16 %v48_v49  ;;  %v72_v56 = vunpack.c.l.bf16 %v40_v50 }
  0x72   :  { %338 = vperm.xlu1 %1369, %v1303_v57   ;;  %306 = vperm.xlu0 %1368, %v1295_v58  }
  0x76   :  { %682 = vperm.xlu1 %1369, %v1333_v59   ;;  %650 = vperm.xlu0 %1368, %v1325_v60  }
  0x7a   :  { %686 = vperm.xlu1 %1369, %v1334_v61   ;;  %654 = vperm.xlu0 %1368, %v1326_v62  }
  0x7d   :  { %v375_v1 = vpop.permute.xlu1 %374  ;;  %v343_v2 = vpop.permute.xlu0 %342 }
  0x7e   :  { %690 = vperm.xlu1 %1369, %v1335_v63   ;;  %658 = vperm.xlu0 %1368, %v1327_v0   ;;  %v421_v18 = vmul.f32 %v343_v2, %v69_v12  ;;  %v429_v25 = vmul.f32 %v375_v1, %v77_v17 }
  0x81   :  { %v379_v3 = vpop.permute.xlu1 %378  ;;  %v347_v4 = vpop.permute.xlu0 %346 }
  0x82   :  { %v422_v27 = vmul.f32 %v347_v4, %v70_v20  ;;  %v430_v35 = vmul.f32 %v379_v3, %v78_v26 }
  0x85   :  { %v383_v5 = vpop.permute.xlu1 %382  ;;  %v351_v6 = vpop.permute.xlu0 %350 }
  0x86   :  { %v423_v37 = vmul.f32 %v351_v6, %v71_v29  ;;  %v431_v45 = vmul.f32 %v383_v5, %v79_v36 }
  0x89   :  { %v387_v7 = vpop.permute.xlu1 %386  ;;  %v355_v8 = vpop.permute.xlu0 %354 }
  0x8a   :  { %v432_v62 = vmul.f32 %v387_v7, %v80_v55  ;;  %v424_v63 = vmul.f32 %v355_v8, %v72_v56 }
  0x8d   :  { %v699_v10 = vpop.permute.xlu1 %698  ;;  %v695_v11 = vpop.permute.xlu0 %694 }
  0x8e   :  { %v773_v22 = vadd.f32 %v695_v11, %v421_v18  ;;  %v774_v32 = vadd.f32 %v699_v10, %v422_v27  ;;  %v41_v10 = vld [vmem:[%s1884_s0 + $0x14] sm:$0x1]  ;;  %v22_v27 = vld [vmem:[%s1884_s0 + $0x1] sm:$0x1] }
  0x8f   :  { %v73_v14 = vunpack.c.l.bf16 %v41_v10 }
  0x90   :  { %v805_v30 = vmax.f32 %v773_v22, 0.0  ;;  %v806_v41 = vmax.f32 %v774_v32, 0.0  ;;  %v53_v32 = vunpack.c.l.bf16 %v21_v28 }
  0x91   :  { %v731_v15 = vpop.permute.xlu1 %730  ;;  %v727_v16 = vpop.permute.xlu0 %726 }
  0x92   :  { %v781_v31 = vadd.f32 %v727_v16, %v429_v25  ;;  %v782_v38 = vadd.f32 %v731_v15, %v430_v35  ;;  %v870_v40 = vsel %vm821_vm0, %v805_v30, 0.0  ;;  %v873_v54 = vsel %vm821_vm0, %v806_v41, 0.0  ;;  %v50_v41 = vld [vmem:[%s1884_s0 + $0x1d] sm:$0x1] }
  0x93   :  { %v82_v49 = vunpack.c.l.bf16 %v50_v41 }
  0x94   :  { %v813_v39 = vmax.f32 %v781_v31, 0.0  ;;  %v814_v46 = vmax.f32 %v782_v38, 0.0  ;;  %v54_v31 = vunpack.c.l.bf16 %v22_v27 }
  0x95   :  { %v1611_v23 = vpop.permute.xlu1 %390  ;;  %v1613_v24 = vpop.permute.xlu0 %358 }
  0x96   :  { %v894_v48 = vsel %vm821_vm0, %v813_v39, 0.0  ;;  %v897_v58 = vsel %vm821_vm0, %v814_v46, 0.0  ;;  %v433_v17 = vmul.f32 %v1611_v23, %v81_v13  ;;  %v425_v18 = vmul.f32 %v1613_v24, %v73_v14  ;;  %v51_v13 = vld [vmem:[%s1884_s0 + $0x1e] sm:$0x1]  ;;  %v43_v14 = vld [vmem:[%s1884_s0 + $0x16] sm:$0x1] }
  0x99   :  { %v735_v33 = vpop.permute.xlu1 %734  ;;  %v703_v34 = vpop.permute.xlu0 %702 }
  0x9a   :  { %v775_v42 = vadd.f32 %v703_v34, %v423_v37  ;;  %v783_v47 = vadd.f32 %v735_v33, %v431_v45  ;;  %v30_v33 = vld [vmem:[%s1884_s0 + $0x9] sm:$0x1]  ;;  %v29_v34 = vld [vmem:[%s1884_s0 + $0x8] sm:$0x1] }
  0x9b   :  { %v62_v39 = vunpack.c.l.bf16 %v30_v33 }
  0x9c   :  { %v807_v51 = vmax.f32 %v775_v42, 0.0  ;;  %v815_v57 = vmax.f32 %v783_v47, 0.0  ;;  %v42_v42 = vld [vmem:[%s1884_s0 + $0x15] sm:$0x1] }
  0x9d   :  { %v1619_v43 = vpop.permute.xlu1 %282  ;;  %v1621_v44 = vpop.permute.xlu0 %278  ;;  %871 = vadd.xlane.f32.xlu0 %v870_v40  ;;  %v61_v40 = vunpack.c.l.bf16 %v29_v34  ;;  %v74_v50 = vunpack.c.l.bf16 %v42_v42 }
  0x9e   :  { %v876_v61 = vsel %vm821_vm0, %v807_v51, 0.0  ;;  %v900_v0 = vsel %vm821_vm0, %v815_v57, 0.0  ;;  %v406_v37 = vmul.f32 %v1619_v43, %v54_v31  ;;  %v405_v38 = vmul.f32 %v1621_v44, %v53_v32 }
  0xa1   :  { %v1630_v52 = vpop.permute.xlu1 %314  ;;  %v1632_v53 = vpop.permute.xlu0 %310  ;;  %895 = vadd.xlane.f32.xlu0 %v894_v48 }
  0xa2   :  { %874 = vadd.xlane.f32.xlu1 %v873_v54  ;;  %v414_v43 = vmul.f32 %v1630_v52, %v62_v39  ;;  %v413_v44 = vmul.f32 %v1632_v53, %v61_v40  ;;  %v31_v53 = vld [vmem:[%s1884_s0 + $0xa] sm:$0x1] }
  0xa5   :  { %v1636_v59 = vpop.permute.xlu1 %394  ;;  %v1638_v60 = vpop.permute.xlu0 %362  ;;  %898 = vadd.xlane.f32.xlu0 %v897_v58 }
  0xa6   :  { %877 = vadd.xlane.f32.xlu1 %v876_v61 }
  0xa9   :  { %v739_v1 = vpop.permute.xlu1 %738  ;;  %v707_v2 = vpop.permute.xlu0 %706  ;;  %901 = vadd.xlane.f32.xlu0 %v900_v0  ;;  %v426_v0 = vmul.f32 %v1638_v60, %v74_v50  ;;  %v63_v60 = vunpack.c.l.bf16 %v31_v53  ;;  %v33_v53 = vld [vmem:[%s1884_s0 + $0xc] sm:$0x1] }
  0xaa   :  { %v784_v3 = vadd.f32 %v739_v1, %v432_v62  ;;  %v776_v4 = vadd.f32 %v707_v2, %v424_v63  ;;  %v434_v63 = vmul.f32 %v1636_v59, %v82_v49  ;;  %v23_v2 = vld [vmem:[%s1884_s0 + $0x2] sm:$0x1] }
  0xab   :  { %v55_v10 = vunpack.c.l.bf16 %v23_v2 }
  0xac   :  { %v816_v5 = vmax.f32 %v784_v3, 0.0  ;;  %v808_v6 = vmax.f32 %v776_v4, 0.0 }
  0xad   :  { %v1648_v11 = vpop.permute.xlu1 %318  ;;  %v1650_v7 = vpop.permute.xlu0 %286 }
  0xae   :  { %v879_v8 = vsel %vm821_vm0, %v808_v6, 0.0  ;;  %v903_v12 = vsel %vm821_vm0, %v816_v5, 0.0 }
  0xaf   :  { %880 = vadd.xlane.f32.xlu1 %v879_v8  ;;  %904 = vadd.xlane.f32.xlu0 %v903_v12 }
  0xb1   :  { %v1654_v15 = vpop.permute.xlu1 %398  ;;  %v1656_v16 = vpop.permute.xlu0 %366 }
  0xb5   :  { %v743_v19 = vpop.permute.xlu1 %742  ;;  %v711_v20 = vpop.permute.xlu0 %710 }
  0xb6   :  { %v785_v21 = vadd.f32 %v743_v19, %v433_v17  ;;  %v777_v22 = vadd.f32 %v711_v20, %v425_v18 }
  0xb8   :  { %v817_v25 = vmax.f32 %v785_v21, 0.0  ;;  %v809_v26 = vmax.f32 %v777_v22, 0.0  ;;  %v415_v21 = vmul.f32 %v1648_v11, %v63_v60  ;;  %v407_v22 = vmul.f32 %v1650_v7, %v55_v10  ;;  %v24_v11 = vld [vmem:[%s1884_s0 + $0x3] sm:$0x1] }
  0xb9   :  { %v1666_v29 = vpop.permute.xlu1 %322  ;;  %v1668_v30 = vpop.permute.xlu0 %290  ;;  %v56_v42 = vunpack.c.l.bf16 %v24_v11 }
  0xba   :  { %v882_v23 = vsel %vm821_vm0, %v809_v26, 0.0  ;;  %v906_v24 = vsel %vm821_vm0, %v817_v25, 0.0  ;;  %v83_v25 = vunpack.c.l.bf16 %v51_v13  ;;  %v75_v26 = vunpack.c.l.bf16 %v43_v14 }
  0xbb   :  { %883 = vadd.xlane.f32.xlu1 %v882_v23  ;;  %907 = vadd.xlane.f32.xlu0 %v906_v24 }
  0xbc   :  { %v435_v31 = vmul.f32 %v1654_v15, %v83_v25  ;;  %v427_v32 = vmul.f32 %v1656_v16, %v75_v26 }
  0xbd   :  { %v1678_v35 = vpop.permute.xlu1 %402  ;;  %v1680_v36 = vpop.permute.xlu0 %370 }
  0xc1   :  { %v635_v45 = vpop.permute.xlu1 %634  ;;  %v631_v46 = vpop.permute.xlu0 %630 }
  0xc2   :  { %v758_v47 = vadd.f32 %v635_v45, %v406_v37  ;;  %v757_v48 = vadd.f32 %v631_v46, %v405_v38  ;;  %v32_v37 = vld [vmem:[%s1884_s0 + $0xb] sm:$0x1] }
  0xc3   :  { %v64_v16 = vunpack.c.l.bf16 %v32_v37 }
  0xc4   :  { %v790_v51 = vmax.f32 %v758_v47, 0.0  ;;  %v789_v54 = vmax.f32 %v757_v48, 0.0  ;;  %v52_v47 = vld [vmem:[%s1884_s0 + $0x1f] sm:$0x1]  ;;  %v44_v48 = vld [vmem:[%s1884_s0 + $0x17] sm:$0x1] }
  0xc5   :  { %v667_v55 = vpop.permute.xlu1 %666  ;;  %v663_v56 = vpop.permute.xlu0 %662 }
  0xc6   :  { %v766_v57 = vadd.f32 %v667_v55, %v414_v43  ;;  %v765_v58 = vadd.f32 %v663_v56, %v413_v44  ;;  %v825_v61 = vsel %vm821_vm0, %v790_v51, 0.0  ;;  %v822_v62 = vsel %vm821_vm0, %v789_v54, 0.0 }
  0xc7   :  { %826 = vadd.xlane.f32.xlu0 %v825_v61  ;;  %823 = vadd.xlane.f32.xlu1 %v822_v62  ;;  %v416_v51 = vmul.f32 %v1666_v29, %v64_v16  ;;  %v408_v54 = vmul.f32 %v1668_v30, %v56_v42  ;;  %v84_v55 = vunpack.c.l.bf16 %v52_v47  ;;  %v76_v56 = vunpack.c.l.bf16 %v44_v48  ;;  %v25_v29 = vld [vmem:[%s1884_s0 + $0x4] sm:$0x1] }
  0xc8   :  { %v798_v1 = vmax.f32 %v766_v57, 0.0  ;;  %v797_v52 = vmax.f32 %v765_v58, 0.0 }
  0xc9   :  { %v747_v3 = vpop.permute.xlu1 %746  ;;  %v715_v4 = vpop.permute.xlu0 %714 }
  0xca   :  { %v786_v5 = vadd.f32 %v747_v3, %v434_v63  ;;  %v778_v6 = vadd.f32 %v715_v4, %v426_v0  ;;  %v849_v9 = vsel %vm821_vm0, %v798_v1, 0.0  ;;  %v846_v59 = vsel %vm821_vm0, %v797_v52, 0.0 }
  0xcb   :  { %850 = vadd.xlane.f32.xlu0 %v849_v9  ;;  %847 = vadd.xlane.f32.xlu1 %v846_v59  ;;  %v436_v63 = vmul.f32 %v1678_v35, %v84_v55  ;;  %v428_v0 = vmul.f32 %v1680_v36, %v76_v56  ;;  %v65_v36 = vunpack.c.l.bf16 %v33_v53 }
  0xcc   :  { %v818_v8 = vmax.f32 %v786_v5, 0.0  ;;  %v810_v12 = vmax.f32 %v778_v6, 0.0  ;;  %v57_v6 = vunpack.c.l.bf16 %v25_v29 }
  0xcd   :  { %v1710_v17 = vpop.permute.xlu1 %326  ;;  %v1712_v18 = vpop.permute.xlu0 %294 }
  0xce   :  { %v909_v19 = vsel %vm821_vm0, %v818_v8, 0.0  ;;  %v885_v20 = vsel %vm821_vm0, %v810_v12, 0.0  ;;  %v417_v13 = vmul.f32 %v1710_v17, %v65_v36  ;;  %v409_v14 = vmul.f32 %v1712_v18, %v57_v6  ;;  %v35_v17 = vld [vmem:[%s1884_s0 + $0xe] sm:$0x1]  ;;  %v27_v18 = vld [vmem:[%s1884_s0 + $0x6] sm:$0x1] }
  0xcf   :  { %910 = vadd.xlane.f32.xlu0 %v909_v19  ;;  %886 = vadd.xlane.f32.xlu1 %v885_v20  ;;  %v34_v19 = vld [vmem:[%s1884_s0 + $0xd] sm:$0x1]  ;;  %v26_v20 = vld [vmem:[%s1884_s0 + $0x5] sm:$0x1]  ;;  %v986_v36 = vld [vmem:[%s1885_s4 + $0x8] sm:$0x3] }
  0xd1   :  { %v671_v27 = vpop.permute.xlu1 %670  ;;  %v639_v28 = vpop.permute.xlu0 %638 }
  0xd2   :  { %v767_v23 = vadd.f32 %v671_v27, %v415_v21  ;;  %v759_v24 = vadd.f32 %v639_v28, %v407_v22  ;;  %v66_v27 = vunpack.c.l.bf16 %v34_v19  ;;  %v58_v28 = vunpack.c.l.bf16 %v26_v20 }
  0xd4   :  { %v799_v33 = vmax.f32 %v767_v23, 0.0  ;;  %v791_v34 = vmax.f32 %v759_v24, 0.0 }
  0xd5   :  { %v751_v7 = vpop.permute.xlu1 %750  ;;  %v719_v38 = vpop.permute.xlu0 %718 }
  0xd6   :  { %v787_v39 = vadd.f32 %v751_v7, %v435_v31  ;;  %v779_v40 = vadd.f32 %v719_v38, %v427_v32  ;;  %v852_v41 = vsel %vm821_vm0, %v799_v33, 0.0  ;;  %v828_v15 = vsel %vm821_vm0, %v791_v34, 0.0 }
  0xd7   :  { %853 = vadd.xlane.f32.xlu0 %v852_v41  ;;  %829 = vadd.xlane.f32.xlu1 %v828_v15  ;;  %v67_v7 = vunpack.c.l.bf16 %v35_v17  ;;  %v59_v38 = vunpack.c.l.bf16 %v27_v18 }
  0xd8   :  { %v819_v45 = vmax.f32 %v787_v39, 0.0  ;;  %v811_v46 = vmax.f32 %v779_v40, 0.0  ;;  %v36_v39 = vld [vmem:[%s1884_s0 + $0xf] sm:$0x1]  ;;  %v28_v40 = vld [vmem:[%s1884_s0 + $0x7] sm:$0x1] }
  0xd9   :  { %v331_v49 = vpop.permute.xlu1 %330  ;;  %v299_v50 = vpop.permute.xlu0 %298 }
  0xda   :  { %v912_v43 = vsel %vm821_vm0, %v819_v45, 0.0  ;;  %v888_v44 = vsel %vm821_vm0, %v811_v46, 0.0  ;;  %v418_v37 = vmul.f32 %v331_v49, %v66_v27  ;;  %v410_v11 = vmul.f32 %v299_v50, %v58_v28 }
  0xdb   :  { %913 = vadd.xlane.f32.xlu0 %v912_v43  ;;  %889 = vadd.xlane.f32.xlu1 %v888_v44  ;;  %v68_v45 = vunpack.c.l.bf16 %v36_v39  ;;  %v60_v46 = vunpack.c.l.bf16 %v28_v40  ;;  %v1066_v28 = vlaneseq }
  0xdd   :  { %v675_v57 = vpop.permute.xlu1 %674  ;;  %v643_v58 = vpop.permute.xlu0 %642  ;;  %v1067_v17 = vand.u32 127, %v1066_v28  ;;  %v1069_v18 = vshrl.u32 %v1066_v28, 7 }
  0xde   :  { %v768_v61 = vadd.f32 %v675_v57, %v416_v51  ;;  %v760_v62 = vadd.f32 %v643_v58, %v408_v54 }
  0xe0   :  { %v800_v1 = vmax.f32 %v768_v61, 0.0  ;;  %v792_v52 = vmax.f32 %v760_v62, 0.0 }
  0xe1   :  { %v755_v30 = vpop.permute.xlu1 %754  ;;  %v723_v2 = vpop.permute.xlu0 %722 }
  0xe2   :  { %v788_v3 = vadd.f32 %v755_v30, %v436_v63  ;;  %v780_v4 = vadd.f32 %v723_v2, %v428_v0  ;;  %v855_v5 = vsel %vm821_vm0, %v800_v1, 0.0  ;;  %v831_v35 = vsel %vm821_vm0, %v792_v52, 0.0 }
  0xe3   :  { %856 = vadd.xlane.f32.xlu0 %v855_v5  ;;  %832 = vadd.xlane.f32.xlu1 %v831_v35  ;;  %v985_v35 = vld [vmem:[%s1885_s4] sm:$0xff] }
  0xe4   :  { %v820_v9 = vmax.f32 %v788_v3, 0.0  ;;  %v812_v59 = vmax.f32 %v780_v4, 0.0  ;;  %v1372_v3 = vmov 0.0  }
  0xe5   :  { %v335_v60 = vpop.permute.xlu1 %334  ;;  %v303_v10 = vpop.permute.xlu0 %302  ;;  %1357 = vmatprep.subr.bf16.mxu0 %v1372_v3  ;;  %1361 = vmatprep.mubr.msk.bf16.mxu0 %vm1373_vm1, %v1372_v3 }
  0xe6   :  { %v915_v8 = vsel %vm821_vm0, %v820_v9, 0.0  ;;  %v891_v12 = vsel %vm821_vm0, %v812_v59, 0.0  ;;  %v419_v47 = vmul.f32 %v335_v60, %v67_v7  ;;  %v411_v48 = vmul.f32 %v303_v10, %v59_v38 }
  0xe7   :  { %916 = vadd.xlane.f32.xlu0 %v915_v8  ;;  %892 = vadd.xlane.f32.xlu1 %v891_v12  ;;  %v1798_v7 = vsub.s32 %v1067_v17, %v1069_v18 }
  0xe9   :  { %v679_v21 = vpop.permute.xlu1 %678  ;;  %v647_v22 = vpop.permute.xlu0 %646 }
  0xea   :  { %v769_v25 = vadd.f32 %v679_v21, %v417_v13  ;;  %v761_v26 = vadd.f32 %v647_v22, %v409_v14 }
  0xec   :  { %v801_v23 = vmax.f32 %v769_v25, 0.0  ;;  %v793_v24 = vmax.f32 %v761_v26, 0.0 }
  0xed   :  { %v339_v31 = vpop.permute.xlu1 %338  ;;  %v307_v32 = vpop.permute.xlu0 %306 }
  0xee   :  { %v858_v33 = vsel %vm821_vm0, %v801_v23, 0.0  ;;  %v834_v34 = vsel %vm821_vm0, %v793_v24, 0.0  ;;  %v420_v57 = vmul.f32 %v339_v31, %v68_v45  ;;  %v412_v58 = vmul.f32 %v307_v32, %v60_v46 }
  0xef   :  { %859 = vadd.xlane.f32.xlu0 %v858_v33  ;;  %835 = vadd.xlane.f32.xlu1 %v834_v34 }
  0xf1   :  { %v683_v41 = vpop.permute.xlu1 %682  ;;  %v651_v15 = vpop.permute.xlu0 %650 }
  0xf2   :  { %v770_v16 = vadd.f32 %v683_v41, %v418_v37  ;;  %v762_v42 = vadd.f32 %v651_v15, %v410_v11 }
  0xf4   :  { %v802_v49 = vmax.f32 %v770_v16, 0.0  ;;  %v794_v50 = vmax.f32 %v762_v42, 0.0 }
  0xf5   :  { %v687_v43 = vpop.permute.xlu1 %686  ;;  %v655_v44 = vpop.permute.xlu0 %654 }
  0xf6   :  { %v771_v51 = vadd.f32 %v687_v43, %v419_v47  ;;  %v763_v54 = vadd.f32 %v655_v44, %v411_v48  ;;  %v861_v55 = vsel %vm821_vm0, %v802_v49, 0.0  ;;  %v837_v56 = vsel %vm821_vm0, %v794_v50, 0.0 }
  0xf7   :  { %862 = vadd.xlane.f32.xlu0 %v861_v55  ;;  %838 = vadd.xlane.f32.xlu1 %v837_v56 }
  0xf8   :  { %v803_v61 = vmax.f32 %v771_v51, 0.0  ;;  %v795_v62 = vmax.f32 %v763_v54, 0.0 }
  0xf9   :  { %v691_v63 = vpop.permute.xlu1 %690  ;;  %v659_v0 = vpop.permute.xlu0 %658 }
  0xfa   :  { %v772_v1 = vadd.f32 %v691_v63, %v420_v57  ;;  %v764_v52 = vadd.f32 %v659_v0, %v412_v58  ;;  %v864_v53 = vsel %vm821_vm0, %v803_v61, 0.0  ;;  %v840_v29 = vsel %vm821_vm0, %v795_v62, 0.0 }
  0xfb   :  { %865 = vadd.xlane.f32.xlu0 %v864_v53  ;;  %841 = vadd.xlane.f32.xlu1 %v840_v29 }
  0xfc   :  { %v804_v30 = vmax.f32 %v772_v1, 0.0  ;;  %v796_v2 = vmax.f32 %v764_v52, 0.0 }
  0xfe   :  { %v867_v4 = vsel %vm821_vm0, %v804_v30, 0.0  ;;  %v843_v5 = vsel %vm821_vm0, %v796_v2, 0.0 }
  0xff   :  { %868 = vadd.xlane.f32.xlu0 %v867_v4  ;;  %844 = vadd.xlane.f32.xlu1 %v843_v5 }
 0x110   :  { %989 = vperm.xlu1 %1369, %v985_v35  }
 0x115   :  { %994 = vperm.xlu0 %1368, %v986_v36  }
 0x126   :  { %v872_v6 = vpop.xlane.xlu0 %871 }
 0x127   :  { %v935_v33 = vmul.f32 0.015625, %v872_v6 }
 0x129   :  { %v967_v46 = vpack.c.bf16 %v935_v33, %v935_v33 }
 0x12a   :  { %v896_v9 = vpop.xlane.xlu0 %895 }
 0x12b   :  { %v875_v59 = vpop.xlane.xlu1 %874  ;;  %v943_v34 = vmul.f32 0.015625, %v896_v9  ;;  %v1050_v62 = vunpack.c.l.b16 %v967_v46 }
 0x12c   :  { %v936_v31 = vmul.f32 0.015625, %v875_v59 }
 0x12d   :  { %v975_v47 = vpack.c.bf16 %v943_v34, %v943_v34 }
 0x12e   :  { %v899_v60 = vpop.xlane.xlu0 %898  ;;  %v968_v15 = vpack.c.bf16 %v936_v31, %v936_v31 }
 0x12f   :  { %v878_v10 = vpop.xlane.xlu1 %877  ;;  %v944_v32 = vmul.f32 0.015625, %v899_v60  ;;  %v1058_v63 = vunpack.c.l.b16 %v975_v47  ;;  %v1135_v60 = vrot.slane %v1050_v62, %v1798_v7 }
 0x130   :  { %v937_v37 = vmul.f32 0.015625, %v878_v10  ;;  %v1051_v56 = vunpack.c.l.b16 %v968_v15 }
 0x131   :  { %v976_v16 = vpack.c.bf16 %v944_v32, %v944_v32  ;;  %v1167_v10 = vrot.slane %v1058_v63, %v1798_v7 }
 0x132   :  { %v902_v8 = vpop.xlane.xlu0 %901  ;;  %v969_v50 = vpack.c.bf16 %v937_v37, %v937_v37  ;;  %v1139_v36 = vrot.slane %v1051_v56, %v1798_v7 }
 0x133   :  { %v945_v11 = vmul.f32 0.015625, %v902_v8  ;;  %v1059_v57 = vunpack.c.l.b16 %v976_v16 }
 0x134   :  { %v1052_v52 = vunpack.c.l.b16 %v969_v50  ;;  %v1217_v33 = vsel %vm1196_vm2, %v1139_v36, %v1135_v60 }
 0x135   :  { %v977_v43 = vpack.c.bf16 %v945_v11, %v945_v11  ;;  %v1171_v6 = vrot.slane %v1059_v57, %v1798_v7 }
 0x137   :  { %v1060_v53 = vunpack.c.l.b16 %v977_v43  ;;  %v1224_v34 = vsel %vm1196_vm2, %v1171_v6, %v1167_v10 }
 0x138   :  { %v881_v12 = vpop.xlane.xlu1 %880  ;;  %v905_v13 = vpop.xlane.xlu0 %904 }
 0x139   :  { %v938_v38 = vmul.f32 0.015625, %v881_v12  ;;  %v946_v39 = vmul.f32 0.015625, %v905_v13  ;;  %v1143_v13 = vrot.slane %v1052_v52, %v1798_v7 }
 0x13b   :  { %v970_v54 = vpack.c.bf16 %v938_v38, %v938_v38  ;;  %v978_v55 = vpack.c.bf16 %v946_v39, %v946_v39  ;;  %v1218_v15 = vsel %vm1198_vm3, %v1143_v13, %v1217_v33 }
 0x13d   :  { %v1053_v5 = vunpack.c.l.b16 %v970_v54  ;;  %v1061_v35 = vunpack.c.l.b16 %v978_v55 }
 0x13f   :  { %v1147_v17 = vrot.slane %v1053_v5, %v1798_v7  ;;  %v1179_v18 = vrot.slane %v1061_v35, %v1798_v7 }
 0x141   :  { %v1219_v46 = vsel %vm1200_vm4, %v1147_v17, %v1218_v15 }
 0x144   :  { %v884_v14 = vpop.xlane.xlu1 %883  ;;  %v908_v19 = vpop.xlane.xlu0 %907 }
 0x145   :  { %v939_v42 = vmul.f32 0.015625, %v884_v14  ;;  %v947_v45 = vmul.f32 0.015625, %v908_v19  ;;  %v1175_v14 = vrot.slane %v1060_v53, %v1798_v7 }
 0x147   :  { %v971_v58 = vpack.c.bf16 %v939_v42, %v939_v42  ;;  %v979_v61 = vpack.c.bf16 %v947_v45, %v947_v45  ;;  %v1225_v16 = vsel %vm1198_vm3, %v1175_v14, %v1224_v34 }
 0x148   :  { %v1226_v47 = vsel %vm1200_vm4, %v1179_v18, %v1225_v16 }
 0x149   :  { %v1054_v9 = vunpack.c.l.b16 %v971_v58  ;;  %v1062_v59 = vunpack.c.l.b16 %v979_v61 }
 0x14b   :  { %v1151_v37 = vrot.slane %v1054_v9, %v1798_v7  ;;  %v1183_v11 = vrot.slane %v1062_v59, %v1798_v7 }
 0x14d   :  { %v1220_v50 = vsel %vm1202_vm5, %v1151_v37, %v1219_v46  ;;  %v1227_v43 = vsel %vm1202_vm5, %v1183_v11, %v1226_v47 }
 0x150   :  { %v1786_v20 = vpop.xlane.xlu0 %826  ;;  %v1788_v21 = vpop.xlane.xlu1 %823 }
 0x151   :  { %v920_v56 = vmul.f32 0.015625, %v1786_v20  ;;  %v919_v57 = vmul.f32 0.015625, %v1788_v21 }
 0x153   :  { %v952_v53 = vpack.c.bf16 %v920_v56, %v920_v56 }
 0x154   :  { %v1790_v22 = vpop.xlane.xlu0 %850  ;;  %v1792_v25 = vpop.xlane.xlu1 %847 }
 0x155   :  { %v1035_v59 = vunpack.c.l.b16 %v952_v53 }
 0x158   :  { %v911_v26 = vpop.xlane.xlu0 %910  ;;  %v887_v27 = vpop.xlane.xlu1 %886 }
 0x159   :  { %v948_v48 = vmul.f32 0.015625, %v911_v26  ;;  %v940_v49 = vmul.f32 0.015625, %v887_v27 }
 0x15b   :  { %v980_v0 = vpack.c.bf16 %v948_v48, %v948_v48  ;;  %v972_v1 = vpack.c.bf16 %v940_v49, %v940_v49 }
 0x15d   :  { %v1063_v8 = vunpack.c.l.b16 %v980_v0  ;;  %v1055_v12 = vunpack.c.l.b16 %v972_v1  ;;  %v928_v0 = vmul.f32 0.015625, %v1790_v22  ;;  %v927_v1 = vmul.f32 0.015625, %v1792_v25 }
 0x15f   :  { %v1187_v38 = vrot.slane %v1063_v8, %v1798_v7  ;;  %v1155_v39 = vrot.slane %v1055_v12, %v1798_v7  ;;  %v960_v35 = vpack.c.bf16 %v928_v0, %v928_v0  ;;  %v959_v36 = vpack.c.bf16 %v927_v1, %v927_v1 }
 0x160   :  { %v1794_v23 = vpop.xlane.xlu0 %853  ;;  %v1796_v24 = vpop.xlane.xlu1 %829 }
 0x161   :  { %v1221_v54 = vsel %vm1204_vm6, %v1155_v39, %v1220_v50  ;;  %v1228_v55 = vsel %vm1204_vm6, %v1187_v38, %v1227_v43  ;;  %v929_v20 = vmul.f32 0.015625, %v1794_v23  ;;  %v921_v21 = vmul.f32 0.015625, %v1796_v24 }
 0x162   :  { %v1042_v24 = vunpack.c.l.b16 %v959_v36 }
 0x163   :  { %v961_v12 = vpack.c.bf16 %v929_v20, %v929_v20  ;;  %v953_v13 = vpack.c.bf16 %v921_v21, %v921_v21 }
 0x164   :  { %v914_v40 = vpop.xlane.xlu0 %913  ;;  %v890_v41 = vpop.xlane.xlu1 %889  ;;  %v1103_v39 = vrot.slane %v1042_v24, %v1798_v7 }
 0x165   :  { %v949_v44 = vmul.f32 0.015625, %v914_v40  ;;  %v941_v51 = vmul.f32 0.015625, %v890_v41  ;;  %v1044_v33 = vunpack.c.l.b16 %v961_v12  ;;  %v1036_v34 = vunpack.c.l.b16 %v953_v13 }
 0x167   :  { %v981_v29 = vpack.c.bf16 %v949_v44, %v949_v44  ;;  %v973_v30 = vpack.c.bf16 %v941_v51, %v941_v51  ;;  %v1111_v50 = vrot.slane %v1044_v33, %v1798_v7  ;;  %v1079_v43 = vrot.slane %v1036_v34, %v1798_v7 }
 0x169   :  { %v1064_v19 = vunpack.c.l.b16 %v981_v29  ;;  %v1056_v26 = vunpack.c.l.b16 %v973_v30  ;;  %v951_v29 = vpack.c.bf16 %v919_v57, %v919_v57 }
 0x16b   :  { %v1191_v42 = vrot.slane %v1064_v19, %v1798_v7  ;;  %v1159_v45 = vrot.slane %v1056_v26, %v1798_v7  ;;  %v1034_v60 = vunpack.c.l.b16 %v951_v29  ;;  %v1043_v19 = vunpack.c.l.b16 %v960_v35 }
 0x16c   :  { %v1800_v2 = vpop.xlane.xlu0 %856  ;;  %v1802_v4 = vpop.xlane.xlu1 %832 }
 0x16d   :  { %v1222_v58 = vsel %vm1206_vm7, %v1159_v45, %v1221_v54  ;;  %v1229_v61 = vsel %vm1206_vm7, %v1191_v42, %v1228_v55  ;;  %v930_v6 = vmul.f32 0.015625, %v1800_v2  ;;  %v922_v22 = vmul.f32 0.015625, %v1802_v4 }
 0x16e   :  { %v1075_v2 = vrot.slane %v1035_v59, %v1798_v7  ;;  %v1071_v4 = vrot.slane %v1034_v60, %v1798_v7  ;;  %v1107_v38 = vrot.slane %v1043_v19, %v1798_v7  ;;  %v1370_v19 = vld [vmem:[%s1886_s3] sm:$0x1f]  }
 0x16f   :  { %v962_v26 = vpack.c.bf16 %v930_v6, %v930_v6 }
 0x170   :  { %v917_v27 = vpop.xlane.xlu0 %916  ;;  %v893_v28 = vpop.xlane.xlu1 %892 }
 0x171   :  { %v950_v31 = vmul.f32 0.015625, %v917_v27  ;;  %v942_v32 = vmul.f32 0.015625, %v893_v28 }
 0x173   :  { %v982_v40 = vpack.c.bf16 %v950_v31, %v950_v31  ;;  %v974_v41 = vpack.c.bf16 %v942_v32, %v942_v32 }
 0x175   :  { %v1065_v48 = vunpack.c.l.b16 %v982_v40  ;;  %v1057_v49 = vunpack.c.l.b16 %v974_v41  ;;  %v1045_v40 = vunpack.c.l.b16 %v962_v26 }
 0x177   :  { %v1195_v44 = vrot.slane %v1065_v48, %v1798_v7  ;;  %v1163_v51 = vrot.slane %v1057_v49, %v1798_v7  ;;  %v1115_v54 = vrot.slane %v1045_v40, %v1798_v7 }
 0x178   :  { %v860_v30 = vpop.xlane.xlu0 %859  ;;  %v836_v5 = vpop.xlane.xlu1 %835 }
 0x179   :  { %v1223_v62 = vsel %vm1208_vm8, %v1163_v51, %v1222_v58  ;;  %v1230_v63 = vsel %vm1208_vm8, %v1195_v44, %v1229_v61  ;;  %v931_v9 = vmul.f32 0.015625, %v860_v30  ;;  %v923_v25 = vmul.f32 0.015625, %v836_v5 }
 0x17a   :  { %v1232_v52 = vpack.c.b16 %v1230_v63, %v1223_v62  ;;  %v1197_v58 = vsel %vm1196_vm2, %v1075_v2, %v1071_v4  ;;  %v1210_v61 = vsel %vm1196_vm2, %v1107_v38, %v1103_v39 }
 0x17b   :  { %v963_v27 = vpack.c.bf16 %v931_v9, %v931_v9  ;;  %v955_v28 = vpack.c.bf16 %v923_v25, %v923_v25  ;;  %v1211_v29 = vsel %vm1198_vm3, %v1111_v50, %v1210_v61  ;;  %v1199_v30 = vsel %vm1198_vm3, %v1079_v43, %v1197_v58 }
 0x17c   :  { %1358 = vmatpush3.bf16.msra.mxu0 %v1232_v52  ;;  %v1212_v21 = vsel %vm1200_vm4, %v1115_v54, %v1211_v29 }
 0x17d   :  { %1359 = vmatprep.subr.bf16.mxu0 %v1372_v3  ;;  %v954_v3 = vpack.c.bf16 %v922_v22, %v922_v22  ;;  %v1046_v15 = vunpack.c.l.b16 %v963_v27  ;;  %v1038_v16 = vunpack.c.l.b16 %v955_v28 }
 0x17f   :  { %v1037_v41 = vunpack.c.l.b16 %v954_v3  ;;  %v1119_v62 = vrot.slane %v1046_v15, %v1798_v7  ;;  %v1087_v63 = vrot.slane %v1038_v16, %v1798_v7 }
 0x180   :  { %v863_v10 = vpop.xlane.xlu0 %862  ;;  %v839_v8 = vpop.xlane.xlu1 %838 }
 0x181   :  { %v932_v14 = vmul.f32 0.015625, %v863_v10  ;;  %v924_v23 = vmul.f32 0.015625, %v839_v8  ;;  %v1083_v55 = vrot.slane %v1037_v41, %v1798_v7  ;;  %v1213_v22 = vsel %vm1202_vm5, %v1119_v62, %v1212_v21 }
 0x183   :  { %v964_v17 = vpack.c.bf16 %v932_v14, %v932_v14  ;;  %v956_v18 = vpack.c.bf16 %v924_v23, %v924_v23  ;;  %v1201_v35 = vsel %vm1200_vm4, %v1083_v55, %v1199_v30 }
 0x184   :  { %v866_v31 = vpop.xlane.xlu0 %865  ;;  %v842_v32 = vpop.xlane.xlu1 %841  ;;  %v1203_v9 = vsel %vm1202_vm5, %v1087_v63, %v1201_v35 }
 0x185   :  { %v933_v37 = vmul.f32 0.015625, %v866_v31  ;;  %v925_v11 = vmul.f32 0.015625, %v842_v32  ;;  %v1047_v46 = vunpack.c.l.b16 %v964_v17  ;;  %v1039_v47 = vunpack.c.l.b16 %v956_v18 }
 0x187   :  { %v965_v42 = vpack.c.bf16 %v933_v37, %v933_v37  ;;  %v957_v45 = vpack.c.bf16 %v925_v11, %v925_v11  ;;  %v1123_v0 = vrot.slane %v1047_v46, %v1798_v7  ;;  %v1091_v1 = vrot.slane %v1039_v47, %v1798_v7 }
 0x188   :  { %v869_v48 = vpop.xlane.xlu0 %868  ;;  %v845_v49 = vpop.xlane.xlu1 %844 }
 0x189   :  { %v1048_v44 = vunpack.c.l.b16 %v965_v42  ;;  %v1040_v51 = vunpack.c.l.b16 %v957_v45  ;;  %v934_v56 = vmul.f32 0.015625, %v869_v48  ;;  %v926_v57 = vmul.f32 0.015625, %v845_v49 }
 0x18a   :  { %v1214_v25 = vsel %vm1204_vm6, %v1123_v0, %v1213_v22  ;;  %v1205_v59 = vsel %vm1204_vm6, %v1091_v1, %v1203_v9 }
 0x18b   :  { %v966_v52 = vpack.c.bf16 %v934_v56, %v934_v56  ;;  %v958_v53 = vpack.c.bf16 %v926_v57, %v926_v57  ;;  %v1127_v5 = vrot.slane %v1048_v44, %v1798_v7  ;;  %v1095_v20 = vrot.slane %v1040_v51, %v1798_v7 }
 0x18c   :  { %v990_v24 = vpop.permute.xlu1 %989 }
 0x18d   :  { %v1049_v36 = vunpack.c.l.b16 %v966_v52  ;;  %v1041_v6 = vunpack.c.l.b16 %v958_v53  ;;  %v1207_v8 = vsel %vm1206_vm7, %v1095_v20, %v1205_v59  ;;  %v1215_v12 = vsel %vm1206_vm7, %v1127_v5, %v1214_v25 }
 0x18f   :  { %v1131_v60 = vrot.slane %v1049_v36, %v1798_v7  ;;  %v1099_v10 = vrot.slane %v1041_v6, %v1798_v7 }
 0x190   :  { %v995_v27 = vpop.permute.xlu0 %994 }
 0x191   :  { %v1209_v13 = vsel %vm1208_vm8, %v1099_v10, %v1207_v8  ;;  %v1216_v14 = vsel %vm1208_vm8, %v1131_v60, %v1215_v12 }
 0x192   :  { %v1231_v23 = vpack.c.b16 %v1216_v14, %v1209_v13 }
 0x194   :  { %1360 = vmatpush3.bf16.msra.mxu0 %v1231_v23 }
 0x197   :  { %1362 = vmatmul.mubr.msk.bf16.vlgmr.msra.gmra.mxu0 %vm1235_vm9, %v1370_v19 }
 0x257   :  { %v1273_v26 = vpop.f32.mrf.mxu0 }
 0x258   :  { %v1274_v7 = vadd.f32 %v1273_v26, %v990_v24 }
 0x259   :  { %v1363_v3 = vpop.f32.mrf.mxu0 }
 0x25a   :  { %1281 = vst.msk [vmem:[%s1887_s5] sm:$0xff] %vm1280_vm10, %v1274_v7 }
 0x25b   :  { %v1276_v28 = vpop.f32.mrf.mxu0 }
 0x25c   :  { %v1277_v2 = vadd.f32 %v1276_v28, %v995_v27 }
 0x25d   :  { %v1364_v4 = vpop.f32.mrf.mxu0 }
 0x25e   :  { %1283 = vst.msk [vmem:[%s1887_s5 + $0x8] sm:$0x3] %vm1282_vm11, %v1277_v2 }

</bundles_post_ra>
